<compile_context>
chip_gen: v7x
topology: tpu7x:2x2x1
jax: 0.10.0
libtpu: 0.0.40
codegen_flags: <defaults>
</compile_context>

<pallas_src>
import functools

import numpy as np
import jax
import jax.numpy as jnp
from jax.experimental import pallas as pl
from jax.experimental.pallas import tpu as pltpu


# -----------------------------------------------------------------------------
# Exact PyTorch bicubic weights (F.interpolate mode='bicubic', a=-0.75,
# align_corners=False, antialias=False, border clamp), built per axis.
# TODO(synk): if the source model ever uses antialias=True or bilinear for the
# 64x64 latent resize, these per-axis weights must be rebuilt accordingly.
# -----------------------------------------------------------------------------
def _cubic(t, a=-0.75):
    t = abs(float(t))
    if t <= 1.0:
        return (a + 2.0) * t ** 3 - (a + 3.0) * t ** 2 + 1.0
    if t < 2.0:
        return a * t ** 3 - 5.0 * a * t ** 2 + 8.0 * a * t - 4.0 * a
    return 0.0


def bicubic_weight_matrix(in_size, out_size):
    """(out_size, in_size) W so that W @ x == PyTorch bicubic along one axis."""
    scale = in_size / out_size
    W = np.zeros((out_size, in_size), dtype=np.float64)
    for o in range(out_size):
        src = (o + 0.5) * scale - 0.5
        i0 = int(np.floor(src))
        f = src - i0
        coeffs = (_cubic(f + 1.0), _cubic(f), _cubic(1.0 - f), _cubic(2.0 - f))
        for k in range(4):
            idx = min(max(i0 - 1 + k, 0), in_size - 1)
            W[o, idx] += coeffs[k]
    return W.astype(np.float32)


# -----------------------------------------------------------------------------
# Fused composite + separable bicubic resize kernel (latent path)
# -----------------------------------------------------------------------------
def _composite_resize_kernel(mask_ref, back_ref, feat_ref, wh_ref, wwT_ref,
                             out_ref):
    m = mask_ref[...]                       # (B, 1, Hin, Win)
    back = back_ref[...]                    # (B, C, Hin, Win)
    feat = feat_ref[...]                    # (B, C, Hin, Win)
    B, C, Hin, Win = back.shape
    R = 3 * C + 1
    N = B * R
    out_w = wwT_ref.shape[1]
    blk_h = wh_ref.shape[0]

    # Composite at render resolution (mask broadcast once over C).
    pmap = back + (feat - back) * m                              # (B, C, Hin, Win)

    # Single fused lhs holding every image to resize:
    # rows (per batch) = [image(C), mask(1), background(C), foreground(C)]
    lhs = jnp.concatenate([pmap, m, back, feat], axis=1)         # (B, R, Hin, Win)
    lhs = lhs.reshape(N, Hin, Win)                               # fold batch

    # W-pass: contract Win for all N images at once.
    wwT = jnp.broadcast_to(wwT_ref[...], (N, Win, out_w))
    t = jnp.einsum('nhw,nwo->nho', lhs, wwT,
                   preferred_element_type=jnp.float32,
                   precision=jax.lax.Precision.HIGHEST)          # (N, Hin, out_w)

    # H-pass for this output-row slab: contract Hin.
    wh = jnp.broadcast_to(wh_ref[...], (N, blk_h, Hin))
    out_ref[...] = jnp.einsum('nqh,nho->nqo', wh, t,
                              preferred_element_type=jnp.float32,
                              precision=jax.lax.Precision.HIGHEST)  # (N, blk_h, out_w)


def _composite_resize_pallas(mask, back, feat, wh, wwT, n_row_splits):
    """Composite + exact bicubic resize of [image, mask, back, feat]."""
    B, C, Hin, Win = back.shape
    out_h, hin2 = wh.shape
    win2, out_w = wwT.shape
    assert hin2 == Hin and win2 == Win
    R = 3 * C + 1
    N = B * R
    assert out_h % n_row_splits == 0
    blk_h = out_h // n_row_splits
    assert blk_h == out_h or blk_h % 8 == 0

    flops = (2 * N * Hin * Win * out_w          # W-pass
             + 2 * N * Hin * out_w * out_h      # H-pass
             + 4 * B * C * Hin * Win)           # composite
    bytes_accessed = 4 * (B * (2 * C + 1) * Hin * Win      # inputs
                          + Win * out_w + out_h * Hin      # weights
                          + N * out_h * out_w)             # output

    out = pl.pallas_call(
        _composite_resize_kernel,
        out_shape=jax.ShapeDtypeStruct((N, out_h, out_w), jnp.float32),
        grid=(n_row_splits,),
        in_specs=[
            pl.BlockSpec((B, 1, Hin, Win), lambda j: (0, 0, 0, 0)),
            pl.BlockSpec((B, C, Hin, Win), lambda j: (0, 0, 0, 0)),
            pl.BlockSpec((B, C, Hin, Win), lambda j: (0, 0, 0, 0)),
            pl.BlockSpec((blk_h, Hin), lambda j: (j, 0)),
            pl.BlockSpec((Win, out_w), lambda j: (0, 0)),
        ],
        out_specs=pl.BlockSpec((N, blk_h, out_w), lambda j: (0, j, 0)),
        compiler_params=pltpu.CompilerParams(
            dimension_semantics=("parallel",)),
        cost_estimate=pl.CostEstimate(flops=int(flops), transcendentals=0,
                                      bytes_accessed=int(bytes_accessed)),
    )(mask.astype(jnp.float32), back.astype(jnp.float32),
      feat.astype(jnp.float32), wh, wwT)

    out = out.reshape(B, R, out_h, out_w)
    image = out[:, :C]
    mask_o = out[:, C:C + 1]
    back_o = out[:, C + 1:2 * C + 1]
    feat_o = out[:, 2 * C + 1:]
    return image, mask_o, back_o, feat_o


@functools.lru_cache(maxsize=None)
def _make_composite_resize(n_row_splits):
    """custom_vjp wrapper so gradients reach pred_back / pred_features."""

    @jax.custom_vjp
    def f(mask, back, feat, wh, wwT):
        return _composite_resize_pallas(mask, back, feat, wh, wwT, n_row_splits)

    def fwd(mask, back, feat, wh, wwT):
        outs = _composite_resize_pallas(mask, back, feat, wh, wwT, n_row_splits)
        return outs, (mask, wh, wwT)

    def bwd(res, cots):
        mask, wh, wwT = res
        g_img, g_mask, g_back, g_feat = cots
        del g_mask  # mask is detached in render_train

        # adjoint of the separable bicubic resize: R^T(g) = Wh^T g Ww
        def rt(g):
            return jnp.einsum('oh,bcop,wp->bchw', wh, g, wwT,
                              precision=jax.lax.Precision.HIGHEST)

        d_pmap = rt(g_img)
        d_back = rt(g_back) + (1.0 - mask) * d_pmap
        d_feat = rt(g_feat) + mask * d_pmap
        return (jnp.zeros_like(mask), d_back, d_feat,
                jnp.zeros_like(wh), jnp.zeros_like(wwT))

    f.defvjp(fwd, bwd)
    return f


# -----------------------------------------------------------------------------
# Plain composite kernel (non-latent / already-64x64 path)
# -----------------------------------------------------------------------------
def _composite_kernel(mask_ref, back_ref, feat_ref, out_ref):
    m = mask_ref[...]                      # (B, 1, HW) — broadcast once over C
    back = back_ref[...]                   # (B, C, HW)
    feat = feat_ref[...]
    out_ref[...] = back + (feat - back) * m


def _composite_pallas(mask, back, feat):
    B, C, H, W = back.shape
    HW = H * W
    # Single whole-array grid step (no per-batch step overhead).
    # TODO(synk): for very large H*W (e.g. 512x512 RGB eval renders) tile HW
    # and raise vmem_limit_bytes; training-time grids comfortably fit VMEM.
    out = pl.pallas_call(
        _composite_kernel,
        out_shape=jax.ShapeDtypeStruct((B, C, HW), jnp.float32),
        grid=(1,),
        in_specs=[
            pl.BlockSpec((B, 1, HW), lambda i: (0, 0, 0)),
            pl.BlockSpec((B, C, HW), lambda i: (0, 0, 0)),
            pl.BlockSpec((B, C, HW), lambda i: (0, 0, 0)),
        ],
        out_specs=pl.BlockSpec((B, C, HW), lambda i: (0, 0, 0)),
        compiler_params=pltpu.CompilerParams(
            dimension_semantics=("arbitrary",)),
        cost_estimate=pl.CostEstimate(flops=3 * B * C * HW, transcendentals=0,
                                      bytes_accessed=4 * B * (3 * C + 1) * HW),
    )(mask.reshape(B, 1, HW).astype(jnp.float32),
      back.reshape(B, C, HW).astype(jnp.float32),
      feat.reshape(B, C, HW).astype(jnp.float32))
    return out.reshape(B, C, H, W)


@jax.custom_vjp
def pallas_composite(mask, back, feat):
    return _composite_pallas(mask, back, feat)


def _composite_fwd(mask, back, feat):
    return _composite_pallas(mask, back, feat), mask


def _composite_bwd(mask, g):
    return (jnp.zeros_like(mask), (1.0 - mask) * g, mask * g)


pallas_composite.defvjp(_composite_fwd, _composite_bwd)


# -----------------------------------------------------------------------------
# Model wrapper (parameter setup / glue in plain JAX)
# -----------------------------------------------------------------------------
class TexturedMeshModel:
    LATENT_TARGET = 64  # hard-coded 64x64 latent resolution, as in PyTorch

    def __init__(self, key, n_bg_faces=64, texture_resolution=32,
                 render_grid_size=16, latent_mode=True, n_row_splits=None):
        self.latent_mode = latent_mode
        self.texture_resolution = texture_resolution
        self.render_grid_size = render_grid_size

        if n_row_splits is None:
            # 2 output-row halves on dual-TC chips (v7x); 1 on single-TC v5e/v6e.
            n_row_splits = 1
            try:
                kind = jax.devices()[0].device_kind.lower()
                if 'v7' in kind or '7x' in kind:
                    n_row_splits = 2
            except Exception:
                pass
        self.n_row_splits = n_row_splits
        self._composite_resize = _make_composite_resize(n_row_splits)

        # fixed buffer from the PyTorch module
        self.linear_rgb_estimator = jnp.array(
            [[0.298, 0.207, 0.208],
             [0.187, 0.286, 0.173],
             [-0.158, 0.189, 0.264],
             [-0.184, -0.271, -0.473]], dtype=jnp.float32)          # (4, 3)

        k1, k2 = jax.random.split(key)
        # nn.Parameter(torch.rand(1, n_faces, 3, 4))
        self.background_sphere_colors = jax.random.uniform(
            k1, (1, n_bg_faces, 3, 4), dtype=jnp.float32)
        # init_paint analogue: latent texture (1,4,T,T) and its RGB projection
        self.texture_img = jax.random.uniform(
            k2, (1, 4, texture_resolution, texture_resolution), dtype=jnp.float32)
        self.texture_img_rgb_finetune = jnp.einsum(
            'bchw,cr->brhw', self.texture_img, self.linear_rgb_estimator)

        # (F,3,4)@(4,3): tiny contraction kept in plain jnp (a pallas_call would
        # be pure launch overhead); in PyTorch its result only feeds the
        # rasterizer, so it is not used inside render_train here.
        self._bg_colors_rgb = jnp.einsum(
            'bfcd,dr->bfcr', self.background_sphere_colors, self.linear_rgb_estimator)

        # TODO(synk): mesh loading/normalization, xatlas UV unwrap
        # (init_texture_map), kaolin index_vertices_by_faces and the kaolin
        # rasterizer have no Pallas equivalent; the rasterizer outputs are
        # taken as inputs to render_train.

        # cache of separable bicubic resize weights keyed by (Hin, Win)
        self._resize_w_cache = {}

    def _get_resize_weights(self, in_h, in_w):
        key = (in_h, in_w)
        if key not in self._resize_w_cache:
            wh = jnp.asarray(bicubic_weight_matrix(in_h, self.LATENT_TARGET))      # (64, Hin)
            wwT = jnp.asarray(bicubic_weight_matrix(in_w, self.LATENT_TARGET).T)   # (Win, 64)
            self._resize_w_cache[key] = (wh, wwT)
        return self._resize_w_cache[key]

    def get_params(self):
        if self.latent_mode:
            return [self.background_sphere_colors, self.texture_img]
        return [self.background_sphere_colors, self.texture_img_rgb_finetune]

    def project_background_colors(self):
        """background_sphere_colors @ linear_rgb_estimator (cached plain jnp)."""
        return self._bg_colors_rgb

    def render_train(self, pred_features, pred_back, mask):
        """pred_features/pred_back: (B,C,H,W), mask: (B,1,H,W) — NCHW float32.

        In PyTorch these come from the kaolin rasterizer (untranslatable)."""
        mask = jax.lax.stop_gradient(mask)  # mask.detach()

        if self.latent_mode and mask.shape[-1] != self.LATENT_TARGET:
            wh, wwT = self._get_resize_weights(mask.shape[-2], mask.shape[-1])
            image, mask_o, back_o, feat_o = self._composite_resize(
                mask.astype(jnp.float32), pred_back.astype(jnp.float32),
                pred_features.astype(jnp.float32), wh, wwT)
            return {'image': image, 'mask': mask_o,
                    'background': back_o, 'foreground': feat_o}

        pred_map = pallas_composite(mask, pred_back, pred_features)
        return {'image': pred_map, 'mask': mask,
                'background': pred_back, 'foreground': pred_features}


# -----------------------------------------------------------------------------
# Demo + reference / gradient checks
# -----------------------------------------------------------------------------
def _np_bicubic_resize(x_nchw, out_h, out_w):
    B, C, H, W = x_nchw.shape
    wh = bicubic_weight_matrix(H, out_h).astype(np.float64)
    ww = bicubic_weight_matrix(W, out_w).astype(np.float64)
    return np.einsum('oh,bchw,pw->bcop', wh, x_nchw.astype(np.float64), ww)


if __name__ == "__main__":
    key = jax.random.PRNGKey(0)
    kmodel, kfeat, kback, kmask = jax.random.split(key, 4)

    B, C_lat, H = 2, 4, 16   # small render grid -> triggers bicubic resize to 64x64

    # ---- latent mode: fused composite + separable exact-bicubic resize ----
    model = TexturedMeshModel(kmodel, n_bg_faces=64, texture_resolution=32,
                              render_grid_size=H, latent_mode=True)
    pred_features = jax.random.uniform(kfeat, (B, C_lat, H, H), dtype=jnp.float32)
    pred_back = jax.random.uniform(kback, (B, C_lat, H, H), dtype=jnp.float32)
    mask = (jax.random.uniform(kmask, (B, 1, H, H)) > 0.5).astype(jnp.float32)

    out = model.render_train(pred_features, pred_back, mask)
    for v in out.values():
        jax.block_until_ready(v)
    assert out['image'].shape == (B, C_lat, 64, 64)
    assert out['mask'].shape == (B, 1, 64, 64)
    assert out['background'].shape == (B, C_lat, 64, 64)
    assert out['foreground'].shape == (B, C_lat, 64, 64)

    # float64 numpy reference (exact bicubic, exact composite) — tight tolerance
    mask_np = np.asarray(mask, dtype=np.float64)
    back_np = np.asarray(pred_back, dtype=np.float64)
    feat_np = np.asarray(pred_features, dtype=np.float64)
    pmap_np = back_np * (1.0 - mask_np) + feat_np * mask_np
    assert np.allclose(np.asarray(out['image']),
                       _np_bicubic_resize(pmap_np, 64, 64), atol=1e-4, rtol=0)
    assert np.allclose(np.asarray(out['mask']),
                       _np_bicubic_resize(mask_np, 64, 64), atol=1e-4, rtol=0)
    assert np.allclose(np.asarray(out['background']),
                       _np_bicubic_resize(back_np, 64, 64), atol=1e-4, rtol=0)
    assert np.allclose(np.asarray(out['foreground']),
                       _np_bicubic_resize(feat_np, 64, 64), atol=1e-4, rtol=0)

    # ---- gradient check through the custom_vjp (mask is detached) ----
    def loss_pallas(feat_in, back_in):
        o = model.render_train(feat_in, back_in, mask)
        return (o['image'].sum() + 0.5 * o['foreground'].sum()
                + 0.25 * o['background'].sum())

    g_feat, g_back = jax.grad(loss_pallas, argnums=(0, 1))(pred_features, pred_back)
    jax.block_until_ready(g_feat)
    jax.block_until_ready(g_back)

    wh_j = jnp.asarray(bicubic_weight_matrix(H, 64))
    ww_j = jnp.asarray(bicubic_weight_matrix(H, 64))

    def loss_ref(feat_in, back_in):
        m = jax.lax.stop_gradient(mask)
        pmap = back_in * (1.0 - m) + feat_in * m
        rz = lambda x: jnp.einsum('oh,bchw,pw->bcop', wh_j, x, ww_j,
                                  precision=jax.lax.Precision.HIGHEST)
        return (rz(pmap).sum() + 0.5 * rz(feat_in).sum()
                + 0.25 * rz(back_in).sum())

    gr_feat, gr_back = jax.grad(loss_ref, argnums=(0, 1))(pred_features, pred_back)
    assert np.allclose(np.asarray(g_feat), np.asarray(gr_feat), rtol=1e-3, atol=5e-3)
    assert np.allclose(np.asarray(g_back), np.asarray(gr_back), rtol=1e-3, atol=5e-3)

    # ---- non-latent (RGB) mode: single-step lane-dense composite kernel ----
    model_rgb = TexturedMeshModel(kmodel, n_bg_faces=64, texture_resolution=32,
                                  render_grid_size=H, latent_mode=False)
    bsc_rgb = model_rgb.project_background_colors()
    jax.block_until_ready(bsc_rgb)
    assert bsc_rgb.shape == (1, 64, 3, 3)

    feat_rgb = jax.random.uniform(kfeat, (B, 3, H, H), dtype=jnp.float32)
    back_rgb = jax.random.uniform(kback, (B, 3, H, H), dtype=jnp.float32)
    out_rgb = model_rgb.render_train(feat_rgb, back_rgb, mask)
    for v in out_rgb.values():
        jax.block_until_ready(v)
    assert out_rgb['image'].shape == (B, 3, H, H)
    ref_rgb = (np.asarray(back_rgb) * (1.0 - np.asarray(mask))
               + np.asarray(feat_rgb) * np.asarray(mask))
    assert np.allclose(np.asarray(out_rgb['image']), ref_rgb, atol=1e-5, rtol=0)

    print("KERNEL_OK")
</pallas_src>

<mosaic_0001>
module attributes {stable_mosaic.version = 11 : i64} {
  func.func @_composite_resize_kernel(%arg0: i32, %arg1: memref<2x1x16x16xf32, #tpu.memory_space<vmem>>, %arg2: memref<2x4x16x16xf32, #tpu.memory_space<vmem>>, %arg3: memref<2x4x16x16xf32, #tpu.memory_space<vmem>>, %arg4: memref<64x16xf32, #tpu.memory_space<vmem>>, %arg5: memref<16x64xf32, #tpu.memory_space<vmem>>, %arg6: memref<26x64x64xf32, #tpu.memory_space<vmem>>) attributes {dimension_semantics = [#tpu.dimension_semantics<parallel>], iteration_bounds = array<i64: 1>, scalar_prefetch = 0 : i64, scratch_operands = 0 : i64, tpu.core_type = #tpu.core_type<tc>, window_params = [{pipeline_mode = #tpu.pipeline_mode<synchronous>, transform_indices = @transform_0, window_bounds = array<i64: 2, 1, 16, 16>}, {pipeline_mode = #tpu.pipeline_mode<synchronous>, transform_indices = @transform_1, window_bounds = array<i64: 2, 4, 16, 16>}, {pipeline_mode = #tpu.pipeline_mode<synchronous>, transform_indices = @transform_2, window_bounds = array<i64: 2, 4, 16, 16>}, {transform_indices = @transform_3, window_bounds = array<i64: 64, 16>}, {pipeline_mode = #tpu.pipeline_mode<synchronous>, transform_indices = @transform_4, window_bounds = array<i64: 16, 64>}, {transform_indices = @transform_5, window_bounds = array<i64: 26, 64, 64>}]} {
    %c0 = arith.constant 0 : index
    %c0_0 = arith.constant 0 : index
    %c0_1 = arith.constant 0 : index
    %c0_2 = arith.constant 0 : index
    %0 = vector.load %arg1[%c0, %c0_0, %c0_1, %c0_2] : memref<2x1x16x16xf32, #tpu.memory_space<vmem>>, vector<2x1x16x16xf32>
    %c0_3 = arith.constant 0 : index
    %c0_4 = arith.constant 0 : index
    %c0_5 = arith.constant 0 : index
    %c0_6 = arith.constant 0 : index
    %1 = vector.load %arg2[%c0_3, %c0_4, %c0_5, %c0_6] : memref<2x4x16x16xf32, #tpu.memory_space<vmem>>, vector<2x4x16x16xf32>
    %c0_7 = arith.constant 0 : index
    %c0_8 = arith.constant 0 : index
    %c0_9 = arith.constant 0 : index
    %c0_10 = arith.constant 0 : index
    %2 = vector.load %arg3[%c0_7, %c0_8, %c0_9, %c0_10] : memref<2x4x16x16xf32, #tpu.memory_space<vmem>>, vector<2x4x16x16xf32>
    %3 = arith.subf %2, %1 : vector<2x4x16x16xf32>
    %4 = vector.broadcast %0 : vector<2x1x16x16xf32> to vector<2x4x16x16xf32>
    %5 = arith.mulf %3, %4 : vector<2x4x16x16xf32>
    %6 = arith.addf %1, %5 : vector<2x4x16x16xf32>
    %7 = tpu.concatenate %6, %0, %1, %2 in 1 : vector<2x4x16x16xf32>, vector<2x1x16x16xf32>, vector<2x4x16x16xf32>, vector<2x4x16x16xf32> -> vector<2x13x16x16xf32>
    %8 = vector.shape_cast %7 : vector<2x13x16x16xf32> to vector<26x16x16xf32>
    %c0_11 = arith.constant 0 : index
    %c0_12 = arith.constant 0 : index
    %9 = vector.load %arg5[%c0_11, %c0_12] : memref<16x64xf32, #tpu.memory_space<vmem>>, vector<16x64xf32>
    %10 = vector.shape_cast %9 : vector<16x64xf32> to vector<1x16x64xf32>
    %11 = vector.broadcast %10 : vector<1x16x64xf32> to vector<26x16x64xf32>
    "tpu.trace_start"() <{level = 10 : i32, message = "nhw,nwo->nho"}> : () -> ()
    %cst = arith.constant dense<0.000000e+00> : vector<26x16x64xf32>
    %12 = tpu.matmul %8, %11, %cst {dimension_numbers = #tpu.dot_dimension_numbers<[2], [1], [1], [2], [0, 0, 0, 1, 1, 2], [0], [0]>, precision = #tpu.contract_precision<fp32>} : vector<26x16x16xf32>, vector<26x16x64xf32>, vector<26x16x64xf32> -> vector<26x16x64xf32>
    "tpu.trace_stop"() : () -> ()
    %c0_13 = arith.constant 0 : index
    %c0_14 = arith.constant 0 : index
    %13 = vector.load %arg4[%c0_13, %c0_14] : memref<64x16xf32, #tpu.memory_space<vmem>>, vector<64x16xf32>
    %14 = vector.shape_cast %13 : vector<64x16xf32> to vector<1x64x16xf32>
    %15 = vector.broadcast %14 : vector<1x64x16xf32> to vector<26x64x16xf32>
    "tpu.trace_start"() <{level = 10 : i32, message = "nqh,nho->nqo"}> : () -> ()
    %cst_15 = arith.constant dense<0.000000e+00> : vector<26x64x64xf32>
    %16 = tpu.matmul %15, %12, %cst_15 {dimension_numbers = #tpu.dot_dimension_numbers<[2], [1], [1], [2], [0, 0, 0, 1, 1, 2], [0], [0]>, precision = #tpu.contract_precision<fp32>} : vector<26x64x16xf32>, vector<26x16x64xf32>, vector<26x64x64xf32> -> vector<26x64x64xf32>
    "tpu.trace_stop"() : () -> ()
    %c0_16 = arith.constant 0 : index
    %c0_17 = arith.constant 0 : index
    %c0_18 = arith.constant 0 : index
    %17 = vector.load %arg6[%c0_16, %c0_17, %c0_18] : memref<26x64x64xf32, #tpu.memory_space<vmem>>, vector<26x64x64xf32>
    tpu.vector_store %arg6[%c0_16, %c0_17, %c0_18], %16 {strides = array<i32>} : memref<26x64x64xf32, #tpu.memory_space<vmem>>, vector<26x64x64xf32>,
    return
  }
  func.func @transform_0(%arg0: i32) -> (i32, i32, i32, i32) {
    %c0_i32 = arith.constant 0 : i32
    %c0_i32_0 = arith.constant 0 : i32
    %c0_i32_1 = arith.constant 0 : i32
    %c0_i32_2 = arith.constant 0 : i32
    %c0_i32_3 = arith.constant 0 : i32
    return %c0_i32, %c0_i32_0, %c0_i32_1, %c0_i32_2 : i32, i32, i32, i32
  }
  func.func @transform_1(%arg0: i32) -> (i32, i32, i32, i32) {
    %c0_i32 = arith.constant 0 : i32
    %c0_i32_0 = arith.constant 0 : i32
    %c0_i32_1 = arith.constant 0 : i32
    %c0_i32_2 = arith.constant 0 : i32
    %c0_i32_3 = arith.constant 0 : i32
    return %c0_i32, %c0_i32_0, %c0_i32_1, %c0_i32_2 : i32, i32, i32, i32
  }
  func.func @transform_2(%arg0: i32) -> (i32, i32, i32, i32) {
    %c0_i32 = arith.constant 0 : i32
    %c0_i32_0 = arith.constant 0 : i32
    %c0_i32_1 = arith.constant 0 : i32
    %c0_i32_2 = arith.constant 0 : i32
    %c0_i32_3 = arith.constant 0 : i32
    return %c0_i32, %c0_i32_0, %c0_i32_1, %c0_i32_2 : i32, i32, i32, i32
  }
  func.func @transform_3(%arg0: i32) -> (i32, i32) {
    %c0_i32 = arith.constant 0 : i32
    %c0_i32_0 = arith.constant 0 : i32
    return %arg0, %c0_i32 : i32, i32
  }
  func.func @transform_4(%arg0: i32) -> (i32, i32) {
    %c0_i32 = arith.constant 0 : i32
    %c0_i32_0 = arith.constant 0 : i32
    %c0_i32_1 = arith.constant 0 : i32
    return %c0_i32, %c0_i32_0 : i32, i32
  }
  func.func @transform_5(%arg0: i32) -> (i32, i32, i32) {
    %c0_i32 = arith.constant 0 : i32
    %c0_i32_0 = arith.constant 0 : i32
    %c0_i32_1 = arith.constant 0 : i32
    return %c0_i32, %arg0, %c0_i32_0 : i32, i32, i32
  }
}

</mosaic_0001>

<bundles_post_ra>
// kernel: tpu_custom_call.1
= control target key start
LH: loop header
LB: loop body
LE: loop exit
PB: predicated region body
PF: predicated region fallthrough
CT: control target
= control target key end

     0   :  { %10 = vsyncpa [#allocation3], 0  ;;  %s45124_s0 = inlined_call_operand.vmem [shape: f32[2,1,16,16], index: 0, kind: input, shape index: {}]   ;;  %s45125_s1 = inlined_call_operand.hbm [shape: f32[2,4,16,16], index: 1, kind: input, shape index: {}]   ;;  %s45126_s2 = inlined_call_operand.hbm [shape: f32[2,4,16,16], index: 2, kind: input, shape index: {}]   ;;  %s45127_s3 = inlined_call_operand.vmem [shape: f32[64,16], index: 3, kind: input, shape index: {}]   ;;  %s45128_s4 = inlined_call_operand.vmem [shape: f32[16,64], index: 4, kind: input, shape index: {}]   ;;  %s45129_s5 = inlined_call_operand.hbm [shape: f32[26,64,64], index: 5, kind: output, shape index: {}]  }
   0x1   :  { %11 = vsyncpa [#allocation6], 0 }
   0x2   :  { %12 = vsyncpa [#allocation4], 0  ;;  %s41764_s18 = smov [#allocation2]   ;;  %s41692_s22 = scalar_lea.hbm %s45125_s1, 2048 }
   0x3   :  { %s20_s19 = sshll.u32 %s41764_s18, 4  ;;  %p41693_p0 = scmp.ne.s32.totalorder %s45125_s1, %s41692_s22  ;;  %s21_s19 = int_to_ptr.vmem [resolvable:$true] %s20_s19 }
   0x4   :  { %p41696_p1 = scmp.lt.u32.totalorder %s41692_s22, %s45125_s1 }
   0x6   :  { %p41698_p2 = pnand %p41696_p1, %p41693_p0 }
   0x8   :  { %41701 = shalt.err (!%p41698_p2)
}
   0x9   :  { %s41702_s27 = scalar_lea.vmem %s21_s19, 2048  ;;  %p41707_p4 = scmp.lt.s32.totalorder %s21_s19, %s21_s19 }
   0xa   :  { %p41703_p3 = scmp.ne.s32.totalorder %s21_s19, %s41702_s27  ;;  %p41708_p5 = scmp.lt.s32.totalorder %s41702_s27, %s41702_s27 }
   0xc   :  { %p41709_p6 = por %p41708_p5, %p41707_p4 }
   0xe   :  { %p41710_p7 = pnand %p41709_p6, %p41703_p3 }
  0x10   :  { %41713 = shalt.err (!%p41710_p7)
}
  0x11   :  { %s41765_s28 = smov 128   ;;  %s41766_s29 = smov 8  }
  0x12   :  { %26 = dma.hbm_to_vmem [thread:$0]  %s45125_s1, 2048, %s21_s19, [#allocation3], %s41765_s28, %s41765_s28, %s41766_s29  }
  0x13   :  { %s41767_s7 = smov [#allocation5]   ;;  %s41714_s11 = scalar_lea.hbm %s45126_s2, 2048 }
  0x14   :  { %s32_s8 = sshll.u32 %s41767_s7, 4  ;;  %p41715_p8 = scmp.ne.s32.totalorder %s45126_s2, %s41714_s11  ;;  %s33_s8 = int_to_ptr.vmem [resolvable:$true] %s32_s8 }
  0x15   :  { %p41718_p9 = scmp.lt.u32.totalorder %s41714_s11, %s45126_s2 }
  0x17   :  { %p41720_p10 = pnand %p41718_p9, %p41715_p8 }
  0x19   :  { %41723 = shalt.err (!%p41720_p10)
}
  0x1a   :  { %s41724_s16 = scalar_lea.vmem %s33_s8, 2048  ;;  %p41729_p12 = scmp.lt.s32.totalorder %s33_s8, %s33_s8 }
  0x1b   :  { %p41725_p11 = scmp.ne.s32.totalorder %s33_s8, %s41724_s16  ;;  %p41730_p13 = scmp.lt.s32.totalorder %s41724_s16, %s41724_s16 }
  0x1d   :  { %p41731_p0 = por %p41730_p13, %p41729_p12 }
  0x1f   :  { %p41732_p1 = pnand %p41731_p0, %p41725_p11 }
  0x21   :  { %41735 = shalt.err (!%p41732_p1)
}
  0x22   :  { %38 = dma.hbm_to_vmem [thread:$0]  %s45126_s2, 2048, %s33_s8, [#allocation6], %s41765_s28, %s41765_s28, %s41766_s29  }
  0x23   :  { %41758 = dma.done.wait [#allocation3], 2048  }
  0x24   :  { %41759 = vsyncadd [#allocation3], 4294965248 }
  0x25   :  { %41760 = dma.done.wait [#allocation6], 2048  }
  0x26   :  { %41761 = vsyncadd [#allocation6], 4294965248  ;;  %v133_v0 = vld [vmem:[%s45128_s4] sm:$0xff]  ;;  %v134_v1 = vld [vmem:[%s45128_s4 + $0x8] sm:$0xff]  ;;  %vm135_vm0 = vcmask 130048   ;;  %vm33136_vm1 = vcmask 523264  }
  0x27   :  { %v41838_v2 = vld [vmem:[%s45124_s0] sm:$0xff]  ;;  %v143_v3 = vand.u32 4294901760, %v133_v0  ;;  %v146_v4 = vand.u32 4294901760, %v134_v1  ;;  %v41844_v7 = vld [vmem:[#allocation2 + $0x10] sm:$0xff]  ;;  %v41853_v10 = vld [vmem:[%s45124_s0 + $0x8] sm:$0xff] }
  0x28   :  { %v41840_v5 = vld [vmem:[#allocation2] sm:$0xff]  ;;  %v41848_v9 = vld [vmem:[#allocation5 + $0x10] sm:$0xff]  ;;  %v41855_v11 = vld [vmem:[#allocation2 + $0x8] sm:$0xff] }
  0x29   :  { %v41842_v6 = vld [vmem:[#allocation5] sm:$0xff]  ;;  %v41857_v12 = vpack.c.bf16 %v146_v4, %v143_v3  ;;  %v41859_v13 = vsub.f32 %v133_v0, %v143_v3  ;;  %v41861_v14 = vsub.f32 %v134_v1, %v146_v4  ;;  %v87_v15 = vsub.f32 %v41848_v9, %v41844_v7  ;;  %v41865_v16 = vld [vmem:[#allocation5 + $0x8] sm:$0xff]  ;;  %v41867_v17 = vld [vmem:[#allocation2 + $0x18] sm:$0xff] }
  0x2a   :  { %v85_v8 = vsub.f32 %v41842_v6, %v41840_v5  ;;  %v41869_v18 = vld [vmem:[#allocation5 + $0x18] sm:$0xff]  ;;  %v86_v20 = vsub.f32 %v41865_v16, %v41855_v11  ;;  %v41941_v61 = vld [vmem:[#allocation2 + $0x20] sm:$0xff]  ;;  %v41945_v63 = vld [vmem:[#allocation2 + $0x30] sm:$0xff] }
  0x2b   :  { %v88_v21 = vsub.f32 %v41869_v18, %v41867_v17  ;;  %39136 = vmatprep.subr.bf16.mxu0 %v41857_v12  ;;  %39160 = vmatprep.subr.bf16.mxu1 %v41857_v12  ;;  %v232_v22 = vand.u32 4294901760, %v41859_v13  ;;  %v239_v23 = vand.u32 4294901760, %v41861_v14  ;;  %v103_v24 = vmul.f32 %v87_v15, %v41838_v2  ;;  %v41943_v62 = vld [vmem:[#allocation5 + $0x20] sm:$0xff]  ;;  %v41947_v0 = vld [vmem:[#allocation5 + $0x30] sm:$0xff]  ;;  %v41949_v1 = vld [vmem:[#allocation2 + $0x28] sm:$0xff] }
  0x2c   :  { %v101_v19 = vmul.f32 %v85_v8, %v41838_v2  ;;  %39138 = vmatpush3.bf16.msra.mxu0 %v41857_v12  ;;  %39162 = vmatpush3.bf16.msra.mxu1 %v41857_v12  ;;  %v102_v26 = vmul.f32 %v86_v20, %v41853_v10  ;;  %v41933_v60 = vpack.c.bf16 %v41861_v14, %v41859_v13  ;;  %v41951_v3 = vld [vmem:[#allocation5 + $0x28] sm:$0xff]  ;;  %v41953_v4 = vld [vmem:[#allocation2 + $0x38] sm:$0xff] }
  0x2d   :  { %v104_v27 = vmul.f32 %v88_v21, %v41853_v10  ;;  %v233_v28 = vsub.f32 %v41859_v13, %v232_v22  ;;  %v240_v29 = vsub.f32 %v41861_v14, %v239_v23  ;;  %v119_v30 = vadd.f32 %v103_v24, %v41844_v7  ;;  %v41955_v8 = vld [vmem:[#allocation5 + $0x38] sm:$0xff] }
  0x2e   :  { %v117_v25 = vadd.f32 %v101_v19, %v41840_v5  ;;  %v118_v32 = vadd.f32 %v102_v26, %v41855_v11  ;;  %v89_v15 = vsub.f32 %v41943_v62, %v41941_v61  ;;  %v91_v19 = vsub.f32 %v41947_v0, %v41945_v63 }
  0x2f   :  { %v120_v33 = vadd.f32 %v104_v27, %v41867_v17  ;;  %v234_v35 = vand.u32 4294901760, %v233_v28  ;;  %v241_v36 = vand.u32 4294901760, %v240_v29  ;;  %v645_v37 = vsel %vm135_vm0, %v119_v30, 0 }
  0x30   :  { %v137_v31 = vsel %vm135_vm0, %v117_v25, 0  ;;  %v41899_v38 = vand.u32 4294901760, %v645_v37  ;;  %v140_v39 = vsel %vm135_vm0, %v118_v32, 0  ;;  %v90_v20 = vsub.f32 %v41951_v3, %v41949_v1 }
  0x31   :  { %v41896_v34 = vand.u32 4294901760, %v137_v31  ;;  %v648_v40 = vsel %vm135_vm0, %v120_v33, 0  ;;  %v41906_v42 = vpack.c.bf16 %v241_v36, %v234_v35  ;;  %v41908_v43 = vand.u32 4294901760, %v140_v39 }
  0x32   :  { %v41910_v44 = vand.u32 4294901760, %v648_v40  ;;  %v41913_v45 = vsub.f32 %v645_v37, %v41899_v38  ;;  %v92_v21 = vsub.f32 %v41955_v8, %v41953_v4  ;;  %v105_v24 = vmul.f32 %v89_v15, %v41838_v2 }
  0x33   :  { %v41904_v41 = vsub.f32 %v137_v31, %v41896_v34  ;;  %39140 = vmatprep.subr.bf16.mxu0 %v41906_v42  ;;  %39164 = vmatprep.subr.bf16.mxu1 %v41906_v42  ;;  %v41919_v47 = vsub.f32 %v140_v39, %v41908_v43  ;;  %v107_v25 = vmul.f32 %v91_v19, %v41838_v2 }
  0x34   :  { %v41922_v48 = vsub.f32 %v648_v40, %v41910_v44  ;;  %v719_v49 = vand.u32 4294901760, %v41913_v45  ;;  %v106_v26 = vmul.f32 %v90_v20, %v41853_v10  ;;  %v108_v27 = vmul.f32 %v92_v21, %v41853_v10 }
  0x35   :  { %v211_v46 = vand.u32 4294901760, %v41904_v41  ;;  %v221_v51 = vand.u32 4294901760, %v41919_v47  ;;  %v41981_v28 = vpack.c.bf16 %v239_v23, %v232_v22  ;;  %v121_v29 = vadd.f32 %v105_v24, %v41941_v61 }
  0x36   :  { %v729_v52 = vand.u32 4294901760, %v41922_v48  ;;  %v720_v53 = vsub.f32 %v41913_v45, %v719_v49  ;;  %v123_v30 = vadd.f32 %v107_v25, %v41945_v63  ;;  %v122_v31 = vadd.f32 %v106_v26, %v41949_v1 }
  0x37   :  { %v212_v50 = vsub.f32 %v41904_v41, %v211_v46  ;;  %v222_v55 = vsub.f32 %v41919_v47, %v221_v51  ;;  %v124_v13 = vadd.f32 %v108_v27, %v41953_v4  ;;  %v1153_v14 = vsel %vm135_vm0, %v121_v29, 0 }
  0x38   :  { %v730_v56 = vsub.f32 %v41922_v48, %v729_v52  ;;  %v721_v57 = vand.u32 4294901760, %v720_v53  ;;  %v1661_v22 = vsel %vm135_vm0, %v123_v30, 0  ;;  %v1156_v23 = vsel %vm135_vm0, %v122_v31, 0 }
  0x39   :  { %v213_v54 = vand.u32 4294901760, %v212_v50  ;;  %v223_v58 = vand.u32 4294901760, %v222_v55  ;;  %v1664_v32 = vsel %vm135_vm0, %v124_v13, 0  ;;  %v41997_v33 = vand.u32 4294901760, %v1153_v14 }
  0x3a   :  { %v731_v59 = vand.u32 4294901760, %v730_v56  ;;  %35593 = vmatprep.mubr.f32.mxu1 %v721_v57  ;;  %v41999_v35 = vand.u32 4294901760, %v1661_v22  ;;  %v42001_v36 = vand.u32 4294901760, %v1156_v23  ;;  %v42003_v37 = vand.u32 4294901760, %v1664_v32 }
  0x3b   :  { %35551 = vmatprep.mubr.f32.mxu0 %v213_v54  ;;  %v1226_v39 = vsub.f32 %v1153_v14, %v41997_v33 }
  0x3c   :  { %35552 = vmatmul.mubr.f32.vlgmr.msra.gmra.mrb[0].mxu0 %v223_v58  ;;  %35594 = vmatmul.mubr.f32.vlgmr.msra.gmra.mrb[0].mxu1 %v731_v59  ;;  %v1734_v40 = vsub.f32 %v1661_v22, %v41999_v35 }
  0x3d   :  { %39142 = vmatpush3.bf16.msra.mxu0 %v41906_v42  ;;  %39166 = vmatpush3.bf16.msra.mxu1 %v41906_v42 }
  0x3e   :  { %35558 = vmatprep.mubr.f32.mxu0 %v41896_v34  ;;  %39144 = vmatprep.subr.bf16.mxu0 %v41933_v60 }
  0x3f   :  { %35600 = vmatprep.mubr.f32.mxu1 %v41899_v38  ;;  %39168 = vmatprep.subr.bf16.mxu1 %v41933_v60 }
  0x44   :  { %35559 = vmatmul.mubr.f32.vlgmr.msra.gmra.mrb[0].mxu0 %v41908_v43  ;;  %35601 = vmatmul.mubr.f32.vlgmr.msra.gmra.mrb[0].mxu1 %v41910_v44 }
  0x45   :  { %39146 = vmatpush3.bf16.msra.mxu0 %v41933_v60  ;;  %39170 = vmatpush3.bf16.msra.mxu1 %v41933_v60 }
  0x46   :  { %35565 = vmatprep.mubr.f32.mxu0 %v41904_v41  ;;  %39148 = vmatprep.subr.bf16.mxu0 %v41857_v12  ;;  %v1236_v41 = vsub.f32 %v1156_v23, %v42001_v36  ;;  %v3185_v23 = vsel %vm135_vm0, %v41844_v7, 0 }
  0x47   :  { %35607 = vmatprep.mubr.f32.mxu1 %v41913_v45  ;;  %39172 = vmatprep.subr.bf16.mxu1 %v41857_v12  ;;  %v1744_v45 = vsub.f32 %v1664_v32, %v42003_v37  ;;  %v3693_v32 = vsel %vm135_vm0, %v41941_v61, 0 }
  0x4c   :  { %35566 = vmatmul.mubr.f32.vlgmr.msra.gmra.mrb[0].mxu0 %v41919_v47  ;;  %35608 = vmatmul.mubr.f32.vlgmr.msra.gmra.mrb[0].mxu1 %v41922_v48  ;;  %v1735_v47 = vand.u32 4294901760, %v1734_v40  ;;  %v1237_v48 = vand.u32 4294901760, %v1236_v41 }
  0x4d   :  { %39150 = vmatpush3.bf16.msra.mxu0 %v41857_v12  ;;  %39174 = vmatpush3.bf16.msra.mxu1 %v41857_v12 }
  0x4e   :  { %35572 = vmatprep.mubr.f32.mxu0 %v211_v46  ;;  %39152 = vmatprep.subr.bf16.mxu0 %v41981_v28  ;;  %v1227_v46 = vand.u32 4294901760, %v1226_v39 }
  0x4f   :  { %35614 = vmatprep.mubr.f32.mxu1 %v719_v49  ;;  %39176 = vmatprep.subr.bf16.mxu1 %v41981_v28  ;;  %v1745_v49 = vand.u32 4294901760, %v1744_v45 }
  0x50   :  { %v1228_v50 = vsub.f32 %v1226_v39, %v1227_v46 }
  0x51   :  { %v1746_v53 = vsub.f32 %v1744_v45, %v1745_v49 }
  0x52   :  { %v1229_v54 = vand.u32 4294901760, %v1228_v50 }
  0x53   :  { %v1747_v57 = vand.u32 4294901760, %v1746_v53 }
  0x54   :  { %35573 = vmatmul.mubr.f32.vlgmr.msra.gmra.mrb[0].mxu0 %v221_v51  ;;  %35615 = vmatmul.mubr.f32.vlgmr.msra.gmra.mrb[0].mxu1 %v729_v52  ;;  %v1736_v51 = vsub.f32 %v1734_v40, %v1735_v47  ;;  %v1238_v52 = vsub.f32 %v1236_v41, %v1237_v48 }
  0x55   :  { %39154 = vmatpush3.bf16.msra.mxu0 %v41981_v28  ;;  %39178 = vmatpush3.bf16.msra.mxu1 %v41981_v28 }
  0x56   :  { %35579 = vmatprep.mubr.f32.mxu0 %v41896_v34  ;;  %39156 = vmatprep.subr.bf16.mxu0 %v41857_v12  ;;  %v1737_v55 = vand.u32 4294901760, %v1736_v51  ;;  %v1239_v56 = vand.u32 4294901760, %v1238_v52 }
  0x57   :  { %35621 = vmatprep.mubr.f32.mxu1 %v41899_v38  ;;  %39180 = vmatprep.subr.bf16.mxu1 %v41857_v12 }
  0x5c   :  { %35580 = vmatmul.mubr.f32.vlgmr.msra.gmra.mrb[0].mxu0 %v41908_v43  ;;  %35622 = vmatmul.mubr.f32.vlgmr.msra.gmra.mrb[0].mxu1 %v41910_v44 }
  0x5d   :  { %39158 = vmatpush3.bf16.msra.mxu0 %v41857_v12  ;;  %39182 = vmatpush3.bf16.msra.mxu1 %v41857_v12 }
  0x5e   :  { %35586 = vmatprep.mubr.f32.mxu0 %v41896_v34  ;;  %35628 = vmatprep.mubr.f32.mxu1 %v41899_v38  ;;  %v2169_v34 = vsel %vm135_vm0, %v41838_v2, 0  ;;  %v2677_v38 = vsel %vm135_vm0, %v41840_v5, 0 }
  0x5f   :  { %39184 = vmatprep.subr.bf16.mxu0 %v41857_v12  ;;  %39208 = vmatprep.subr.bf16.mxu1 %v41857_v12  ;;  %v42053_v58 = vand.u32 4294901760, %v2169_v34  ;;  %v42055_v59 = vand.u32 4294901760, %v2677_v38 }
  0x61   :  { %v2242_v2 = vsub.f32 %v2169_v34, %v42053_v58  ;;  %v2750_v5 = vsub.f32 %v2677_v38, %v42055_v59  ;;  %v4204_v34 = vsel %vm135_vm0, %v41953_v4, 0  ;;  %v4712_v38 = vsel %vm135_vm0, %v41865_v16, 0 }
  0x63   :  { %v2243_v20 = vand.u32 4294901760, %v2242_v2  ;;  %v2751_v21 = vand.u32 4294901760, %v2750_v5 }
  0x64   :  { %35587 = vmatmul.mubr.f32.vlgmr.msra.gmra.mrb[0].mxu0 %v41908_v43  ;;  %35629 = vmatmul.mubr.f32.vlgmr.msra.gmra.mrb[0].mxu1 %v41910_v44  ;;  %v2172_v43 = vsel %vm135_vm0, %v41853_v10, 0  ;;  %v2680_v44 = vsel %vm135_vm0, %v41855_v11, 0 }
  0x65   :  { %39186 = vmatpush3.bf16.msra.mxu0 %v41857_v12  ;;  %39210 = vmatpush3.bf16.msra.mxu1 %v41857_v12  ;;  %v42057_v15 = vand.u32 4294901760, %v2172_v43  ;;  %v42059_v19 = vand.u32 4294901760, %v2680_v44  ;;  %v2244_v26 = vsub.f32 %v2242_v2, %v2243_v20  ;;  %v2752_v27 = vsub.f32 %v2750_v5, %v2751_v21 }
  0x66   :  { %35635 = vmatprep.mubr.f32.mxu0 %v1229_v54  ;;  %39188 = vmatprep.subr.bf16.mxu0 %v41906_v42 }
  0x67   :  { %35677 = vmatprep.mubr.f32.mxu1 %v1737_v55  ;;  %39212 = vmatprep.subr.bf16.mxu1 %v41906_v42  ;;  %v2252_v10 = vsub.f32 %v2172_v43, %v42057_v15  ;;  %v2760_v11 = vsub.f32 %v2680_v44, %v42059_v19  ;;  %v2245_v31 = vand.u32 4294901760, %v2244_v26  ;;  %v2753_v13 = vand.u32 4294901760, %v2752_v27 }
  0x68   :  { %35636 = vmatmul.mubr.f32.vlgmr.msra.gmra.mrb[2].mxu0 %v1239_v56  ;;  %35678 = vmatmul.mubr.f32.vlgmr.msra.gmra.mrb[2].mxu1 %v1747_v57  ;;  %v4201_v56 = vsel %vm135_vm0, %v41945_v63, 0  ;;  %v4709_v57 = vsel %vm135_vm0, %v41842_v6, 0 }
  0x69   :  { %39190 = vmatpush3.bf16.msra.mxu0 %v41906_v42  ;;  %39214 = vmatpush3.bf16.msra.mxu1 %v41906_v42  ;;  %v2253_v24 = vand.u32 4294901760, %v2252_v10  ;;  %v2761_v25 = vand.u32 4294901760, %v2760_v11  ;;  %v42165_v43 = vand.u32 4294901760, %v4201_v56  ;;  %v42167_v44 = vand.u32 4294901760, %v4709_v57 }
  0x6a   :  { %35642 = vmatprep.mubr.f32.mxu0 %v41997_v33  ;;  %39192 = vmatprep.subr.bf16.mxu0 %v41933_v60 }
  0x6b   :  { %35684 = vmatprep.mubr.f32.mxu1 %v41999_v35  ;;  %39216 = vmatprep.subr.bf16.mxu1 %v41933_v60  ;;  %v2254_v29 = vsub.f32 %v2252_v10, %v2253_v24  ;;  %v2762_v30 = vsub.f32 %v2760_v11, %v2761_v25  ;;  %v4274_v6 = vsub.f32 %v4201_v56, %v42165_v43 }
  0x6c   :  { %v4782_v16 = vsub.f32 %v4709_v57, %v42167_v44 }
  0x6d   :  { %v2255_v14 = vand.u32 4294901760, %v2254_v29  ;;  %v2763_v22 = vand.u32 4294901760, %v2762_v30  ;;  %v5217_v29 = vsel %vm135_vm0, %v41848_v9, 0  ;;  %v5725_v30 = vsel %vm135_vm0, %v41943_v62, 0 }
  0x70   :  { %35643 = vmatmul.mubr.f32.vlgmr.msra.gmra.mrb[2].mxu0 %v42001_v36  ;;  %35685 = vmatmul.mubr.f32.vlgmr.msra.gmra.mrb[2].mxu1 %v42003_v37 }
  0x71   :  { %39194 = vmatpush3.bf16.msra.mxu0 %v41933_v60  ;;  %39218 = vmatpush3.bf16.msra.mxu1 %v41933_v60 }
  0x72   :  { %35649 = vmatprep.mubr.f32.mxu0 %v1226_v39  ;;  %39196 = vmatprep.subr.bf16.mxu0 %v41857_v12 }
  0x73   :  { %35691 = vmatprep.mubr.f32.mxu1 %v1734_v40  ;;  %39220 = vmatprep.subr.bf16.mxu1 %v41857_v12 }
  0x78   :  { %35650 = vmatmul.mubr.f32.vlgmr.msra.gmra.mrb[2].mxu0 %v1236_v41  ;;  %35692 = vmatmul.mubr.f32.vlgmr.msra.gmra.mrb[2].mxu1 %v1744_v45 }
  0x79   :  { %39198 = vmatpush3.bf16.msra.mxu0 %v41857_v12  ;;  %39222 = vmatpush3.bf16.msra.mxu1 %v41857_v12 }
  0x7a   :  { %35656 = vmatprep.mubr.f32.mxu0 %v1227_v46  ;;  %39200 = vmatprep.subr.bf16.mxu0 %v41981_v28 }
  0x7b   :  { %35698 = vmatprep.mubr.f32.mxu1 %v1735_v47  ;;  %39224 = vmatprep.subr.bf16.mxu1 %v41981_v28 }
  0x80   :  { %35657 = vmatmul.mubr.f32.vlgmr.msra.gmra.mrb[2].mxu0 %v1237_v48  ;;  %35699 = vmatmul.mubr.f32.vlgmr.msra.gmra.mrb[2].mxu1 %v1745_v49 }
  0x81   :  { %39202 = vmatpush3.bf16.msra.mxu0 %v41981_v28  ;;  %39226 = vmatpush3.bf16.msra.mxu1 %v41981_v28 }
  0x82   :  { %35663 = vmatprep.mubr.f32.mxu0 %v41997_v33  ;;  %39204 = vmatprep.subr.bf16.mxu0 %v41857_v12 }
  0x83   :  { %35705 = vmatprep.mubr.f32.mxu1 %v41999_v35  ;;  %39228 = vmatprep.subr.bf16.mxu1 %v41857_v12 }
  0x88   :  { %35664 = vmatmul.mubr.f32.vlgmr.msra.gmra.mrb[2].mxu0 %v42001_v36  ;;  %35706 = vmatmul.mubr.f32.vlgmr.msra.gmra.mrb[2].mxu1 %v42003_v37 }
  0x89   :  { %39206 = vmatpush3.bf16.msra.mxu0 %v41857_v12  ;;  %39230 = vmatpush3.bf16.msra.mxu1 %v41857_v12 }
  0x8a   :  { %35670 = vmatprep.mubr.f32.mxu0 %v41997_v33  ;;  %35712 = vmatprep.mubr.f32.mxu1 %v41999_v35  ;;  %v3188_v33 = vsel %vm135_vm0, %v41867_v17, 0  ;;  %v3696_v35 = vsel %vm135_vm0, %v41949_v1, 0 }
  0x8b   :  { %39232 = vmatprep.subr.bf16.mxu0 %v41857_v12  ;;  %39256 = vmatprep.subr.bf16.mxu1 %v41857_v12  ;;  %v42113_v39 = vand.u32 4294901760, %v3188_v33  ;;  %v42115_v40 = vand.u32 4294901760, %v3696_v35 }
  0x8d   :  { %v3268_v61 = vsub.f32 %v3188_v33, %v42113_v39  ;;  %v3776_v1 = vsub.f32 %v3696_v35, %v42115_v40 }
  0x8f   :  { %v3269_v46 = vand.u32 4294901760, %v3268_v61  ;;  %v3777_v47 = vand.u32 4294901760, %v3776_v1 }
  0x90   :  { %35671 = vmatmul.mubr.f32.vlgmr.msra.gmra.mrb[2].mxu0 %v42001_v36  ;;  %35713 = vmatmul.mubr.f32.vlgmr.msra.gmra.mrb[2].mxu1 %v42003_v37  ;;  %v42109_v36 = vand.u32 4294901760, %v3185_v23  ;;  %v42111_v37 = vand.u32 4294901760, %v3693_v32 }
  0x91   :  { %39234 = vmatpush3.bf16.msra.mxu0 %v41857_v12  ;;  %39258 = vmatpush3.bf16.msra.mxu1 %v41857_v12  ;;  %v3270_v50 = vsub.f32 %v3268_v61, %v3269_v46  ;;  %v3778_v51 = vsub.f32 %v3776_v1, %v3777_v47 }
  0x92   :  { %35719 = vmatprep.mubr.f32.mxu0 %v2245_v31  ;;  %39236 = vmatprep.subr.bf16.mxu0 %v41906_v42  ;;  %v3258_v7 = vsub.f32 %v3185_v23, %v42109_v36  ;;  %v3766_v17 = vsub.f32 %v3693_v32, %v42111_v37  ;;  %v5220_v31 = vsel %vm135_vm0, %v41869_v18, 0 }
  0x93   :  { %35761 = vmatprep.mubr.f32.mxu1 %v2753_v13  ;;  %39260 = vmatprep.subr.bf16.mxu1 %v41906_v42  ;;  %v3271_v54 = vand.u32 4294901760, %v3270_v50  ;;  %v3779_v55 = vand.u32 4294901760, %v3778_v51  ;;  %v5728_v13 = vsel %vm135_vm0, %v41951_v3, 0  ;;  %v42225_v23 = vand.u32 4294901760, %v5220_v31  ;;  %v42289_v51 = vld [vmem:[%s45124_s0 + $0x10] sm:$0xff] }
  0x94   :  { %35720 = vmatmul.mubr.f32.vlgmr.msra.gmra.mrb[4].mxu0 %v2255_v14  ;;  %35762 = vmatmul.mubr.f32.vlgmr.msra.gmra.mrb[4].mxu1 %v2763_v22  ;;  %v3259_v41 = vand.u32 4294901760, %v3258_v7  ;;  %v3767_v45 = vand.u32 4294901760, %v3766_v17  ;;  %v42221_v14 = vand.u32 4294901760, %v5217_v29  ;;  %v42223_v22 = vand.u32 4294901760, %v5725_v30 }
  0x95   :  { %39238 = vmatpush3.bf16.msra.mxu0 %v41906_v42  ;;  %39262 = vmatpush3.bf16.msra.mxu1 %v41906_v42  ;;  %v42227_v32 = vand.u32 4294901760, %v5728_v13  ;;  %v42242_v62 = vsub.f32 %v5220_v31, %v42225_v23 }
  0x96   :  { %35726 = vmatprep.mubr.f32.mxu0 %v42053_v58  ;;  %39240 = vmatprep.subr.bf16.mxu0 %v41933_v60  ;;  %v3260_v48 = vsub.f32 %v3258_v7, %v3259_v41  ;;  %v3768_v49 = vsub.f32 %v3766_v17, %v3767_v45  ;;  %v42234_v9 = vsub.f32 %v5217_v29, %v42221_v14 }
  0x97   :  { %35768 = vmatprep.mubr.f32.mxu1 %v42055_v59  ;;  %39264 = vmatprep.subr.bf16.mxu1 %v41933_v60  ;;  %v42239_v18 = vsub.f32 %v5725_v30, %v42223_v22  ;;  %v42245_v3 = vsub.f32 %v5728_v13, %v42227_v32 }
  0x98   :  { %v3261_v52 = vand.u32 4294901760, %v3260_v48  ;;  %v3769_v53 = vand.u32 4294901760, %v3768_v49  ;;  %v5291_v33 = vand.u32 4294901760, %v42234_v9  ;;  %v42281_v48 = vld [vmem:[#allocation2 + $0x48] sm:$0xff] }
  0x99   :  { %v5799_v35 = vand.u32 4294901760, %v42239_v18  ;;  %v78_v49 = vld [vmem:[#allocation5 + $0x48] sm:$0xff] }
  0x9c   :  { %35727 = vmatmul.mubr.f32.vlgmr.msra.gmra.mrb[4].mxu0 %v42057_v15  ;;  %35769 = vmatmul.mubr.f32.vlgmr.msra.gmra.mrb[4].mxu1 %v42059_v19 }
  0x9d   :  { %39242 = vmatpush3.bf16.msra.mxu0 %v41933_v60  ;;  %39266 = vmatpush3.bf16.msra.mxu1 %v41933_v60 }
  0x9e   :  { %35733 = vmatprep.mubr.f32.mxu0 %v2242_v2  ;;  %39244 = vmatprep.subr.bf16.mxu0 %v41857_v12 }
  0x9f   :  { %35775 = vmatprep.mubr.f32.mxu1 %v2750_v5  ;;  %39268 = vmatprep.subr.bf16.mxu1 %v41857_v12 }
  0xa4   :  { %35734 = vmatmul.mubr.f32.vlgmr.msra.gmra.mrb[4].mxu0 %v2252_v10  ;;  %35776 = vmatmul.mubr.f32.vlgmr.msra.gmra.mrb[4].mxu1 %v2760_v11 }
  0xa5   :  { %39246 = vmatpush3.bf16.msra.mxu0 %v41857_v12  ;;  %39270 = vmatpush3.bf16.msra.mxu1 %v41857_v12 }
  0xa6   :  { %35740 = vmatprep.mubr.f32.mxu0 %v2243_v20  ;;  %39248 = vmatprep.subr.bf16.mxu0 %v41981_v28 }
  0xa7   :  { %35782 = vmatprep.mubr.f32.mxu1 %v2751_v21  ;;  %39272 = vmatprep.subr.bf16.mxu1 %v41981_v28 }
  0xac   :  { %35741 = vmatmul.mubr.f32.vlgmr.msra.gmra.mrb[4].mxu0 %v2253_v24  ;;  %35783 = vmatmul.mubr.f32.vlgmr.msra.gmra.mrb[4].mxu1 %v2761_v25 }
  0xad   :  { %39250 = vmatpush3.bf16.msra.mxu0 %v41981_v28  ;;  %39274 = vmatpush3.bf16.msra.mxu1 %v41981_v28 }
  0xae   :  { %35747 = vmatprep.mubr.f32.mxu0 %v42053_v58  ;;  %39252 = vmatprep.subr.bf16.mxu0 %v41857_v12 }
  0xaf   :  { %35789 = vmatprep.mubr.f32.mxu1 %v42055_v59  ;;  %39276 = vmatprep.subr.bf16.mxu1 %v41857_v12 }
  0xb4   :  { %35748 = vmatmul.mubr.f32.vlgmr.msra.gmra.mrb[4].mxu0 %v42057_v15  ;;  %35790 = vmatmul.mubr.f32.vlgmr.msra.gmra.mrb[4].mxu1 %v42059_v19 }
  0xb5   :  { %39254 = vmatpush3.bf16.msra.mxu0 %v41857_v12  ;;  %39278 = vmatpush3.bf16.msra.mxu1 %v41857_v12 }
  0xb6   :  { %35754 = vmatprep.mubr.f32.mxu0 %v42053_v58  ;;  %35796 = vmatprep.mubr.f32.mxu1 %v42055_v59  ;;  %v42169_v58 = vand.u32 4294901760, %v4204_v34  ;;  %v42171_v59 = vand.u32 4294901760, %v4712_v38 }
  0xb7   :  { %39280 = vmatprep.subr.bf16.mxu0 %v41857_v12  ;;  %39304 = vmatprep.subr.bf16.mxu1 %v41857_v12 }
  0xb8   :  { %v4284_v63 = vsub.f32 %v4204_v34, %v42169_v58  ;;  %v4792_v4 = vsub.f32 %v4712_v38, %v42171_v59  ;;  %v6233_v34 = vsel %vm135_vm0, %v41947_v0, 0 }
  0xba   :  { %v4285_v2 = vand.u32 4294901760, %v4284_v63  ;;  %v4793_v5 = vand.u32 4294901760, %v4792_v4 }
  0xbc   :  { %35755 = vmatmul.mubr.f32.vlgmr.msra.gmra.mrb[4].mxu0 %v42057_v15  ;;  %35797 = vmatmul.mubr.f32.vlgmr.msra.gmra.mrb[4].mxu1 %v42059_v19  ;;  %v4275_v15 = vand.u32 4294901760, %v4274_v6  ;;  %v4783_v19 = vand.u32 4294901760, %v4782_v16  ;;  %v4286_v20 = vsub.f32 %v4284_v63, %v4285_v2  ;;  %v4794_v21 = vsub.f32 %v4792_v4, %v4793_v5 }
  0xbd   :  { %39282 = vmatpush3.bf16.msra.mxu0 %v41857_v12  ;;  %39306 = vmatpush3.bf16.msra.mxu1 %v41857_v12 }
  0xbe   :  { %35803 = vmatprep.mubr.f32.mxu0 %v3261_v52  ;;  %39284 = vmatprep.subr.bf16.mxu0 %v41906_v42  ;;  %v4276_v10 = vsub.f32 %v4274_v6, %v4275_v15  ;;  %v4784_v11 = vsub.f32 %v4782_v16, %v4783_v19  ;;  %v4287_v26 = vand.u32 4294901760, %v4286_v20  ;;  %v4795_v27 = vand.u32 4294901760, %v4794_v21 }
  0xbf   :  { %35845 = vmatprep.mubr.f32.mxu1 %v3769_v53  ;;  %39308 = vmatprep.subr.bf16.mxu1 %v41906_v42  ;;  %v94_v52 = vsub.f32 %v78_v49, %v42281_v48  ;;  %v42299_v53 = vld [vmem:[%s45124_s0 + $0x18] sm:$0xff] }
  0xc0   :  { %35804 = vmatmul.mubr.f32.vlgmr.msra.gmra.mrb[6].mxu0 %v3271_v54  ;;  %35846 = vmatmul.mubr.f32.vlgmr.msra.gmra.mrb[6].mxu1 %v3779_v55  ;;  %v4277_v24 = vand.u32 4294901760, %v4276_v10  ;;  %v4785_v25 = vand.u32 4294901760, %v4784_v11 }
  0xc1   :  { %39286 = vmatpush3.bf16.msra.mxu0 %v41906_v42  ;;  %39310 = vmatpush3.bf16.msra.mxu1 %v41906_v42  ;;  %v110_v55 = vmul.f32 %v94_v52, %v42299_v53 }
  0xc2   :  { %35810 = vmatprep.mubr.f32.mxu0 %v42109_v36  ;;  %39288 = vmatprep.subr.bf16.mxu0 %v41933_v60 }
  0xc3   :  { %35852 = vmatprep.mubr.f32.mxu1 %v42111_v37  ;;  %39312 = vmatprep.subr.bf16.mxu1 %v41933_v60  ;;  %v126_v57 = vadd.f32 %v110_v55, %v42281_v48 }
  0xc8   :  { %35811 = vmatmul.mubr.f32.vlgmr.msra.gmra.mrb[6].mxu0 %v42113_v39  ;;  %35853 = vmatmul.mubr.f32.vlgmr.msra.gmra.mrb[6].mxu1 %v42115_v40 }
  0xc9   :  { %39290 = vmatpush3.bf16.msra.mxu0 %v41933_v60  ;;  %39314 = vmatpush3.bf16.msra.mxu1 %v41933_v60 }
  0xca   :  { %35817 = vmatprep.mubr.f32.mxu0 %v3258_v7  ;;  %39292 = vmatprep.subr.bf16.mxu0 %v41857_v12 }
  0xcb   :  { %35859 = vmatprep.mubr.f32.mxu1 %v3766_v17  ;;  %39316 = vmatprep.subr.bf16.mxu1 %v41857_v12 }
  0xd0   :  { %35818 = vmatmul.mubr.f32.vlgmr.msra.gmra.mrb[6].mxu0 %v3268_v61  ;;  %35860 = vmatmul.mubr.f32.vlgmr.msra.gmra.mrb[6].mxu1 %v3776_v1 }
  0xd1   :  { %39294 = vmatpush3.bf16.msra.mxu0 %v41857_v12  ;;  %39318 = vmatpush3.bf16.msra.mxu1 %v41857_v12 }
  0xd2   :  { %35824 = vmatprep.mubr.f32.mxu0 %v3259_v41  ;;  %39296 = vmatprep.subr.bf16.mxu0 %v41981_v28 }
  0xd3   :  { %35866 = vmatprep.mubr.f32.mxu1 %v3767_v45  ;;  %39320 = vmatprep.subr.bf16.mxu1 %v41981_v28 }
  0xd8   :  { %35825 = vmatmul.mubr.f32.vlgmr.msra.gmra.mrb[6].mxu0 %v3269_v46  ;;  %35867 = vmatmul.mubr.f32.vlgmr.msra.gmra.mrb[6].mxu1 %v3777_v47  ;;  %v42279_v46 = vld [vmem:[#allocation2 + $0x40] sm:$0xff] }
  0xd9   :  { %39298 = vmatpush3.bf16.msra.mxu0 %v41981_v28  ;;  %39322 = vmatpush3.bf16.msra.mxu1 %v41981_v28  ;;  %v77_v47 = vld [vmem:[#allocation5 + $0x40] sm:$0xff] }
  0xda   :  { %35831 = vmatprep.mubr.f32.mxu0 %v42109_v36  ;;  %39300 = vmatprep.subr.bf16.mxu0 %v41857_v12  ;;  %v93_v50 = vsub.f32 %v77_v47, %v42279_v46 }
  0xdb   :  { %35873 = vmatprep.mubr.f32.mxu1 %v42111_v37  ;;  %39324 = vmatprep.subr.bf16.mxu1 %v41857_v12 }
  0xdc   :  { %v109_v54 = vmul.f32 %v93_v50, %v42289_v51 }
  0xde   :  { %v125_v56 = vadd.f32 %v109_v54, %v42279_v46 }
  0xe0   :  { %35832 = vmatmul.mubr.f32.vlgmr.msra.gmra.mrb[6].mxu0 %v42113_v39  ;;  %35874 = vmatmul.mubr.f32.vlgmr.msra.gmra.mrb[6].mxu1 %v42115_v40  ;;  %v6741_v38 = vsel %vm135_vm0, %v125_v56, 0 }
  0xe1   :  { %39302 = vmatpush3.bf16.msra.mxu0 %v41857_v12  ;;  %39326 = vmatpush3.bf16.msra.mxu1 %v41857_v12 }
  0xe2   :  { %35838 = vmatprep.mubr.f32.mxu0 %v42109_v36  ;;  %35880 = vmatprep.mubr.f32.mxu1 %v42111_v37  ;;  %v5301_v36 = vand.u32 4294901760, %v42242_v62  ;;  %v5809_v37 = vand.u32 4294901760, %v42245_v3 }
  0xe3   :  { %39328 = vmatprep.subr.bf16.mxu0 %v41857_v12  ;;  %39352 = vmatprep.subr.bf16.mxu1 %v41857_v12 }
  0xe4   :  { %v5302_v7 = vsub.f32 %v42242_v62, %v5301_v36  ;;  %v5810_v17 = vsub.f32 %v42245_v3, %v5809_v37 }
  0xe6   :  { %v5303_v41 = vand.u32 4294901760, %v5302_v7  ;;  %v5811_v45 = vand.u32 4294901760, %v5810_v17 }
  0xe8   :  { %35839 = vmatmul.mubr.f32.vlgmr.msra.gmra.mrb[6].mxu0 %v42113_v39  ;;  %35881 = vmatmul.mubr.f32.vlgmr.msra.gmra.mrb[6].mxu1 %v42115_v40  ;;  %v5292_v39 = vsub.f32 %v42234_v9, %v5291_v33  ;;  %v5800_v40 = vsub.f32 %v42239_v18, %v5799_v35 }
  0xe9   :  { %39330 = vmatpush3.bf16.msra.mxu0 %v41857_v12  ;;  %39354 = vmatpush3.bf16.msra.mxu1 %v41857_v12 }
  0xea   :  { %35887 = vmatprep.mubr.f32.mxu0 %v4277_v24  ;;  %39332 = vmatprep.subr.bf16.mxu0 %v41906_v42  ;;  %v5293_v61 = vand.u32 4294901760, %v5292_v39  ;;  %v5801_v1 = vand.u32 4294901760, %v5800_v40 }
  0xeb   :  { %35929 = vmatprep.mubr.f32.mxu1 %v4785_v25  ;;  %39356 = vmatprep.subr.bf16.mxu1 %v41906_v42 }
  0xec   :  { %35888 = vmatmul.mubr.f32.vlgmr.msra.gmra.mrb[8].mxu0 %v4287_v26  ;;  %35930 = vmatmul.mubr.f32.vlgmr.msra.gmra.mrb[8].mxu1 %v4795_v27 }
  0xed   :  { %39334 = vmatpush3.bf16.msra.mxu0 %v41906_v42  ;;  %39358 = vmatpush3.bf16.msra.mxu1 %v41906_v42 }
  0xee   :  { %35894 = vmatprep.mubr.f32.mxu0 %v42165_v43  ;;  %39336 = vmatprep.subr.bf16.mxu0 %v41933_v60 }
  0xef   :  { %35936 = vmatprep.mubr.f32.mxu1 %v42167_v44  ;;  %39360 = vmatprep.subr.bf16.mxu1 %v41933_v60 }
  0xf4   :  { %35895 = vmatmul.mubr.f32.vlgmr.msra.gmra.mrb[8].mxu0 %v42169_v58  ;;  %35937 = vmatmul.mubr.f32.vlgmr.msra.gmra.mrb[8].mxu1 %v42171_v59 }
  0xf5   :  { %39338 = vmatpush3.bf16.msra.mxu0 %v41933_v60  ;;  %39362 = vmatpush3.bf16.msra.mxu1 %v41933_v60 }
  0xf6   :  { %35901 = vmatprep.mubr.f32.mxu0 %v4274_v6  ;;  %39340 = vmatprep.subr.bf16.mxu0 %v41857_v12 }
  0xf7   :  { %35943 = vmatprep.mubr.f32.mxu1 %v4782_v16  ;;  %39364 = vmatprep.subr.bf16.mxu1 %v41857_v12 }
  0xfc   :  { %35902 = vmatmul.mubr.f32.vlgmr.msra.gmra.mrb[8].mxu0 %v4284_v63  ;;  %35944 = vmatmul.mubr.f32.vlgmr.msra.gmra.mrb[8].mxu1 %v4792_v4 }
  0xfd   :  { %39342 = vmatpush3.bf16.msra.mxu0 %v41857_v12  ;;  %39366 = vmatpush3.bf16.msra.mxu1 %v41857_v12 }
  0xfe   :  { %35908 = vmatprep.mubr.f32.mxu0 %v4275_v15  ;;  %39344 = vmatprep.subr.bf16.mxu0 %v41981_v28 }
  0xff   :  { %35950 = vmatprep.mubr.f32.mxu1 %v4783_v19  ;;  %39368 = vmatprep.subr.bf16.mxu1 %v41981_v28 }
 0x104   :  { %35909 = vmatmul.mubr.f32.vlgmr.msra.gmra.mrb[8].mxu0 %v4285_v2  ;;  %35951 = vmatmul.mubr.f32.vlgmr.msra.gmra.mrb[8].mxu1 %v4793_v5 }
 0x105   :  { %39346 = vmatpush3.bf16.msra.mxu0 %v41981_v28  ;;  %39370 = vmatpush3.bf16.msra.mxu1 %v41981_v28 }
 0x106   :  { %35915 = vmatprep.mubr.f32.mxu0 %v42165_v43  ;;  %39348 = vmatprep.subr.bf16.mxu0 %v41857_v12 }
 0x107   :  { %35957 = vmatprep.mubr.f32.mxu1 %v42167_v44  ;;  %39372 = vmatprep.subr.bf16.mxu1 %v41857_v12 }
 0x10c   :  { %35916 = vmatmul.mubr.f32.vlgmr.msra.gmra.mrb[8].mxu0 %v42169_v58  ;;  %35958 = vmatmul.mubr.f32.vlgmr.msra.gmra.mrb[8].mxu1 %v42171_v59 }
 0x10d   :  { %39350 = vmatpush3.bf16.msra.mxu0 %v41857_v12  ;;  %39374 = vmatpush3.bf16.msra.mxu1 %v41857_v12 }
 0x10e   :  { %35922 = vmatprep.mubr.f32.mxu0 %v42165_v43  ;;  %35964 = vmatprep.mubr.f32.mxu1 %v42167_v44  ;;  %v42316_v43 = vand.u32 4294901760, %v6233_v34  ;;  %v6236_v44 = vsel %vm135_vm0, %v41955_v8, 0 }
 0x10f   :  { %39376 = vmatprep.subr.bf16.mxu0 %v41857_v12  ;;  %39400 = vmatprep.subr.bf16.mxu1 %v41857_v12  ;;  %v42327_v0 = vand.u32 4294901760, %v6236_v44 }
 0x110   :  { %v42334_v8 = vsub.f32 %v6233_v34, %v42316_v43  ;;  %v42401_v34 = vld [vmem:[#allocation2 + $0x50] sm:$0xff] }
 0x111   :  { %v42344_v63 = vsub.f32 %v6236_v44, %v42327_v0  ;;  %v42405_v44 = vld [vmem:[#allocation2 + $0x60] sm:$0xff] }
 0x112   :  { %v6307_v15 = vand.u32 4294901760, %v42334_v8 }
 0x113   :  { %v6317_v24 = vand.u32 4294901760, %v42344_v63 }
 0x114   :  { %35923 = vmatmul.mubr.f32.vlgmr.msra.gmra.mrb[8].mxu0 %v42169_v58  ;;  %35965 = vmatmul.mubr.f32.vlgmr.msra.gmra.mrb[8].mxu1 %v42171_v59  ;;  %v6744_v58 = vsel %vm135_vm0, %v126_v57, 0  ;;  %v42321_v59 = vand.u32 4294901760, %v6741_v38  ;;  %v6308_v29 = vsub.f32 %v42334_v8, %v6307_v15 }
 0x115   :  { %39378 = vmatpush3.bf16.msra.mxu0 %v41857_v12  ;;  %39402 = vmatpush3.bf16.msra.mxu1 %v41857_v12  ;;  %v42329_v6 = vand.u32 4294901760, %v6744_v58 }
 0x116   :  { %35971 = vmatprep.mubr.f32.mxu0 %v5293_v61  ;;  %39380 = vmatprep.subr.bf16.mxu0 %v41906_v42  ;;  %v42339_v16 = vsub.f32 %v6741_v38, %v42321_v59  ;;  %v6309_v7 = vand.u32 4294901760, %v6308_v29  ;;  %v42403_v38 = vld [vmem:[#allocation5 + $0x50] sm:$0xff] }
 0x117   :  { %36013 = vmatprep.mubr.f32.mxu1 %v5801_v1  ;;  %39404 = vmatprep.subr.bf16.mxu1 %v41906_v42  ;;  %v42347_v4 = vsub.f32 %v6744_v58, %v42329_v6  ;;  %v81_v58 = vld [vmem:[#allocation5 + $0x60] sm:$0xff] }
 0x118   :  { %35972 = vmatmul.mubr.f32.vlgmr.msra.gmra.mrb[10].mxu0 %v5303_v41  ;;  %36014 = vmatmul.mubr.f32.vlgmr.msra.gmra.mrb[10].mxu1 %v5811_v45  ;;  %v6815_v19 = vand.u32 4294901760, %v42339_v16 }
 0x119   :  { %39382 = vmatpush3.bf16.msra.mxu0 %v41906_v42  ;;  %39406 = vmatpush3.bf16.msra.mxu1 %v41906_v42  ;;  %v6825_v25 = vand.u32 4294901760, %v42347_v4 }
 0x11a   :  { %35978 = vmatprep.mubr.f32.mxu0 %v42221_v14  ;;  %39384 = vmatprep.subr.bf16.mxu0 %v41933_v60  ;;  %v6816_v13 = vsub.f32 %v42339_v16, %v6815_v19 }
 0x11b   :  { %36020 = vmatprep.mubr.f32.mxu1 %v42223_v22  ;;  %39408 = vmatprep.subr.bf16.mxu1 %v41933_v60 }
 0x11c   :  { %v6817_v1 = vand.u32 4294901760, %v6816_v13 }
 0x120   :  { %35979 = vmatmul.mubr.f32.vlgmr.msra.gmra.mrb[10].mxu0 %v42225_v23  ;;  %36021 = vmatmul.mubr.f32.vlgmr.msra.gmra.mrb[10].mxu1 %v42227_v32 }
 0x121   :  { %39386 = vmatpush3.bf16.msra.mxu0 %v41933_v60  ;;  %39410 = vmatpush3.bf16.msra.mxu1 %v41933_v60 }
 0x122   :  { %35985 = vmatprep.mubr.f32.mxu0 %v42234_v9  ;;  %39388 = vmatprep.subr.bf16.mxu0 %v41857_v12 }
 0x123   :  { %36027 = vmatprep.mubr.f32.mxu1 %v42239_v18  ;;  %39412 = vmatprep.subr.bf16.mxu1 %v41857_v12 }
 0x128   :  { %35986 = vmatmul.mubr.f32.vlgmr.msra.gmra.mrb[10].mxu0 %v42242_v62  ;;  %36028 = vmatmul.mubr.f32.vlgmr.msra.gmra.mrb[10].mxu1 %v42245_v3 }
 0x129   :  { %39390 = vmatpush3.bf16.msra.mxu0 %v41857_v12  ;;  %39414 = vmatpush3.bf16.msra.mxu1 %v41857_v12 }
 0x12a   :  { %35992 = vmatprep.mubr.f32.mxu0 %v5291_v33  ;;  %39392 = vmatprep.subr.bf16.mxu0 %v41981_v28 }
 0x12b   :  { %36034 = vmatprep.mubr.f32.mxu1 %v5799_v35  ;;  %39416 = vmatprep.subr.bf16.mxu1 %v41981_v28 }
 0x130   :  { %35993 = vmatmul.mubr.f32.vlgmr.msra.gmra.mrb[10].mxu0 %v5301_v36  ;;  %36035 = vmatmul.mubr.f32.vlgmr.msra.gmra.mrb[10].mxu1 %v5809_v37 }
 0x131   :  { %39394 = vmatpush3.bf16.msra.mxu0 %v41981_v28  ;;  %39418 = vmatpush3.bf16.msra.mxu1 %v41981_v28 }
 0x132   :  { %35999 = vmatprep.mubr.f32.mxu0 %v42221_v14  ;;  %39396 = vmatprep.subr.bf16.mxu0 %v41857_v12 }
 0x133   :  { %36041 = vmatprep.mubr.f32.mxu1 %v42223_v22  ;;  %39420 = vmatprep.subr.bf16.mxu1 %v41857_v12 }
 0x137   :  { %v35588_v2 = vpop.f32.mrb[0].mxu0  ;;  %v35630_v5 = vpop.f32.mrb[0].mxu1 }
 0x138   :  { %v13380_v10 = vand.u32 4294901760, %v35588_v2  ;;  %v14140_v11 = vand.u32 4294901760, %v35630_v5  ;;  %v634_v20 = vpop.f32.mrb[1].mxu0  ;;  %v1142_v21 = vpop.f32.mrb[1].mxu1  ;;  %36000 = vmatmul.mubr.f32.vlgmr.msra.gmra.mrb[10].mxu0 %v42225_v23  ;;  %36042 = vmatmul.mubr.f32.vlgmr.msra.gmra.mrb[10].mxu1 %v42227_v32 }
 0x139   :  { %v13377_v26 = vand.u32 4294901760, %v634_v20  ;;  %v14137_v27 = vand.u32 4294901760, %v1142_v21  ;;  %39398 = vmatpush3.bf16.msra.mxu0 %v41857_v12  ;;  %39422 = vmatpush3.bf16.msra.mxu1 %v41857_v12 }
 0x13a   :  { %v13532_v30 = vsub.f32 %v35588_v2, %v13380_v10  ;;  %v14292_v31 = vsub.f32 %v35630_v5, %v14140_v11  ;;  %36006 = vmatprep.mubr.f32.mxu0 %v42221_v14  ;;  %36048 = vmatprep.mubr.f32.mxu1 %v42223_v22  ;;  %v6318_v14 = vsub.f32 %v42344_v63, %v6317_v24  ;;  %v42407_v2 = vld [vmem:[#allocation2 + $0x58] sm:$0xff] }
 0x13b   :  { %v42365_v9 = vpack.c.bf16 %v13380_v10, %v13377_v26  ;;  %v13525_v18 = vsub.f32 %v634_v20, %v13377_v26  ;;  %v42367_v62 = vpack.c.bf16 %v14140_v11, %v14137_v27  ;;  %v14285_v3 = vsub.f32 %v1142_v21, %v14137_v27  ;;  %39424 = vmatprep.subr.bf16.mxu0 %v41857_v12  ;;  %v42411_v10 = vld [vmem:[#allocation5 + $0x58] sm:$0xff]  ;;  %v42413_v11 = vld [vmem:[#allocation2 + $0x68] sm:$0xff] }
 0x13c   :  { %v13533_v33 = vand.u32 4294901760, %v13532_v30  ;;  %v14293_v35 = vand.u32 4294901760, %v14292_v31  ;;  %39448 = vmatprep.subr.bf16.mxu1 %v41857_v12  ;;  %v6826_v22 = vsub.f32 %v42347_v4, %v6825_v25  ;;  %v6319_v41 = vand.u32 4294901760, %v6318_v14  ;;  %v82_v20 = vld [vmem:[#allocation5 + $0x68] sm:$0xff] }
 0x13d   :  { %v13526_v36 = vand.u32 4294901760, %v13525_v18  ;;  %v14286_v37 = vand.u32 4294901760, %v14285_v3  ;;  %v42382_v54 = vpack.c.bf16 %v13532_v30, %v13525_v18  ;;  %v42389_v55 = vpack.c.bf16 %v14292_v31, %v14285_v3 }
 0x13e   :  { %v13534_v39 = vsub.f32 %v13532_v30, %v13533_v33  ;;  %v14294_v40 = vsub.f32 %v14292_v31, %v14293_v35  ;;  %v6827_v45 = vand.u32 4294901760, %v6826_v22  ;;  %v95_v5 = vsub.f32 %v42403_v38, %v42401_v34 }
 0x13f   :  { %v13527_v17 = vsub.f32 %v13525_v18, %v13526_v36  ;;  %v14287_v61 = vsub.f32 %v14285_v3, %v14286_v37  ;;  %v42393_v56 = vpack.c.bf16 %v13533_v33, %v13526_v36  ;;  %v42395_v57 = vpack.c.bf16 %v14293_v35, %v14286_v37 }
 0x140   :  { %36007 = vmatmul.mubr.f32.vlgmr.msra.gmra.mrb[10].mxu0 %v42225_v23  ;;  %36049 = vmatmul.mubr.f32.vlgmr.msra.gmra.mrb[10].mxu1 %v42227_v32  ;;  %v13535_v47 = vand.u32 4294901760, %v13534_v39  ;;  %v14295_v49 = vand.u32 4294901760, %v14294_v40  ;;  %v97_v21 = vsub.f32 %v81_v58, %v42405_v44  ;;  %v96_v26 = vsub.f32 %v42411_v10, %v42407_v2 }
 0x141   :  { %39426 = vmatpush3.bf16.msra.mxu0 %v41857_v12  ;;  %39450 = vmatpush3.bf16.msra.mxu1 %v41857_v12  ;;  %v13528_v50 = vand.u32 4294901760, %v13527_v17  ;;  %v14288_v52 = vand.u32 4294901760, %v14287_v61  ;;  %v98_v27 = vsub.f32 %v82_v20, %v42413_v11  ;;  %v111_v29 = vmul.f32 %v95_v5, %v42289_v51 }
 0x142   :  { %36055 = vmatprep.mubr.f32.mxu0 %v6309_v7  ;;  %39428 = vmatprep.subr.bf16.mxu0 %v41906_v42  ;;  %v113_v30 = vmul.f32 %v97_v21, %v42289_v51  ;;  %v112_v31 = vmul.f32 %v96_v26, %v42299_v53 }
 0x143   :  { %36097 = vmatprep.mubr.f32.mxu1 %v6817_v1  ;;  %39452 = vmatprep.subr.bf16.mxu1 %v41906_v42  ;;  %v42385_v23 = vpack.c.bf16 %v13535_v47, %v13528_v50  ;;  %v42387_v32 = vpack.c.bf16 %v14295_v49, %v14288_v52  ;;  %v114_v13 = vmul.f32 %v98_v27, %v42299_v53 }
 0x144   :  { %36056 = vmatmul.mubr.f32.vlgmr.msra.gmra.mrb[12].mxu0 %v6319_v41  ;;  %36098 = vmatmul.mubr.f32.vlgmr.msra.gmra.mrb[12].mxu1 %v6827_v45  ;;  %v127_v18 = vadd.f32 %v111_v29, %v42401_v34  ;;  %v129_v3 = vadd.f32 %v113_v30, %v42405_v44  ;;  %v128_v33 = vadd.f32 %v112_v31, %v42407_v2 }
 0x145   :  { %39430 = vmatpush3.bf16.msra.mxu0 %v41906_v42  ;;  %39454 = vmatpush3.bf16.msra.mxu1 %v41906_v42  ;;  %v130_v35 = vadd.f32 %v114_v13, %v42413_v11 }
 0x146   :  { %36062 = vmatprep.mubr.f32.mxu0 %v42316_v43  ;;  %39432 = vmatprep.subr.bf16.mxu0 %v41933_v60  ;;  %v7249_v14 = vsel %vm135_vm0, %v127_v18, 0  ;;  %v7757_v22 = vsel %vm135_vm0, %v129_v3, 0  ;;  %v7252_v37 = vsel %vm135_vm0, %v128_v33, 0 }
 0x147   :  { %36104 = vmatprep.mubr.f32.mxu1 %v42321_v59  ;;  %39456 = vmatprep.subr.bf16.mxu1 %v41933_v60  ;;  %v42447_v36 = vand.u32 4294901760, %v7249_v14  ;;  %v7760_v39 = vsel %vm135_vm0, %v130_v35, 0  ;;  %v42451_v40 = vand.u32 4294901760, %v7757_v22 }
 0x14c   :  { %36063 = vmatmul.mubr.f32.vlgmr.msra.gmra.mrb[12].mxu0 %v42327_v0  ;;  %36105 = vmatmul.mubr.f32.vlgmr.msra.gmra.mrb[12].mxu1 %v42329_v6 }
 0x14d   :  { %39434 = vmatpush3.bf16.msra.mxu0 %v41933_v60  ;;  %39458 = vmatpush3.bf16.msra.mxu1 %v41933_v60 }
 0x14e   :  { %36069 = vmatprep.mubr.f32.mxu0 %v42334_v8  ;;  %39436 = vmatprep.subr.bf16.mxu0 %v41857_v12  ;;  %v42457_v8 = vand.u32 4294901760, %v7252_v37 }
 0x14f   :  { %36111 = vmatprep.mubr.f32.mxu1 %v42339_v16  ;;  %39460 = vmatprep.subr.bf16.mxu1 %v41857_v12  ;;  %v42459_v16 = vand.u32 4294901760, %v7760_v39 }
 0x154   :  { %36070 = vmatmul.mubr.f32.vlgmr.msra.gmra.mrb[12].mxu0 %v42344_v63  ;;  %36112 = vmatmul.mubr.f32.vlgmr.msra.gmra.mrb[12].mxu1 %v42347_v4  ;;  %v42469_v63 = vsub.f32 %v7757_v22, %v42451_v40  ;;  %v42474_v4 = vsub.f32 %v7252_v37, %v42457_v8 }
 0x155   :  { %39438 = vmatpush3.bf16.msra.mxu0 %v41857_v12  ;;  %39462 = vmatpush3.bf16.msra.mxu1 %v41857_v12 }
 0x156   :  { %36076 = vmatprep.mubr.f32.mxu0 %v6307_v15  ;;  %39440 = vmatprep.subr.bf16.mxu0 %v41981_v28  ;;  %v42464_v15 = vsub.f32 %v7249_v14, %v42447_v36  ;;  %v7333_v47 = vand.u32 4294901760, %v42474_v4 }
 0x157   :  { %36118 = vmatprep.mubr.f32.mxu1 %v6815_v19  ;;  %39464 = vmatprep.subr.bf16.mxu1 %v41981_v28  ;;  %v42477_v19 = vsub.f32 %v7760_v39, %v42459_v16 }
 0x159   :  { %v7841_v49 = vand.u32 4294901760, %v42477_v19 }
 0x15c   :  { %36077 = vmatmul.mubr.f32.vlgmr.msra.gmra.mrb[12].mxu0 %v6317_v24  ;;  %36119 = vmatmul.mubr.f32.vlgmr.msra.gmra.mrb[12].mxu1 %v6825_v25  ;;  %v7323_v24 = vand.u32 4294901760, %v42464_v15  ;;  %v7831_v25 = vand.u32 4294901760, %v42469_v63 }
 0x15d   :  { %39442 = vmatpush3.bf16.msra.mxu0 %v41981_v28  ;;  %39466 = vmatpush3.bf16.msra.mxu1 %v41981_v28 }
 0x15e   :  { %36083 = vmatprep.mubr.f32.mxu0 %v42316_v43  ;;  %39444 = vmatprep.subr.bf16.mxu0 %v41857_v12  ;;  %v7324_v58 = vsub.f32 %v42464_v15, %v7323_v24  ;;  %v7832_v21 = vsub.f32 %v42469_v63, %v7831_v25 }
 0x15f   :  { %36125 = vmatprep.mubr.f32.mxu1 %v42321_v59  ;;  %39468 = vmatprep.subr.bf16.mxu1 %v41857_v12 }
 0x160   :  { %v7325_v14 = vand.u32 4294901760, %v7324_v58  ;;  %v7833_v39 = vand.u32 4294901760, %v7832_v21 }
 0x163   :  { %v35672_v7 = vpop.f32.mrb[2].mxu0  ;;  %v35714_v17 = vpop.f32.mrb[2].mxu1 }
 0x164   :  { %v14900_v61 = vand.u32 4294901760, %v35672_v7  ;;  %v15660_v1 = vand.u32 4294901760, %v35714_v17  ;;  %v1650_v41 = vpop.f32.mrb[3].mxu0  ;;  %v2158_v45 = vpop.f32.mrb[3].mxu1  ;;  %36084 = vmatmul.mubr.f32.vlgmr.msra.gmra.mrb[12].mxu0 %v42327_v0  ;;  %36126 = vmatmul.mubr.f32.vlgmr.msra.gmra.mrb[12].mxu1 %v42329_v6 }
 0x165   :  { %v14897_v50 = vand.u32 4294901760, %v1650_v41  ;;  %v15657_v52 = vand.u32 4294901760, %v2158_v45  ;;  %39446 = vmatpush3.bf16.msra.mxu0 %v41857_v12  ;;  %39470 = vmatpush3.bf16.msra.mxu1 %v41857_v12 }
 0x166   :  { %v15052_v5 = vsub.f32 %v35672_v7, %v14900_v61  ;;  %v15812_v20 = vsub.f32 %v35714_v17, %v15660_v1  ;;  %36090 = vmatprep.mubr.f32.mxu0 %v42316_v43  ;;  %36132 = vmatprep.mubr.f32.mxu1 %v42321_v59  ;;  %v7334_v43 = vsub.f32 %v42474_v4, %v7333_v47 }
 0x167   :  { %v42495_v26 = vpack.c.bf16 %v14900_v61, %v14897_v50  ;;  %v15045_v27 = vsub.f32 %v1650_v41, %v14897_v50  ;;  %v42497_v29 = vpack.c.bf16 %v15660_v1, %v15657_v52  ;;  %v15805_v30 = vsub.f32 %v2158_v45, %v15657_v52  ;;  %39472 = vmatprep.subr.bf16.mxu0 %v41857_v12 }
 0x168   :  { %v15053_v31 = vand.u32 4294901760, %v15052_v5  ;;  %v15813_v13 = vand.u32 4294901760, %v15812_v20  ;;  %39496 = vmatprep.subr.bf16.mxu1 %v41857_v12  ;;  %v7842_v59 = vsub.f32 %v42477_v19, %v7841_v49  ;;  %v7335_v7 = vand.u32 4294901760, %v7334_v43 }
 0x169   :  { %v15046_v18 = vand.u32 4294901760, %v15045_v27  ;;  %v15806_v3 = vand.u32 4294901760, %v15805_v30  ;;  %v42512_v50 = vpack.c.bf16 %v15052_v5, %v15045_v27  ;;  %v42519_v52 = vpack.c.bf16 %v15812_v20, %v15805_v30 }
 0x16a   :  { %v15054_v33 = vsub.f32 %v15052_v5, %v15053_v31  ;;  %v15814_v35 = vsub.f32 %v15812_v20, %v15813_v13  ;;  %v7843_v17 = vand.u32 4294901760, %v7842_v59  ;;  %v42531_v5 = vld [vmem:[#allocation2 + $0x70] sm:$0xff] }
 0x16b   :  { %v15047_v22 = vsub.f32 %v15045_v27, %v15046_v18  ;;  %v15807_v37 = vsub.f32 %v15805_v30, %v15806_v3  ;;  %v42523_v58 = vpack.c.bf16 %v15053_v31, %v15046_v18  ;;  %v42525_v21 = vpack.c.bf16 %v15813_v13, %v15806_v3  ;;  %v42533_v20 = vld [vmem:[#allocation5 + $0x70] sm:$0xff]  ;;  %v42537_v30 = vld [vmem:[#allocation2 + $0x78] sm:$0xff] }
 0x16c   :  { %36091 = vmatmul.mubr.f32.vlgmr.msra.gmra.mrb[12].mxu0 %v42327_v0  ;;  %36133 = vmatmul.mubr.f32.vlgmr.msra.gmra.mrb[12].mxu1 %v42329_v6  ;;  %v15055_v61 = vand.u32 4294901760, %v15054_v33  ;;  %v15815_v1 = vand.u32 4294901760, %v15814_v35  ;;  %v99_v27 = vsub.f32 %v42533_v20, %v42531_v5  ;;  %v42539_v31 = vld [vmem:[#allocation5 + $0x78] sm:$0xff]  ;;  %v8773_v35 = vsel %vm135_vm0, %v42289_v51, 0 }
 0x16d   :  { %39474 = vmatpush3.bf16.msra.mxu0 %v41857_v12  ;;  %39498 = vmatpush3.bf16.msra.mxu1 %v41857_v12  ;;  %v15048_v41 = vand.u32 4294901760, %v15047_v22  ;;  %v15808_v45 = vand.u32 4294901760, %v15807_v37  ;;  %45214 = vst [vmem:[#allocation11_spill] sm:$0xff] %v42523_v58  ;;  %45215 = vst [vmem:[#allocation12_spill] sm:$0xff] %v42525_v21  ;;  %v100_v13 = vsub.f32 %v42539_v31, %v42537_v30 }
 0x16e   :  { %36139 = vmatprep.mubr.f32.mxu0 %v7325_v14  ;;  %39476 = vmatprep.subr.bf16.mxu0 %v41906_v42  ;;  %v115_v43 = vmul.f32 %v99_v27, %v42289_v51 }
 0x16f   :  { %36181 = vmatprep.mubr.f32.mxu1 %v7833_v39  ;;  %39500 = vmatprep.subr.bf16.mxu1 %v41906_v42  ;;  %v42515_v0 = vpack.c.bf16 %v15055_v61, %v15048_v41  ;;  %v42517_v6 = vpack.c.bf16 %v15815_v1, %v15808_v45  ;;  %v116_v59 = vmul.f32 %v100_v13, %v42299_v53 }
 0x170   :  { %36140 = vmatmul.mubr.f32.vlgmr.msra.gmra.mrb[14].mxu0 %v7335_v7  ;;  %36182 = vmatmul.mubr.f32.vlgmr.msra.gmra.mrb[14].mxu1 %v7843_v17  ;;  %v131_v18 = vadd.f32 %v115_v43, %v42531_v5 }
 0x171   :  { %39478 = vmatpush3.bf16.msra.mxu0 %v41906_v42  ;;  %39502 = vmatpush3.bf16.msra.mxu1 %v41906_v42  ;;  %v132_v3 = vadd.f32 %v116_v59, %v42537_v30 }
 0x172   :  { %36146 = vmatprep.mubr.f32.mxu0 %v42447_v36  ;;  %39480 = vmatprep.subr.bf16.mxu0 %v41933_v60  ;;  %v8265_v33 = vsel %vm135_vm0, %v131_v18, 0 }
 0x173   :  { %36188 = vmatprep.mubr.f32.mxu1 %v42451_v40  ;;  %39504 = vmatprep.subr.bf16.mxu1 %v41933_v60  ;;  %v42568_v14 = vand.u32 4294901760, %v8265_v33  ;;  %v8268_v22 = vsel %vm135_vm0, %v132_v3, 0 }
 0x175   :  { %v42586_v51 = vsub.f32 %v8265_v33, %v42568_v14 }
 0x178   :  { %36147 = vmatmul.mubr.f32.vlgmr.msra.gmra.mrb[14].mxu0 %v42457_v8  ;;  %36189 = vmatmul.mubr.f32.vlgmr.msra.gmra.mrb[14].mxu1 %v42459_v16 }
 0x179   :  { %39482 = vmatpush3.bf16.msra.mxu0 %v41933_v60  ;;  %39506 = vmatpush3.bf16.msra.mxu1 %v41933_v60 }
 0x17a   :  { %36153 = vmatprep.mubr.f32.mxu0 %v42464_v15  ;;  %39484 = vmatprep.subr.bf16.mxu0 %v41857_v12  ;;  %v8776_v15 = vsel %vm135_vm0, %v42299_v53, 0 }
 0x17b   :  { %36195 = vmatprep.mubr.f32.mxu1 %v42469_v63  ;;  %39508 = vmatprep.subr.bf16.mxu1 %v41857_v12  ;;  %v42579_v63 = vand.u32 4294901760, %v8268_v22 }
 0x180   :  { %36154 = vmatmul.mubr.f32.vlgmr.msra.gmra.mrb[14].mxu0 %v42474_v4  ;;  %36196 = vmatmul.mubr.f32.vlgmr.msra.gmra.mrb[14].mxu1 %v42477_v19  ;;  %v42596_v4 = vsub.f32 %v8268_v22, %v42579_v63 }
 0x181   :  { %39486 = vmatpush3.bf16.msra.mxu0 %v41857_v12  ;;  %39510 = vmatpush3.bf16.msra.mxu1 %v41857_v12 }
 0x182   :  { %36160 = vmatprep.mubr.f32.mxu0 %v7323_v24  ;;  %39488 = vmatprep.subr.bf16.mxu0 %v41981_v28  ;;  %v42573_v24 = vand.u32 4294901760, %v8773_v35  ;;  %v45135_v41 = vand.u32 4294901760, %v42596_v4 }
 0x183   :  { %36202 = vmatprep.mubr.f32.mxu1 %v7831_v25  ;;  %39512 = vmatprep.subr.bf16.mxu1 %v41981_v28  ;;  %v42581_v25 = vand.u32 4294901760, %v8776_v15 }
 0x184   :  { %v42591_v53 = vsub.f32 %v8773_v35, %v42573_v24 }
 0x185   :  { %v42599_v19 = vsub.f32 %v8776_v15, %v42581_v25 }
 0x188   :  { %36161 = vmatmul.mubr.f32.vlgmr.msra.gmra.mrb[14].mxu0 %v7333_v47  ;;  %36203 = vmatmul.mubr.f32.vlgmr.msra.gmra.mrb[14].mxu1 %v7841_v49  ;;  %v45130_v47 = vand.u32 4294901760, %v42586_v51  ;;  %v45131_v49 = vand.u32 4294901760, %v42591_v53 }
 0x189   :  { %39490 = vmatpush3.bf16.msra.mxu0 %v41981_v28  ;;  %39514 = vmatpush3.bf16.msra.mxu1 %v41981_v28 }
 0x18a   :  { %36167 = vmatprep.mubr.f32.mxu0 %v42447_v36  ;;  %39492 = vmatprep.subr.bf16.mxu0 %v41857_v12  ;;  %v8340_v43 = vsub.f32 %v42586_v51, %v45130_v47  ;;  %v8848_v3 = vsub.f32 %v42591_v53, %v45131_v49 }
 0x18b   :  { %36209 = vmatprep.mubr.f32.mxu1 %v42451_v40  ;;  %39516 = vmatprep.subr.bf16.mxu1 %v41857_v12 }
 0x18c   :  { %v8849_v49 = vand.u32 4294901760, %v8848_v3 }
 0x18f   :  { %v35756_v37 = vpop.f32.mrb[4].mxu0  ;;  %v35798_v39 = vpop.f32.mrb[4].mxu1 }
 0x190   :  { %v16420_v7 = vand.u32 4294901760, %v35756_v37  ;;  %v17180_v17 = vand.u32 4294901760, %v35798_v39  ;;  %v2666_v61 = vpop.f32.mrb[5].mxu0  ;;  %v3174_v1 = vpop.f32.mrb[5].mxu1  ;;  %36168 = vmatmul.mubr.f32.vlgmr.msra.gmra.mrb[14].mxu0 %v42457_v8  ;;  %36210 = vmatmul.mubr.f32.vlgmr.msra.gmra.mrb[14].mxu1 %v42459_v16 }
 0x191   :  { %v16417_v27 = vand.u32 4294901760, %v2666_v61  ;;  %v17177_v13 = vand.u32 4294901760, %v3174_v1  ;;  %39494 = vmatpush3.bf16.msra.mxu0 %v41857_v12  ;;  %39518 = vmatpush3.bf16.msra.mxu1 %v41857_v12 }
 0x192   :  { %v16572_v59 = vsub.f32 %v35756_v37, %v16420_v7  ;;  %v17332_v18 = vsub.f32 %v35798_v39, %v17180_v17  ;;  %36174 = vmatprep.mubr.f32.mxu0 %v42447_v36  ;;  %36216 = vmatprep.mubr.f32.mxu1 %v42451_v40  ;;  %v8350_v36 = vsub.f32 %v42596_v4, %v45135_v41  ;;  %v45218_v40 = vand.u32 4294901760, %v42599_v19 }
 0x193   :  { %v42617_v33 = vpack.c.bf16 %v16420_v7, %v16417_v27  ;;  %v16565_v35 = vsub.f32 %v2666_v61, %v16417_v27  ;;  %v42619_v22 = vpack.c.bf16 %v17180_v17, %v17177_v13  ;;  %v17325_v15 = vsub.f32 %v3174_v1, %v17177_v13  ;;  %39520 = vmatprep.subr.bf16.mxu0 %v41857_v12 }
 0x194   :  { %v16573_v45 = vand.u32 4294901760, %v16572_v59  ;;  %v17333_v47 = vand.u32 4294901760, %v17332_v18  ;;  %39544 = vmatprep.subr.bf16.mxu1 %v41857_v12  ;;  %v8858_v37 = vsub.f32 %v42599_v19, %v45218_v40  ;;  %v8341_v27 = vand.u32 4294901760, %v8340_v43 }
 0x195   :  { %45216 = vst [vmem:[#allocation13_spill] sm:$0xff] %v42617_v33  ;;  %45217 = vst [vmem:[#allocation14_spill] sm:$0xff] %v42619_v22  ;;  %v16566_v39 = vand.u32 4294901760, %v16565_v35  ;;  %v17326_v7 = vand.u32 4294901760, %v17325_v15  ;;  %v8351_v22 = vand.u32 4294901760, %v8350_v36  ;;  %v42634_v43 = vpack.c.bf16 %v16572_v59, %v16565_v35 }
 0x196   :  { %v16574_v61 = vsub.f32 %v16572_v59, %v16573_v45  ;;  %v17334_v17 = vsub.f32 %v17332_v18, %v17333_v47  ;;  %v8859_v33 = vand.u32 4294901760, %v8858_v37  ;;  %v42641_v3 = vpack.c.bf16 %v17332_v18, %v17325_v15 }
 0x197   :  { %v16567_v1 = vsub.f32 %v16565_v35, %v16566_v39  ;;  %v17327_v13 = vsub.f32 %v17325_v15, %v17326_v7  ;;  %v42645_v36 = vpack.c.bf16 %v16573_v45, %v16566_v39  ;;  %v42647_v37 = vpack.c.bf16 %v17333_v47, %v17326_v7 }
 0x198   :  { %36175 = vmatmul.mubr.f32.vlgmr.msra.gmra.mrb[14].mxu0 %v42457_v8  ;;  %36217 = vmatmul.mubr.f32.vlgmr.msra.gmra.mrb[14].mxu1 %v42459_v16  ;;  %v16575_v21 = vand.u32 4294901760, %v16574_v61  ;;  %v17335_v41 = vand.u32 4294901760, %v17334_v17  ;;  %v45222_v47 = vand.u32 4294901760, %v42591_v53  ;;  %v9284_v45 = vsel %vm135_vm0, %v42281_v48, 0 }
 0x199   :  { %39522 = vmatpush3.bf16.msra.mxu0 %v41857_v12  ;;  %39546 = vmatpush3.bf16.msra.mxu1 %v41857_v12  ;;  %v16568_v40 = vand.u32 4294901760, %v16567_v1  ;;  %v17328_v58 = vand.u32 4294901760, %v17327_v13  ;;  %45219 = vst [vmem:[#allocation15_spill] sm:$0xff] %v42645_v36  ;;  %45220 = vst [vmem:[#allocation16_spill] sm:$0xff] %v42647_v37  ;;  %v42687_v18 = vand.u32 4294901760, %v9284_v45 }
 0x19a   :  { %36223 = vmatprep.mubr.f32.mxu0 %v8341_v27  ;;  %39524 = vmatprep.subr.bf16.mxu0 %v41906_v42 }
 0x19b   :  { %36265 = vmatprep.mubr.f32.mxu1 %v8849_v49  ;;  %39548 = vmatprep.subr.bf16.mxu1 %v41906_v42  ;;  %v42637_v8 = vpack.c.bf16 %v16575_v21, %v16568_v40  ;;  %v42639_v16 = vpack.c.bf16 %v17335_v41, %v17328_v58  ;;  %v45221_v58 = vand.u32 4294901760, %v42586_v51  ;;  %v9281_v21 = vsel %vm135_vm0, %v42279_v46, 0 }
 0x19c   :  { %36224 = vmatmul.mubr.f32.vlgmr.msra.gmra.mrb[16].mxu0 %v8351_v22  ;;  %36266 = vmatmul.mubr.f32.vlgmr.msra.gmra.mrb[16].mxu1 %v8859_v33  ;;  %v9789_v49 = vsel %vm135_vm0, %v42401_v34, 0  ;;  %v42675_v41 = vand.u32 4294901760, %v9281_v21  ;;  %v45223_v46 = vand.u32 4294901760, %v42596_v4 }
 0x19d   :  { %39526 = vmatpush3.bf16.msra.mxu0 %v41906_v42  ;;  %39550 = vmatpush3.bf16.msra.mxu1 %v41906_v42  ;;  %v42681_v59 = vand.u32 4294901760, %v9789_v49 }
 0x19e   :  { %36230 = vmatprep.mubr.f32.mxu0 %v42568_v14  ;;  %39528 = vmatprep.subr.bf16.mxu0 %v41933_v60  ;;  %v42694_v48 = vsub.f32 %v9281_v21, %v42675_v41 }
 0x19f   :  { %36272 = vmatprep.mubr.f32.mxu1 %v42573_v24  ;;  %39552 = vmatprep.subr.bf16.mxu1 %v41933_v60  ;;  %v42699_v34 = vsub.f32 %v9789_v49, %v42681_v59 }
 0x1a1   :  { %v45138_v35 = vand.u32 4294901760, %v42699_v34 }
 0x1a3   :  { %v9864_v49 = vsub.f32 %v42699_v34, %v45138_v35 }
 0x1a4   :  { %36231 = vmatmul.mubr.f32.vlgmr.msra.gmra.mrb[16].mxu0 %v42579_v63  ;;  %36273 = vmatmul.mubr.f32.vlgmr.msra.gmra.mrb[16].mxu1 %v42581_v25 }
 0x1a5   :  { %39530 = vmatpush3.bf16.msra.mxu0 %v41933_v60  ;;  %39554 = vmatpush3.bf16.msra.mxu1 %v41933_v60  ;;  %v9865_v35 = vand.u32 4294901760, %v9864_v49 }
 0x1a6   :  { %36237 = vmatprep.mubr.f32.mxu0 %v42586_v51  ;;  %39532 = vmatprep.subr.bf16.mxu0 %v41857_v12  ;;  %v9792_v51 = vsel %vm135_vm0, %v42407_v2, 0  ;;  %v42704_v2 = vsub.f32 %v9284_v45, %v42687_v18 }
 0x1a7   :  { %36279 = vmatprep.mubr.f32.mxu1 %v42591_v53  ;;  %39556 = vmatprep.subr.bf16.mxu1 %v41857_v12  ;;  %v45224_v53 = vand.u32 4294901760, %v42599_v19  ;;  %v42689_v33 = vand.u32 4294901760, %v9792_v51 }
 0x1a8   :  { %v45142_v27 = vand.u32 4294901760, %v42704_v2 }
 0x1ac   :  { %36238 = vmatmul.mubr.f32.vlgmr.msra.gmra.mrb[16].mxu0 %v42596_v4  ;;  %36280 = vmatmul.mubr.f32.vlgmr.msra.gmra.mrb[16].mxu1 %v42599_v19  ;;  %v42707_v4 = vsub.f32 %v9792_v51, %v42689_v33  ;;  %v45137_v19 = vand.u32 4294901760, %v42694_v48 }
 0x1ad   :  { %39534 = vmatpush3.bf16.msra.mxu0 %v41857_v12  ;;  %39558 = vmatpush3.bf16.msra.mxu1 %v41857_v12 }
 0x1ae   :  { %36244 = vmatprep.mubr.f32.mxu0 %v45221_v58  ;;  %39536 = vmatprep.subr.bf16.mxu0 %v41981_v28  ;;  %v9356_v58 = vsub.f32 %v42694_v48, %v45137_v19 }
 0x1af   :  { %36286 = vmatprep.mubr.f32.mxu1 %v45222_v47  ;;  %39560 = vmatprep.subr.bf16.mxu1 %v41981_v28 }
 0x1b4   :  { %36245 = vmatmul.mubr.f32.vlgmr.msra.gmra.mrb[16].mxu0 %v45223_v46  ;;  %36287 = vmatmul.mubr.f32.vlgmr.msra.gmra.mrb[16].mxu1 %v45224_v53 }
 0x1b5   :  { %39538 = vmatpush3.bf16.msra.mxu0 %v41981_v28  ;;  %39562 = vmatpush3.bf16.msra.mxu1 %v41981_v28 }
 0x1b6   :  { %36251 = vmatprep.mubr.f32.mxu0 %v42568_v14  ;;  %39540 = vmatprep.subr.bf16.mxu0 %v41857_v12 }
 0x1b7   :  { %36293 = vmatprep.mubr.f32.mxu1 %v42573_v24  ;;  %39564 = vmatprep.subr.bf16.mxu1 %v41857_v12 }
 0x1bb   :  { %v35840_v22 = vpop.f32.mrb[6].mxu0  ;;  %v35882_v15 = vpop.f32.mrb[6].mxu1 }
 0x1bc   :  { %v17940_v39 = vand.u32 4294901760, %v35840_v22  ;;  %v18700_v7 = vand.u32 4294901760, %v35882_v15  ;;  %v3682_v61 = vpop.f32.mrb[7].mxu0  ;;  %v4190_v17 = vpop.f32.mrb[7].mxu1  ;;  %36252 = vmatmul.mubr.f32.vlgmr.msra.gmra.mrb[16].mxu0 %v42579_v63  ;;  %36294 = vmatmul.mubr.f32.vlgmr.msra.gmra.mrb[16].mxu1 %v42581_v25 }
 0x1bd   :  { %v17937_v13 = vand.u32 4294901760, %v3682_v61  ;;  %v18697_v40 = vand.u32 4294901760, %v4190_v17  ;;  %39542 = vmatpush3.bf16.msra.mxu0 %v41857_v12  ;;  %39566 = vmatpush3.bf16.msra.mxu1 %v41857_v12 }
 0x1be   :  { %v18092_v21 = vsub.f32 %v35840_v22, %v17940_v39  ;;  %v18852_v47 = vsub.f32 %v35882_v15, %v18700_v7  ;;  %36258 = vmatprep.mubr.f32.mxu0 %v42568_v14  ;;  %36300 = vmatprep.mubr.f32.mxu1 %v42573_v24  ;;  %v9366_v14 = vsub.f32 %v42704_v2, %v45142_v27  ;;  %v45227_v24 = vand.u32 4294901760, %v42707_v4 }
 0x1bf   :  { %v42725_v45 = vpack.c.bf16 %v17940_v39, %v17937_v13  ;;  %v18085_v51 = vsub.f32 %v3682_v61, %v17937_v13  ;;  %v42727_v46 = vpack.c.bf16 %v18700_v7, %v18697_v40  ;;  %v18845_v53 = vsub.f32 %v4190_v17, %v18697_v40  ;;  %39568 = vmatprep.subr.bf16.mxu0 %v41857_v12 }
 0x1c0   :  { %v18093_v1 = vand.u32 4294901760, %v18092_v21  ;;  %v18853_v19 = vand.u32 4294901760, %v18852_v47  ;;  %39592 = vmatprep.subr.bf16.mxu1 %v41857_v12  ;;  %v9874_v22 = vsub.f32 %v42707_v4, %v45227_v24  ;;  %v9357_v13 = vand.u32 4294901760, %v9356_v58 }
 0x1c1   :  { %45225 = vst [vmem:[#allocation17_spill] sm:$0xff] %v42725_v45  ;;  %45226 = vst [vmem:[#allocation18_spill] sm:$0xff] %v42727_v46  ;;  %v18086_v15 = vand.u32 4294901760, %v18085_v51  ;;  %v18846_v39 = vand.u32 4294901760, %v18845_v53  ;;  %v9367_v46 = vand.u32 4294901760, %v9366_v14  ;;  %v42742_v58 = vpack.c.bf16 %v18092_v21, %v18085_v51 }
 0x1c2   :  { %v18094_v61 = vsub.f32 %v18092_v21, %v18093_v1  ;;  %v18854_v7 = vsub.f32 %v18852_v47, %v18853_v19  ;;  %v9875_v45 = vand.u32 4294901760, %v9874_v22  ;;  %v42749_v49 = vpack.c.bf16 %v18852_v47, %v18845_v53 }
 0x1c3   :  { %v18087_v17 = vsub.f32 %v18085_v51, %v18086_v15  ;;  %v18847_v40 = vsub.f32 %v18845_v53, %v18846_v39  ;;  %45228 = vst [vmem:[#allocation19_spill] sm:$0xff] %v42742_v58  ;;  %v42753_v14 = vpack.c.bf16 %v18093_v1, %v18086_v15  ;;  %v42755_v22 = vpack.c.bf16 %v18853_v19, %v18846_v39 }
 0x1c4   :  { %36259 = vmatmul.mubr.f32.vlgmr.msra.gmra.mrb[16].mxu0 %v42579_v63  ;;  %36301 = vmatmul.mubr.f32.vlgmr.msra.gmra.mrb[16].mxu1 %v42581_v25  ;;  %v18095_v37 = vand.u32 4294901760, %v18094_v61  ;;  %v18855_v27 = vand.u32 4294901760, %v18854_v7  ;;  %45231 = vst [vmem:[#allocation22_spill] sm:$0xff] %v42749_v49  ;;  %v10805_v19 = vsel %vm135_vm0, %v42531_v5, 0  ;;  %v10808_v21 = vsel %vm135_vm0, %v42537_v30, 0 }
 0x1c5   :  { %39570 = vmatpush3.bf16.msra.mxu0 %v41857_v12  ;;  %39594 = vmatpush3.bf16.msra.mxu1 %v41857_v12  ;;  %v18088_v24 = vand.u32 4294901760, %v18087_v17  ;;  %v18848_v36 = vand.u32 4294901760, %v18847_v40  ;;  %45232 = vst [vmem:[#allocation23_spill] sm:$0xff] %v42753_v14  ;;  %45233 = vst [vmem:[#allocation24_spill] sm:$0xff] %v42755_v22  ;;  %v45237_v5 = vand.u32 4294901760, %v42707_v4 }
 0x1c6   :  { %36307 = vmatprep.mubr.f32.mxu0 %v9357_v13  ;;  %39572 = vmatprep.subr.bf16.mxu0 %v41906_v42 }
 0x1c7   :  { %36349 = vmatprep.mubr.f32.mxu1 %v9865_v35  ;;  %39596 = vmatprep.subr.bf16.mxu1 %v41906_v42  ;;  %v42745_v63 = vpack.c.bf16 %v18095_v37, %v18088_v24  ;;  %v42747_v25 = vpack.c.bf16 %v18855_v27, %v18848_v36  ;;  %v45234_v36 = vand.u32 4294901760, %v42694_v48  ;;  %v10297_v37 = vsel %vm135_vm0, %v42405_v44, 0 }
 0x1c8   :  { %36308 = vmatmul.mubr.f32.vlgmr.msra.gmra.mrb[18].mxu0 %v9367_v46  ;;  %36350 = vmatmul.mubr.f32.vlgmr.msra.gmra.mrb[18].mxu1 %v9875_v45  ;;  %v45235_v35 = vand.u32 4294901760, %v42699_v34  ;;  %v10300_v27 = vsel %vm135_vm0, %v42413_v11, 0  ;;  %v42785_v1 = vand.u32 4294901760, %v10297_v37  ;;  %v45236_v44 = vand.u32 4294901760, %v42704_v2 }
 0x1c9   :  { %45229 = vst [vmem:[#allocation20_spill] sm:$0xff] %v42745_v63  ;;  %45230 = vst [vmem:[#allocation21_spill] sm:$0xff] %v42747_v25  ;;  %39574 = vmatpush3.bf16.msra.mxu0 %v41906_v42  ;;  %39598 = vmatpush3.bf16.msra.mxu1 %v41906_v42  ;;  %v42791_v47 = vand.u32 4294901760, %v10300_v27 }
 0x1ca   :  { %36314 = vmatprep.mubr.f32.mxu0 %v42675_v41  ;;  %39576 = vmatprep.subr.bf16.mxu0 %v41933_v60  ;;  %v42802_v11 = vsub.f32 %v10297_v37, %v42785_v1 }
 0x1cb   :  { %36356 = vmatprep.mubr.f32.mxu1 %v42681_v59  ;;  %39600 = vmatprep.subr.bf16.mxu1 %v41933_v60  ;;  %v42810_v30 = vsub.f32 %v10300_v27, %v42791_v47 }
 0x1cd   :  { %v45147_v46 = vand.u32 4294901760, %v42810_v30 }
 0x1cf   :  { %v10382_v27 = vsub.f32 %v42810_v30, %v45147_v46 }
 0x1d0   :  { %36315 = vmatmul.mubr.f32.vlgmr.msra.gmra.mrb[18].mxu0 %v42687_v18  ;;  %36357 = vmatmul.mubr.f32.vlgmr.msra.gmra.mrb[18].mxu1 %v42689_v33 }
 0x1d1   :  { %39578 = vmatpush3.bf16.msra.mxu0 %v41933_v60  ;;  %39602 = vmatpush3.bf16.msra.mxu1 %v41933_v60 }
 0x1d2   :  { %36321 = vmatprep.mubr.f32.mxu0 %v42694_v48  ;;  %39580 = vmatprep.subr.bf16.mxu0 %v41857_v12  ;;  %v42787_v48 = vand.u32 4294901760, %v10805_v19 }
 0x1d3   :  { %36363 = vmatprep.mubr.f32.mxu1 %v42699_v34  ;;  %39604 = vmatprep.subr.bf16.mxu1 %v41857_v12  ;;  %v42797_v34 = vand.u32 4294901760, %v10808_v21 }
 0x1d4   :  { %v42805_v45 = vsub.f32 %v10805_v19, %v42787_v48 }
 0x1d6   :  { %v45145_v51 = vand.u32 4294901760, %v42805_v45 }
 0x1d8   :  { %36322 = vmatmul.mubr.f32.vlgmr.msra.gmra.mrb[18].mxu0 %v42704_v2  ;;  %36364 = vmatmul.mubr.f32.vlgmr.msra.gmra.mrb[18].mxu1 %v42707_v4  ;;  %v42815_v2 = vsub.f32 %v10808_v21, %v42797_v34  ;;  %v45144_v4 = vand.u32 4294901760, %v42802_v11  ;;  %v10880_v37 = vsub.f32 %v42805_v45, %v45145_v51 }
 0x1d9   :  { %39582 = vmatpush3.bf16.msra.mxu0 %v41857_v12  ;;  %39606 = vmatpush3.bf16.msra.mxu1 %v41857_v12 }
 0x1da   :  { %36328 = vmatprep.mubr.f32.mxu0 %v45234_v36  ;;  %39584 = vmatprep.subr.bf16.mxu0 %v41981_v28  ;;  %v10372_v36 = vsub.f32 %v42802_v11, %v45144_v4 }
 0x1db   :  { %36370 = vmatprep.mubr.f32.mxu1 %v45235_v35  ;;  %39608 = vmatprep.subr.bf16.mxu1 %v41981_v28 }
 0x1e0   :  { %36329 = vmatmul.mubr.f32.vlgmr.msra.gmra.mrb[18].mxu0 %v45236_v44  ;;  %36371 = vmatmul.mubr.f32.vlgmr.msra.gmra.mrb[18].mxu1 %v45237_v5 }
 0x1e1   :  { %39586 = vmatpush3.bf16.msra.mxu0 %v41981_v28  ;;  %39610 = vmatpush3.bf16.msra.mxu1 %v41981_v28 }
 0x1e2   :  { %36335 = vmatprep.mubr.f32.mxu0 %v42675_v41  ;;  %39588 = vmatprep.subr.bf16.mxu0 %v41857_v12 }
 0x1e3   :  { %36377 = vmatprep.mubr.f32.mxu1 %v42681_v59  ;;  %39612 = vmatprep.subr.bf16.mxu1 %v41857_v12 }
 0x1e7   :  { %v35924_v53 = vpop.f32.mrb[8].mxu0  ;;  %v35966_v15 = vpop.f32.mrb[8].mxu1 }
 0x1e8   :  { %v19460_v39 = vand.u32 4294901760, %v35924_v53  ;;  %v20220_v61 = vand.u32 4294901760, %v35966_v15  ;;  %v4698_v7 = vpop.f32.mrb[9].mxu0  ;;  %v5206_v13 = vpop.f32.mrb[9].mxu1  ;;  %36336 = vmatmul.mubr.f32.vlgmr.msra.gmra.mrb[18].mxu0 %v42687_v18  ;;  %36378 = vmatmul.mubr.f32.vlgmr.msra.gmra.mrb[18].mxu1 %v42689_v33 }
 0x1e9   :  { %v19457_v40 = vand.u32 4294901760, %v4698_v7  ;;  %v20217_v24 = vand.u32 4294901760, %v5206_v13  ;;  %39590 = vmatpush3.bf16.msra.mxu0 %v41857_v12  ;;  %39614 = vmatpush3.bf16.msra.mxu1 %v41857_v12 }
 0x1ea   :  { %v19612_v19 = vsub.f32 %v35924_v53, %v19460_v39  ;;  %v20372_v35 = vsub.f32 %v35966_v15, %v20220_v61  ;;  %36342 = vmatprep.mubr.f32.mxu0 %v42675_v41  ;;  %36384 = vmatprep.mubr.f32.mxu1 %v42681_v59  ;;  %v45240_v41 = vand.u32 4294901760, %v42815_v2 }
 0x1eb   :  { %v42836_v21 = vpack.c.bf16 %v19460_v39, %v19457_v40  ;;  %v19605_v44 = vsub.f32 %v4698_v7, %v19457_v40  ;;  %v42838_v5 = vpack.c.bf16 %v20220_v61, %v20217_v24  ;;  %v20365_v4 = vsub.f32 %v5206_v13, %v20217_v24  ;;  %39616 = vmatprep.subr.bf16.mxu0 %v41857_v12 }
 0x1ec   :  { %v19613_v17 = vand.u32 4294901760, %v19612_v19  ;;  %v20373_v51 = vand.u32 4294901760, %v20372_v35  ;;  %39640 = vmatprep.subr.bf16.mxu1 %v41857_v12  ;;  %v10890_v59 = vsub.f32 %v42815_v2, %v45240_v41  ;;  %v10373_v7 = vand.u32 4294901760, %v10372_v36 }
 0x1ed   :  { %45238 = vst [vmem:[#allocation25_spill] sm:$0xff] %v42836_v21  ;;  %45239 = vst [vmem:[#allocation26_spill] sm:$0xff] %v42838_v5  ;;  %v19606_v53 = vand.u32 4294901760, %v19605_v44  ;;  %v20366_v15 = vand.u32 4294901760, %v20365_v4  ;;  %v42845_v22 = vpack.c.bf16 %v19612_v19, %v19605_v44  ;;  %v10881_v61 = vand.u32 4294901760, %v10880_v37 }
 0x1ee   :  { %v19614_v39 = vsub.f32 %v19612_v19, %v19613_v17  ;;  %v20374_v46 = vsub.f32 %v20372_v35, %v20373_v51  ;;  %v10383_v24 = vand.u32 4294901760, %v10382_v27  ;;  %v42847_v5 = vpack.c.bf16 %v20372_v35, %v20365_v4  ;;  %v41689_v27 = vld [vmem:[#allocation5 + $0x48] sm:$0xff] }
 0x1ef   :  { %45241 = vst [vmem:[#allocation27_spill] sm:$0xff] %v42845_v22  ;;  %v19607_v40 = vsub.f32 %v19605_v44, %v19606_v53  ;;  %v20367_v13 = vsub.f32 %v20365_v4, %v20366_v15  ;;  %v10891_v21 = vand.u32 4294901760, %v10890_v59  ;;  %v42851_v49 = vpack.c.bf16 %v19613_v17, %v19606_v53  ;;  %v41688_v4 = vld [vmem:[#allocation5 + $0x40] sm:$0xff] }
 0x1f0   :  { %45242 = vst [vmem:[#allocation28_spill] sm:$0xff] %v42847_v5  ;;  %36343 = vmatmul.mubr.f32.vlgmr.msra.gmra.mrb[18].mxu0 %v42687_v18  ;;  %36385 = vmatmul.mubr.f32.vlgmr.msra.gmra.mrb[18].mxu1 %v42689_v33  ;;  %v19615_v14 = vand.u32 4294901760, %v19614_v39  ;;  %v20375_v41 = vand.u32 4294901760, %v20374_v46  ;;  %v42855_v19 = vpack.c.bf16 %v20373_v51, %v20366_v15  ;;  %v11313_v51 = vsel %vm135_vm0, %v41688_v4, 0 }
 0x1f1   :  { %45243 = vst [vmem:[#allocation29_spill] sm:$0xff] %v42851_v49  ;;  %39618 = vmatpush3.bf16.msra.mxu0 %v41857_v12  ;;  %39642 = vmatpush3.bf16.msra.mxu1 %v41857_v12  ;;  %v19608_v36 = vand.u32 4294901760, %v19607_v40  ;;  %v20368_v37 = vand.u32 4294901760, %v20367_v13  ;;  %v45248_v46 = vand.u32 4294901760, %v42805_v45  ;;  %v11821_v17 = vsel %vm135_vm0, %v42403_v38, 0 }
 0x1f2   :  { %45244 = vst [vmem:[#allocation30_spill] sm:$0xff] %v42855_v19  ;;  %36391 = vmatprep.mubr.f32.mxu0 %v10373_v7  ;;  %39620 = vmatprep.subr.bf16.mxu0 %v41906_v42  ;;  %v42890_v35 = vand.u32 4294901760, %v11313_v51  ;;  %v42895_v44 = vand.u32 4294901760, %v11821_v17  ;;  %v45249_v59 = vand.u32 4294901760, %v42810_v30 }
 0x1f3   :  { %36433 = vmatprep.mubr.f32.mxu1 %v10881_v61  ;;  %39644 = vmatprep.subr.bf16.mxu1 %v41906_v42  ;;  %v42859_v18 = vpack.c.bf16 %v19615_v14, %v19608_v36  ;;  %v42861_v33 = vpack.c.bf16 %v20375_v41, %v20368_v37  ;;  %v45247_v14 = vand.u32 4294901760, %v42802_v11 }
 0x1f4   :  { %36392 = vmatmul.mubr.f32.vlgmr.msra.gmra.mrb[20].mxu0 %v10383_v24  ;;  %36434 = vmatmul.mubr.f32.vlgmr.msra.gmra.mrb[20].mxu1 %v10891_v21  ;;  %v11316_v21 = vsel %vm135_vm0, %v41689_v27, 0  ;;  %v42908_v38 = vsub.f32 %v11313_v51, %v42890_v35 }
 0x1f5   :  { %45245 = vst [vmem:[#allocation31_spill] sm:$0xff] %v42859_v18  ;;  %45246 = vst [vmem:[#allocation32_spill] sm:$0xff] %v42861_v33  ;;  %39622 = vmatpush3.bf16.msra.mxu0 %v41906_v42  ;;  %39646 = vmatpush3.bf16.msra.mxu1 %v41906_v42  ;;  %v42901_v53 = vand.u32 4294901760, %v11316_v21 }
 0x1f6   :  { %36398 = vmatprep.mubr.f32.mxu0 %v42785_v1  ;;  %39624 = vmatprep.subr.bf16.mxu0 %v41933_v60  ;;  %v45152_v39 = vand.u32 4294901760, %v42908_v38 }
 0x1f7   :  { %36440 = vmatprep.mubr.f32.mxu1 %v42787_v48  ;;  %39648 = vmatprep.subr.bf16.mxu1 %v41933_v60 }
 0x1fc   :  { %36399 = vmatmul.mubr.f32.vlgmr.msra.gmra.mrb[20].mxu0 %v42791_v47  ;;  %36441 = vmatmul.mubr.f32.vlgmr.msra.gmra.mrb[20].mxu1 %v42797_v34 }
 0x1fd   :  { %39626 = vmatpush3.bf16.msra.mxu0 %v41933_v60  ;;  %39650 = vmatpush3.bf16.msra.mxu1 %v41933_v60 }
 0x1fe   :  { %36405 = vmatprep.mubr.f32.mxu0 %v42802_v11  ;;  %39628 = vmatprep.subr.bf16.mxu0 %v41857_v12  ;;  %v11824_v11 = vsel %vm135_vm0, %v42411_v10, 0  ;;  %v42913_v10 = vsub.f32 %v11821_v17, %v42895_v44 }
 0x1ff   :  { %36447 = vmatprep.mubr.f32.mxu1 %v42805_v45  ;;  %39652 = vmatprep.subr.bf16.mxu1 %v41857_v12  ;;  %v45250_v45 = vand.u32 4294901760, %v42815_v2  ;;  %v42903_v15 = vand.u32 4294901760, %v11824_v11 }
 0x200   :  { %v45153_v7 = vand.u32 4294901760, %v42913_v10 }
 0x204   :  { %36406 = vmatmul.mubr.f32.vlgmr.msra.gmra.mrb[20].mxu0 %v42810_v30  ;;  %36448 = vmatmul.mubr.f32.vlgmr.msra.gmra.mrb[20].mxu1 %v42815_v2  ;;  %v42918_v30 = vsub.f32 %v11316_v21, %v42901_v53  ;;  %v42921_v2 = vsub.f32 %v11824_v11, %v42903_v15  ;;  %v11896_v21 = vsub.f32 %v42913_v10, %v45153_v7 }
 0x205   :  { %39630 = vmatpush3.bf16.msra.mxu0 %v41857_v12  ;;  %39654 = vmatpush3.bf16.msra.mxu1 %v41857_v12 }
 0x206   :  { %36412 = vmatprep.mubr.f32.mxu0 %v45247_v14  ;;  %39632 = vmatprep.subr.bf16.mxu0 %v41981_v28 }
 0x207   :  { %36454 = vmatprep.mubr.f32.mxu1 %v45248_v46  ;;  %39656 = vmatprep.subr.bf16.mxu1 %v41981_v28  ;;  %v11388_v46 = vsub.f32 %v42908_v38, %v45152_v39 }
 0x20c   :  { %36413 = vmatmul.mubr.f32.vlgmr.msra.gmra.mrb[20].mxu0 %v45249_v59  ;;  %36455 = vmatmul.mubr.f32.vlgmr.msra.gmra.mrb[20].mxu1 %v45250_v45 }
 0x20d   :  { %39634 = vmatpush3.bf16.msra.mxu0 %v41981_v28  ;;  %39658 = vmatpush3.bf16.msra.mxu1 %v41981_v28 }
 0x20e   :  { %36419 = vmatprep.mubr.f32.mxu0 %v42785_v1  ;;  %39636 = vmatprep.subr.bf16.mxu0 %v41857_v12 }
 0x20f   :  { %36461 = vmatprep.mubr.f32.mxu1 %v42787_v48  ;;  %39660 = vmatprep.subr.bf16.mxu1 %v41857_v12 }
 0x213   :  { %v36008_v61 = vpop.f32.mrb[10].mxu0  ;;  %v36050_v40 = vpop.f32.mrb[10].mxu1 }
 0x214   :  { %v20980_v13 = vand.u32 4294901760, %v36008_v61  ;;  %v21740_v24 = vand.u32 4294901760, %v36050_v40  ;;  %v5714_v41 = vpop.f32.mrb[11].mxu0  ;;  %v6222_v36 = vpop.f32.mrb[11].mxu1  ;;  %36420 = vmatmul.mubr.f32.vlgmr.msra.gmra.mrb[20].mxu0 %v42791_v47  ;;  %36462 = vmatmul.mubr.f32.vlgmr.msra.gmra.mrb[20].mxu1 %v42797_v34 }
 0x215   :  { %v20977_v4 = vand.u32 4294901760, %v5714_v41  ;;  %v21737_v51 = vand.u32 4294901760, %v6222_v36  ;;  %39638 = vmatpush3.bf16.msra.mxu0 %v41857_v12  ;;  %39662 = vmatpush3.bf16.msra.mxu1 %v41857_v12 }
 0x216   :  { %v21132_v17 = vsub.f32 %v36008_v61, %v20980_v13  ;;  %v21892_v27 = vsub.f32 %v36050_v40, %v21740_v24  ;;  %36426 = vmatprep.mubr.f32.mxu0 %v42785_v1  ;;  %36468 = vmatprep.mubr.f32.mxu1 %v42787_v48  ;;  %v45253_v1 = vand.u32 4294901760, %v42918_v30  ;;  %v45254_v61 = vand.u32 4294901760, %v42921_v2 }
 0x217   :  { %v42939_v11 = vpack.c.bf16 %v20980_v13, %v20977_v4  ;;  %v21125_v59 = vsub.f32 %v5714_v41, %v20977_v4  ;;  %v42941_v45 = vpack.c.bf16 %v21740_v24, %v21737_v51  ;;  %v21885_v14 = vsub.f32 %v6222_v36, %v21737_v51  ;;  %39664 = vmatprep.subr.bf16.mxu0 %v41857_v12 }
 0x218   :  { %v21133_v37 = vand.u32 4294901760, %v21132_v17  ;;  %v21893_v39 = vand.u32 4294901760, %v21892_v27  ;;  %39688 = vmatprep.subr.bf16.mxu1 %v41857_v12  ;;  %v11398_v48 = vsub.f32 %v42918_v30, %v45253_v1  ;;  %v11906_v40 = vsub.f32 %v42921_v2, %v45254_v61 }
 0x219   :  { %45251 = vst [vmem:[#allocation33_spill] sm:$0xff] %v42939_v11  ;;  %45252 = vst [vmem:[#allocation34_spill] sm:$0xff] %v42941_v45  ;;  %v21126_v13 = vand.u32 4294901760, %v21125_v59  ;;  %v21886_v7 = vand.u32 4294901760, %v21885_v14  ;;  %v42951_v41 = vpack.c.bf16 %v21132_v17, %v21125_v59  ;;  %v42953_v24 = vpack.c.bf16 %v21892_v27, %v21885_v14 }
 0x21a   :  { %v21134_v36 = vsub.f32 %v21132_v17, %v21133_v37  ;;  %v21894_v4 = vsub.f32 %v21892_v27, %v21893_v39  ;;  %v11389_v51 = vand.u32 4294901760, %v11388_v46  ;;  %v11897_v45 = vand.u32 4294901760, %v11896_v21  ;;  %v41691_v27 = vld [vmem:[#allocation5 + $0x68] sm:$0xff] }
 0x21b   :  { %45255 = vst [vmem:[#allocation35_spill] sm:$0xff] %v42951_v41  ;;  %45256 = vst [vmem:[#allocation36_spill] sm:$0xff] %v42953_v24  ;;  %v21127_v11 = vsub.f32 %v21125_v59, %v21126_v13  ;;  %v21887_v19 = vsub.f32 %v21885_v14, %v21886_v7  ;;  %v42955_v49 = vpack.c.bf16 %v21133_v37, %v21126_v13  ;;  %v11399_v1 = vand.u32 4294901760, %v11398_v48 }
 0x21c   :  { %v42957_v5 = vpack.c.bf16 %v21893_v39, %v21886_v7  ;;  %36427 = vmatmul.mubr.f32.vlgmr.msra.gmra.mrb[20].mxu0 %v42791_v47  ;;  %36469 = vmatmul.mubr.f32.vlgmr.msra.gmra.mrb[20].mxu1 %v42797_v34  ;;  %v11907_v61 = vand.u32 4294901760, %v11906_v40  ;;  %v21135_v22 = vand.u32 4294901760, %v21134_v36  ;;  %v21895_v41 = vand.u32 4294901760, %v21894_v4  ;;  %v41690_v34 = vld [vmem:[#allocation5 + $0x60] sm:$0xff] }
 0x21d   :  { %45257 = vst [vmem:[#allocation37_spill] sm:$0xff] %v42955_v49  ;;  %39666 = vmatpush3.bf16.msra.mxu0 %v41857_v12  ;;  %39690 = vmatpush3.bf16.msra.mxu1 %v41857_v12  ;;  %v21128_v46 = vand.u32 4294901760, %v21127_v11  ;;  %v21888_v17 = vand.u32 4294901760, %v21887_v19  ;;  %v12329_v19 = vsel %vm135_vm0, %v41690_v34, 0  ;;  %v45262_v7 = vand.u32 4294901760, %v42913_v10 }
 0x21e   :  { %45258 = vst [vmem:[#allocation38_spill] sm:$0xff] %v42957_v5  ;;  %36475 = vmatprep.mubr.f32.mxu0 %v11389_v51  ;;  %39668 = vmatprep.subr.bf16.mxu0 %v41906_v42  ;;  %v12837_v37 = vsel %vm135_vm0, %v42533_v20, 0  ;;  %v42996_v14 = vand.u32 4294901760, %v12329_v19  ;;  %v12332_v21 = vsel %vm135_vm0, %v41691_v27, 0  ;;  %v45263_v59 = vand.u32 4294901760, %v42918_v30 }
 0x21f   :  { %36517 = vmatprep.mubr.f32.mxu1 %v11897_v45  ;;  %39692 = vmatprep.subr.bf16.mxu1 %v41906_v42  ;;  %v42965_v39 = vpack.c.bf16 %v21135_v22, %v21128_v46  ;;  %v42967_v47 = vpack.c.bf16 %v21895_v41, %v21888_v17  ;;  %v45261_v22 = vand.u32 4294901760, %v42908_v38  ;;  %v43001_v11 = vand.u32 4294901760, %v12837_v37 }
 0x220   :  { %36476 = vmatmul.mubr.f32.vlgmr.msra.gmra.mrb[22].mxu0 %v11399_v1  ;;  %36518 = vmatmul.mubr.f32.vlgmr.msra.gmra.mrb[22].mxu1 %v11907_v61  ;;  %v43007_v45 = vand.u32 4294901760, %v12332_v21  ;;  %v43014_v20 = vsub.f32 %v12329_v19, %v42996_v14 }
 0x221   :  { %45259 = vst [vmem:[#allocation39_spill] sm:$0xff] %v42965_v39  ;;  %45260 = vst [vmem:[#allocation40_spill] sm:$0xff] %v42967_v47  ;;  %39670 = vmatpush3.bf16.msra.mxu0 %v41906_v42  ;;  %39694 = vmatpush3.bf16.msra.mxu1 %v41906_v42 }
 0x222   :  { %36482 = vmatprep.mubr.f32.mxu0 %v42890_v35  ;;  %39672 = vmatprep.subr.bf16.mxu0 %v41933_v60  ;;  %v45161_v40 = vand.u32 4294901760, %v43014_v20 }
 0x223   :  { %36524 = vmatprep.mubr.f32.mxu1 %v42895_v44  ;;  %39696 = vmatprep.subr.bf16.mxu1 %v41933_v60 }
 0x224   :  { %v12404_v19 = vsub.f32 %v43014_v20, %v45161_v40 }
 0x228   :  { %36483 = vmatmul.mubr.f32.vlgmr.msra.gmra.mrb[22].mxu0 %v42901_v53  ;;  %36525 = vmatmul.mubr.f32.vlgmr.msra.gmra.mrb[22].mxu1 %v42903_v15 }
 0x229   :  { %39674 = vmatpush3.bf16.msra.mxu0 %v41933_v60  ;;  %39698 = vmatpush3.bf16.msra.mxu1 %v41933_v60 }
 0x22a   :  { %36489 = vmatprep.mubr.f32.mxu0 %v42908_v38  ;;  %39676 = vmatprep.subr.bf16.mxu0 %v41857_v12  ;;  %v12840_v38 = vsel %vm135_vm0, %v42539_v31, 0  ;;  %v43019_v31 = vsub.f32 %v12837_v37, %v43001_v11 }
 0x22b   :  { %36531 = vmatprep.mubr.f32.mxu1 %v42913_v10  ;;  %39700 = vmatprep.subr.bf16.mxu1 %v41857_v12  ;;  %v45264_v10 = vand.u32 4294901760, %v42921_v2  ;;  %v43009_v48 = vand.u32 4294901760, %v12840_v38 }
 0x22c   :  { %v45162_v13 = vand.u32 4294901760, %v43019_v31 }
 0x22e   :  { %v12912_v27 = vsub.f32 %v43019_v31, %v45162_v13 }
 0x230   :  { %36490 = vmatmul.mubr.f32.vlgmr.msra.gmra.mrb[22].mxu0 %v42918_v30  ;;  %36532 = vmatmul.mubr.f32.vlgmr.msra.gmra.mrb[22].mxu1 %v42921_v2  ;;  %v43024_v30 = vsub.f32 %v12332_v21, %v43007_v45  ;;  %v43027_v2 = vsub.f32 %v12840_v38, %v43009_v48  ;;  %v12913_v13 = vand.u32 4294901760, %v12912_v27  ;;  %v45275_v27 = vand.u32 4294901760, %v43019_v31 }
 0x231   :  { %39678 = vmatpush3.bf16.msra.mxu0 %v41857_v12  ;;  %39702 = vmatpush3.bf16.msra.mxu1 %v41857_v12 }
 0x232   :  { %36496 = vmatprep.mubr.f32.mxu0 %v45261_v22  ;;  %39680 = vmatprep.subr.bf16.mxu0 %v41981_v28  ;;  %v45167_v46 = vand.u32 4294901760, %v43024_v30 }
 0x233   :  { %36538 = vmatprep.mubr.f32.mxu1 %v45262_v7  ;;  %39704 = vmatprep.subr.bf16.mxu1 %v41981_v28 }
 0x238   :  { %36497 = vmatmul.mubr.f32.vlgmr.msra.gmra.mrb[22].mxu0 %v45263_v59  ;;  %36539 = vmatmul.mubr.f32.vlgmr.msra.gmra.mrb[22].mxu1 %v45264_v10 }
 0x239   :  { %39682 = vmatpush3.bf16.msra.mxu0 %v41981_v28  ;;  %39706 = vmatpush3.bf16.msra.mxu1 %v41981_v28 }
 0x23a   :  { %36503 = vmatprep.mubr.f32.mxu0 %v42890_v35  ;;  %39684 = vmatprep.subr.bf16.mxu0 %v41857_v12 }
 0x23b   :  { %36545 = vmatprep.mubr.f32.mxu1 %v42895_v44  ;;  %39708 = vmatprep.subr.bf16.mxu1 %v41857_v12 }
 0x23f   :  { %v36092_v41 = vpop.f32.mrb[12].mxu0  ;;  %v36134_v36 = vpop.f32.mrb[12].mxu1 }
 0x240   :  { %v22500_v4 = vand.u32 4294901760, %v36092_v41  ;;  %v23260_v51 = vand.u32 4294901760, %v36134_v36  ;;  %v6730_v1 = vpop.f32.mrb[13].mxu0  ;;  %v7238_v61 = vpop.f32.mrb[13].mxu1  ;;  %36504 = vmatmul.mubr.f32.vlgmr.msra.gmra.mrb[22].mxu0 %v42901_v53  ;;  %36546 = vmatmul.mubr.f32.vlgmr.msra.gmra.mrb[22].mxu1 %v42903_v15 }
 0x241   :  { %v22497_v22 = vand.u32 4294901760, %v6730_v1  ;;  %v23257_v34 = vand.u32 4294901760, %v7238_v61  ;;  %39686 = vmatpush3.bf16.msra.mxu0 %v41857_v12  ;;  %39710 = vmatpush3.bf16.msra.mxu1 %v41857_v12 }
 0x242   :  { %v22652_v7 = vsub.f32 %v36092_v41, %v22500_v4  ;;  %v23412_v37 = vsub.f32 %v36134_v36, %v23260_v51  ;;  %36510 = vmatprep.mubr.f32.mxu0 %v42890_v35  ;;  %36552 = vmatprep.mubr.f32.mxu1 %v42895_v44  ;;  %v12414_v35 = vsub.f32 %v43024_v30, %v45167_v46  ;;  %v45267_v44 = vand.u32 4294901760, %v43027_v2 }
 0x243   :  { %v43045_v21 = vpack.c.bf16 %v22500_v4, %v22497_v22  ;;  %v22645_v38 = vsub.f32 %v6730_v1, %v22497_v22  ;;  %v43047_v59 = vpack.c.bf16 %v23260_v51, %v23257_v34  ;;  %v23405_v10 = vsub.f32 %v7238_v61, %v23257_v34  ;;  %39712 = vmatprep.subr.bf16.mxu0 %v41857_v12 }
 0x244   :  { %v22653_v17 = vand.u32 4294901760, %v22652_v7  ;;  %v23413_v40 = vand.u32 4294901760, %v23412_v37  ;;  %39736 = vmatprep.subr.bf16.mxu1 %v41857_v12  ;;  %v12922_v41 = vsub.f32 %v43027_v2, %v45267_v44  ;;  %v12405_v34 = vand.u32 4294901760, %v12404_v19 }
 0x245   :  { %45265 = vst [vmem:[#allocation41_spill] sm:$0xff] %v43045_v21  ;;  %45266 = vst [vmem:[#allocation42_spill] sm:$0xff] %v43047_v59  ;;  %v22646_v36 = vand.u32 4294901760, %v22645_v38  ;;  %v23406_v4 = vand.u32 4294901760, %v23405_v10  ;;  %v43057_v1 = vpack.c.bf16 %v22652_v7, %v22645_v38  ;;  %v43059_v51 = vpack.c.bf16 %v23412_v37, %v23405_v10 }
 0x246   :  { %v22654_v61 = vsub.f32 %v22652_v7, %v22653_v17  ;;  %v23414_v22 = vsub.f32 %v23412_v37, %v23413_v40  ;;  %v12415_v44 = vand.u32 4294901760, %v12414_v35  ;;  %v12923_v46 = vand.u32 4294901760, %v12922_v41  ;;  %v13346_v37 = vld [vmem:[%s45127_s3 + $0x10] sm:$0xff] }
 0x247   :  { %45268 = vst [vmem:[#allocation43_spill] sm:$0xff] %v43057_v1  ;;  %45269 = vst [vmem:[#allocation44_spill] sm:$0xff] %v43059_v51  ;;  %v22647_v59 = vsub.f32 %v22645_v38, %v22646_v36  ;;  %v23407_v21 = vsub.f32 %v23405_v10, %v23406_v4  ;;  %v43061_v5 = vpack.c.bf16 %v22653_v17, %v22646_v36  ;;  %v45274_v17 = vand.u32 4294901760, %v43014_v20 }
 0x248   :  { %v43063_v49 = vpack.c.bf16 %v23413_v40, %v23406_v4  ;;  %36511 = vmatmul.mubr.f32.vlgmr.msra.gmra.mrb[22].mxu0 %v42901_v53  ;;  %36553 = vmatmul.mubr.f32.vlgmr.msra.gmra.mrb[22].mxu1 %v42903_v15  ;;  %v22655_v24 = vand.u32 4294901760, %v22654_v61  ;;  %v23415_v1 = vand.u32 4294901760, %v23414_v22  ;;  %v13345_v15 = vld [vmem:[%s45127_s3 + $0x8] sm:$0xff]  ;;  %v13359_v10 = vsel %vm135_vm0, %v13346_v37, 0 }
 0x249   :  { %45270 = vst [vmem:[#allocation45_spill] sm:$0xff] %v43061_v5  ;;  %39714 = vmatpush3.bf16.msra.mxu0 %v41857_v12  ;;  %39738 = vmatpush3.bf16.msra.mxu1 %v41857_v12  ;;  %v22648_v19 = vand.u32 4294901760, %v22647_v59  ;;  %v23408_v7 = vand.u32 4294901760, %v23407_v21  ;;  %v13348_v59 = vld [vmem:[%s45127_s3 + $0x20] sm:$0xff]  ;;  %v45276_v4 = vand.u32 4294901760, %v43024_v30  ;;  %v43139_v61 = vand.u32 4294901760, %v13359_v10 }
 0x24a   :  { %45271 = vst [vmem:[#allocation46_spill] sm:$0xff] %v43063_v49  ;;  %36559 = vmatprep.mubr.f32.mxu0 %v12405_v34  ;;  %39716 = vmatprep.subr.bf16.mxu0 %v41906_v42  ;;  %v13365_v36 = vsel %vm135_vm0, %v13348_v59, 0  ;;  %v13349_v22 = vld [vmem:[%s45127_s3 + $0x28] sm:$0xff] }
 0x24b   :  { %36601 = vmatprep.mubr.f32.mxu1 %v12913_v13  ;;  %39740 = vmatprep.subr.bf16.mxu1 %v41906_v42  ;;  %v43071_v40 = vpack.c.bf16 %v22655_v24, %v22648_v19  ;;  %v43073_v53 = vpack.c.bf16 %v23415_v1, %v23408_v7  ;;  %v45277_v1 = vand.u32 4294901760, %v43027_v2  ;;  %v13368_v19 = vsel %vm135_vm0, %v13349_v22, 0 }
 0x24c   :  { %36560 = vmatmul.mubr.f32.vlgmr.msra.gmra.mrb[24].mxu0 %v12415_v44  ;;  %36602 = vmatmul.mubr.f32.vlgmr.msra.gmra.mrb[24].mxu1 %v12923_v46  ;;  %v43163_v7 = vsub.f32 %v13359_v10, %v43139_v61 }
 0x24d   :  { %45272 = vst [vmem:[#allocation47_spill] sm:$0xff] %v43071_v40  ;;  %45273 = vst [vmem:[#allocation48_spill] sm:$0xff] %v43073_v53  ;;  %39718 = vmatpush3.bf16.msra.mxu0 %v41906_v42  ;;  %39742 = vmatpush3.bf16.msra.mxu1 %v41906_v42  ;;  %v13344_v42 = vld [vmem:[%s45127_s3] sm:$0xff] }
 0x24e   :  { %36566 = vmatprep.mubr.f32.mxu0 %v42996_v14  ;;  %39720 = vmatprep.subr.bf16.mxu0 %v41933_v60  ;;  %v13353_v24 = vsel %vm135_vm0, %v13344_v42, 0 }
 0x24f   :  { %36608 = vmatprep.mubr.f32.mxu1 %v43001_v11  ;;  %39744 = vmatprep.subr.bf16.mxu1 %v41933_v60  ;;  %v43097_v13 = vand.u32 4294901760, %v13353_v24 }
 0x251   :  { %v43115_v21 = vsub.f32 %v13353_v24, %v43097_v13 }
 0x253   :  { %v43129_v35 = vand.u32 4294901760, %v43115_v21 }
 0x254   :  { %36567 = vmatmul.mubr.f32.vlgmr.msra.gmra.mrb[24].mxu0 %v43007_v45  ;;  %36609 = vmatmul.mubr.f32.vlgmr.msra.gmra.mrb[24].mxu1 %v43009_v48 }
 0x255   :  { %39722 = vmatpush3.bf16.msra.mxu0 %v41933_v60  ;;  %39746 = vmatpush3.bf16.msra.mxu1 %v41933_v60  ;;  %v13356_v60 = vsel %vm135_vm0, %v13345_v15, 0  ;;  %v13446_v44 = vsub.f32 %v43115_v21, %v43129_v35 }
 0x256   :  { %36573 = vmatprep.mubr.f32.mxu0 %v43014_v20  ;;  %39724 = vmatprep.subr.bf16.mxu0 %v41857_v12  ;;  %v43099_v46 = vand.u32 4294901760, %v13356_v60  ;;  %v13347_v20 = vld [vmem:[%s45127_s3 + $0x18] sm:$0xff] }
 0x257   :  { %36615 = vmatprep.mubr.f32.mxu1 %v43019_v31  ;;  %39748 = vmatprep.subr.bf16.mxu1 %v41857_v12  ;;  %v13362_v31 = vsel %vm135_vm0, %v13347_v20, 0  ;;  %v43177_v20 = vand.u32 4294901760, %v13446_v44 }
 0x258   :  { %v43118_v38 = vsub.f32 %v13356_v60, %v43099_v46  ;;  %v43146_v34 = vand.u32 4294901760, %v13362_v31  ;;  %v43172_v60 = vand.u32 4294901760, %v13368_v19 }
 0x25a   :  { %v43132_v41 = vand.u32 4294901760, %v43118_v38  ;;  %v43166_v42 = vsub.f32 %v13362_v31, %v43146_v34  ;;  %v43200_v40 = vsub.f32 %v13368_v19, %v43172_v60 }
 0x25c   :  { %36574 = vmatmul.mubr.f32.vlgmr.msra.gmra.mrb[24].mxu0 %v43024_v30  ;;  %36616 = vmatmul.mubr.f32.vlgmr.msra.gmra.mrb[24].mxu1 %v43027_v2  ;;  %v43150_v30 = vand.u32 4294901760, %v13365_v36  ;;  %v13350_v2 = vld [vmem:[%s45127_s3 + $0x30] sm:$0xff]  ;;  %v43191_v44 = vand.u32 4294901760, %v43166_v42 }
 0x25d   :  { %39726 = vmatpush3.bf16.msra.mxu0 %v41857_v12  ;;  %39750 = vmatpush3.bf16.msra.mxu1 %v41857_v12  ;;  %v13371_v15 = vsel %vm135_vm0, %v13350_v2, 0 }
 0x25e   :  { %36580 = vmatprep.mubr.f32.mxu0 %v45274_v17  ;;  %39728 = vmatprep.subr.bf16.mxu0 %v41981_v28  ;;  %v43170_v24 = vsub.f32 %v13365_v36, %v43150_v30  ;;  %v13351_v17 = vld [vmem:[%s45127_s3 + $0x38] sm:$0xff]  ;;  %v43184_v36 = vand.u32 4294901760, %v43163_v7  ;;  %v43186_v22 = vand.u32 4294901760, %v13371_v15  ;;  %s41768_s3 = smov [#allocation7]  }
 0x25f   :  { %36622 = vmatprep.mubr.f32.mxu1 %v45275_v27  ;;  %39752 = vmatprep.subr.bf16.mxu1 %v41981_v28  ;;  %s33350_s19 = sshll.u32 %s41768_s3, 4  ;;  %s33351_s19 = int_to_ptr.vmem [resolvable:$true] %s33350_s19 }
 0x260   :  { %v43197_v53 = vand.u32 4294901760, %v43170_v24  ;;  %s41736_s20 = scalar_lea.vmem %s33351_s19, 26624  ;;  %p41741_p3 = scmp.lt.s32.totalorder %s33351_s19, %s33351_s19 }
 0x261   :  { %p41737_p2 = scmp.ne.s32.totalorder %s33351_s19, %s41736_s20  ;;  %p41742_p4 = scmp.lt.s32.totalorder %s41736_s20, %s41736_s20 }
 0x263   :  { %p41743_p5 = por %p41742_p4, %p41741_p3 }
 0x264   :  { %36581 = vmatmul.mubr.f32.vlgmr.msra.gmra.mrb[24].mxu0 %v45276_v4  ;;  %36623 = vmatmul.mubr.f32.vlgmr.msra.gmra.mrb[24].mxu1 %v45277_v1 }
 0x265   :  { %39730 = vmatpush3.bf16.msra.mxu0 %v41981_v28  ;;  %39754 = vmatpush3.bf16.msra.mxu1 %v41981_v28  ;;  %v13456_v28 = vsub.f32 %v43118_v38, %v43132_v41  ;;  %p41744_p6 = pnand %p41743_p5, %p41737_p2 }
 0x266   :  { %36587 = vmatprep.mubr.f32.mxu0 %v42996_v14  ;;  %39732 = vmatprep.subr.bf16.mxu0 %v41857_v12 }
 0x267   :  { %36629 = vmatprep.mubr.f32.mxu1 %v43001_v11  ;;  %39756 = vmatprep.subr.bf16.mxu1 %v41857_v12  ;;  %v43179_v59 = vand.u32 4294901760, %v13456_v28  ;;  %v13374_v28 = vsel %vm135_vm0, %v13351_v17, 0 }
 0x268   :  { %v43211_v18 = vand.u32 4294901760, %v13374_v28 }
 0x26b   :  { %v36176_v37 = vpop.f32.mrb[14].mxu0  ;;  %v36218_v27 = vpop.f32.mrb[14].mxu1 }
 0x26c   :  { %v24020_v10 = vand.u32 4294901760, %v36176_v37  ;;  %v24780_v31 = vand.u32 4294901760, %v36218_v27  ;;  %v7746_v4 = vpop.f32.mrb[15].mxu0  ;;  %v8254_v1 = vpop.f32.mrb[15].mxu1  ;;  %36588 = vmatmul.mubr.f32.vlgmr.msra.gmra.mrb[24].mxu0 %v43007_v45  ;;  %36630 = vmatmul.mubr.f32.vlgmr.msra.gmra.mrb[24].mxu1 %v43009_v48 }
 0x26d   :  { %v24017_v2 = vand.u32 4294901760, %v7746_v4  ;;  %v24777_v49 = vand.u32 4294901760, %v8254_v1  ;;  %39734 = vmatpush3.bf16.msra.mxu0 %v41857_v12  ;;  %39758 = vmatpush3.bf16.msra.mxu1 %v41857_v12 }
 0x26e   :  { %v24172_v5 = vsub.f32 %v36176_v37, %v24020_v10  ;;  %v24932_v51 = vsub.f32 %v36218_v27, %v24780_v31  ;;  %39760 = vmatprep.subr.bf16.mxu0 %v42365_v9  ;;  %39784 = vmatprep.subr.bf16.mxu1 %v42367_v62  ;;  %v43209_v27 = vsub.f32 %v13371_v15, %v43186_v22 }
 0x26f   :  { %v43202_v47 = vpack.c.bf16 %v24020_v10, %v24017_v2  ;;  %v24165_v12 = vsub.f32 %v7746_v4, %v24017_v2  ;;  %v43204_v39 = vpack.c.bf16 %v24780_v31, %v24777_v49  ;;  %v24925_v33 = vsub.f32 %v8254_v1, %v24777_v49  ;;  %36594 = vmatprep.mubr.f32.mxu0 %v42996_v14 }
 0x270   :  { %v24173_v17 = vand.u32 4294901760, %v24172_v5  ;;  %v24933_v37 = vand.u32 4294901760, %v24932_v51  ;;  %36636 = vmatprep.mubr.f32.mxu1 %v43001_v11  ;;  %v13466_v49 = vsub.f32 %v43163_v7, %v43184_v36  ;;  %v13476_v14 = vsub.f32 %v43166_v42, %v43191_v44 }
 0x271   :  { %45278 = vst [vmem:[#allocation49_spill] sm:$0xff] %v43202_v47  ;;  %45279 = vst [vmem:[#allocation50_spill] sm:$0xff] %v43204_v39  ;;  %v24166_v58 = vand.u32 4294901760, %v24165_v12  ;;  %v24926_v19 = vand.u32 4294901760, %v24925_v33  ;;  %v43213_v25 = vpack.c.bf16 %v24172_v5, %v24165_v12  ;;  %v43215_v10 = vpack.c.bf16 %v24932_v51, %v24925_v33 }
 0x272   :  { %v24174_v31 = vsub.f32 %v24172_v5, %v24173_v17  ;;  %v24934_v4 = vsub.f32 %v24932_v51, %v24933_v37  ;;  %v43231_v5 = vsub.f32 %v13374_v28, %v43211_v18  ;;  %v43244_v28 = vand.u32 4294901760, %v13466_v49 }
 0x273   :  { %45280 = vst [vmem:[#allocation51_spill] sm:$0xff] %v43213_v25  ;;  %45281 = vst [vmem:[#allocation52_spill] sm:$0xff] %v43215_v10  ;;  %v24167_v11 = vsub.f32 %v24165_v12, %v24166_v58  ;;  %v24927_v1 = vsub.f32 %v24925_v33, %v24926_v19  ;;  %v43221_v15 = vpack.c.bf16 %v24173_v17, %v24166_v58  ;;  %v43228_v10 = vand.u32 4294901760, %v43200_v40 }
 0x274   :  { %v43223_v2 = vpack.c.bf16 %v24933_v37, %v24926_v19  ;;  %36595 = vmatmul.mubr.f32.vlgmr.msra.gmra.mrb[24].mxu0 %v43007_v45  ;;  %36637 = vmatmul.mubr.f32.vlgmr.msra.gmra.mrb[24].mxu1 %v43009_v48  ;;  %v24175_v51 = vand.u32 4294901760, %v24174_v31  ;;  %v24935_v25 = vand.u32 4294901760, %v24934_v4  ;;  %v13486_v58 = vsub.f32 %v43170_v24, %v43197_v53 }
 0x275   :  { %45282 = vst [vmem:[#allocation53_spill] sm:$0xff] %v43221_v15  ;;  %39762 = vmatpush3.bf16.msra.mxu0 %v42365_v9  ;;  %39786 = vmatpush3.bf16.msra.mxu1 %v42367_v62  ;;  %v43238_v33 = vand.u32 4294901760, %v43209_v27  ;;  %v24168_v45 = vand.u32 4294901760, %v24167_v11  ;;  %v24928_v48 = vand.u32 4294901760, %v24927_v1  ;;  %v43252_v37 = vand.u32 4294901760, %v13476_v14 }
 0x276   :  { %45283 = vst [vmem:[#allocation54_spill] sm:$0xff] %v43223_v2  ;;  %39764 = vmatprep.subr.bf16.mxu0 %v42385_v23  ;;  %39788 = vmatprep.subr.bf16.mxu1 %v42387_v32  ;;  %v13496_v19 = vsub.f32 %v43200_v40, %v43228_v10  ;;  %v43257_v31 = vand.u32 4294901760, %v43231_v5  ;;  %v43261_v4 = vand.u32 4294901760, %v13486_v58 }
 0x277   :  { %36643 = vmatprep.mubr.f32.mxu0 %v43177_v20  ;;  %36739 = vmatprep.mubr.f32.mxu1 %v43177_v20  ;;  %v43246_v12 = vpack.c.bf16 %v24175_v51, %v24168_v45  ;;  %v43248_v17 = vpack.c.bf16 %v24935_v25, %v24928_v48  ;;  %v13506_v25 = vsub.f32 %v43209_v27, %v43238_v33 }
 0x278   :  { %36644 = vmatmul.mubr.f32.vlgmr.msra.gmra.mrb[26].mxu0 %v43179_v59  ;;  %36740 = vmatmul.mubr.f32.vlgmr.msra.gmra.mrb[26].mxu1 %v43179_v59 }
 0x279   :  { %45284 = vst [vmem:[#allocation55_spill] sm:$0xff] %v43246_v12  ;;  %45285 = vst [vmem:[#allocation56_spill] sm:$0xff] %v43248_v17  ;;  %39766 = vmatpush3.bf16.msra.mxu0 %v42385_v23  ;;  %39790 = vmatpush3.bf16.msra.mxu1 %v42387_v32  ;;  %v43271_v23 = vand.u32 4294901760, %v13496_v19  ;;  %v13516_v32 = vsub.f32 %v43231_v5, %v43257_v31  ;;  %v43277_v49 = vand.u32 4294901760, %v13506_v25 }
 0x27a   :  { %39768 = vmatprep.subr.bf16.mxu0 %v42382_v54  ;;  %39792 = vmatprep.subr.bf16.mxu1 %v42389_v55 }
 0x27b   :  { %36646 = vmatprep.mubr.f32.mxu0 %v43244_v28  ;;  %36742 = vmatprep.mubr.f32.mxu1 %v43244_v28  ;;  %v43281_v14 = vand.u32 4294901760, %v13516_v32 }
 0x27c   :  { %36647 = vmatmul.mubr.f32.gmra.mrb[28].mxu0 %v43252_v37  ;;  %36743 = vmatmul.mubr.f32.gmra.mrb[28].mxu1 %v43252_v37 }
 0x27d   :  { %36649 = vmatprep.mubr.f32.mxu0 %v43261_v4  ;;  %36745 = vmatprep.mubr.f32.mxu1 %v43261_v4 }
 0x280   :  { %36650 = vmatmul.mubr.f32.gmra.mrb[30].mxu0 %v43271_v23  ;;  %36746 = vmatmul.mubr.f32.gmra.mrb[30].mxu1 %v43271_v23 }
 0x281   :  { %36652 = vmatprep.mubr.f32.mxu0 %v43277_v49  ;;  %36748 = vmatprep.mubr.f32.mxu1 %v43277_v49 }
 0x284   :  { %36653 = vmatmul.mubr.f32.gmra.mrb[32].mxu0 %v43281_v14  ;;  %36749 = vmatmul.mubr.f32.gmra.mrb[32].mxu1 %v43281_v14 }
 0x285   :  { %36659 = vmatprep.mubr.f32.mxu0 %v43097_v13  ;;  %36755 = vmatprep.mubr.f32.mxu1 %v43097_v13 }
 0x288   :  { %36660 = vmatmul.mubr.f32.vlgmr.msra.gmra.mrb[26].mxu0 %v43099_v46  ;;  %36756 = vmatmul.mubr.f32.vlgmr.msra.gmra.mrb[26].mxu1 %v43099_v46 }
 0x289   :  { %39770 = vmatpush3.bf16.msra.mxu0 %v42382_v54  ;;  %39794 = vmatpush3.bf16.msra.mxu1 %v42389_v55 }
 0x28a   :  { %39772 = vmatprep.subr.bf16.mxu0 %v42365_v9  ;;  %39796 = vmatprep.subr.bf16.mxu1 %v42367_v62 }
 0x28b   :  { %36662 = vmatprep.mubr.f32.mxu0 %v43139_v61  ;;  %36758 = vmatprep.mubr.f32.mxu1 %v43139_v61 }
 0x28c   :  { %36663 = vmatmul.mubr.f32.gmra.mrb[28].mxu0 %v43146_v34  ;;  %36759 = vmatmul.mubr.f32.gmra.mrb[28].mxu1 %v43146_v34 }
 0x28d   :  { %36665 = vmatprep.mubr.f32.mxu0 %v43150_v30  ;;  %36761 = vmatprep.mubr.f32.mxu1 %v43150_v30 }
 0x290   :  { %36666 = vmatmul.mubr.f32.gmra.mrb[30].mxu0 %v43172_v60  ;;  %36762 = vmatmul.mubr.f32.gmra.mrb[30].mxu1 %v43172_v60 }
 0x291   :  { %36668 = vmatprep.mubr.f32.mxu0 %v43186_v22  ;;  %36764 = vmatprep.mubr.f32.mxu1 %v43186_v22 }
 0x294   :  { %36669 = vmatmul.mubr.f32.gmra.mrb[32].mxu0 %v43211_v18  ;;  %36765 = vmatmul.mubr.f32.gmra.mrb[32].mxu1 %v43211_v18 }
 0x295   :  { %36675 = vmatprep.mubr.f32.mxu0 %v43115_v21  ;;  %36771 = vmatprep.mubr.f32.mxu1 %v43115_v21 }
 0x297   :  { %v36260_v54 = vpop.f32.mrb[16].mxu0  ;;  %v36302_v55 = vpop.f32.mrb[16].mxu1 }
 0x298   :  { %v25540_v11 = vand.u32 4294901760, %v36260_v54  ;;  %v26300_v1 = vand.u32 4294901760, %v36302_v55  ;;  %v8762_v51 = vpop.f32.mrb[17].mxu0  ;;  %v9270_v58 = vpop.f32.mrb[17].mxu1  ;;  %36676 = vmatmul.mubr.f32.vlgmr.msra.gmra.mrb[26].mxu0 %v43118_v38  ;;  %36772 = vmatmul.mubr.f32.vlgmr.msra.gmra.mrb[26].mxu1 %v43118_v38 }
 0x299   :  { %v25537_v45 = vand.u32 4294901760, %v8762_v51  ;;  %v26297_v48 = vand.u32 4294901760, %v9270_v58  ;;  %39774 = vmatpush3.bf16.msra.mxu0 %v42365_v9  ;;  %39798 = vmatpush3.bf16.msra.mxu1 %v42367_v62 }
 0x29a   :  { %v25692_v19 = vsub.f32 %v36260_v54, %v25540_v11  ;;  %v26452_v25 = vsub.f32 %v36302_v55, %v26300_v1  ;;  %39776 = vmatprep.subr.bf16.mxu0 %v42393_v56  ;;  %39800 = vmatprep.subr.bf16.mxu1 %v42395_v57 }
 0x29b   :  { %v43315_v32 = vpack.c.bf16 %v25540_v11, %v25537_v45  ;;  %v25685_v2 = vsub.f32 %v8762_v51, %v25537_v45  ;;  %v43317_v15 = vpack.c.bf16 %v26300_v1, %v26297_v48  ;;  %v26445_v17 = vsub.f32 %v9270_v58, %v26297_v48  ;;  %36678 = vmatprep.mubr.f32.mxu0 %v43163_v7 }
 0x29c   :  { %v25693_v12 = vand.u32 4294901760, %v25692_v19  ;;  %v26453_v39 = vand.u32 4294901760, %v26452_v25  ;;  %36774 = vmatprep.mubr.f32.mxu1 %v43163_v7  ;;  %36679 = vmatmul.mubr.f32.gmra.mrb[28].mxu0 %v43166_v42 }
 0x29d   :  { %45286 = vst [vmem:[#allocation57_spill] sm:$0xff] %v43315_v32  ;;  %45287 = vst [vmem:[#allocation58_spill] sm:$0xff] %v43317_v15  ;;  %v25686_v54 = vand.u32 4294901760, %v25685_v2  ;;  %v26446_v55 = vand.u32 4294901760, %v26445_v17  ;;  %36775 = vmatmul.mubr.f32.gmra.mrb[28].mxu1 %v43166_v42  ;;  %36681 = vmatprep.mubr.f32.mxu0 %v43170_v24  ;;  %v43324_v11 = vpack.c.bf16 %v25692_v19, %v25685_v2 }
 0x29e   :  { %v43326_v51 = vpack.c.bf16 %v26452_v25, %v26445_v17  ;;  %v25694_v1 = vsub.f32 %v25692_v19, %v25693_v12  ;;  %v26454_v58 = vsub.f32 %v26452_v25, %v26453_v39  ;;  %36777 = vmatprep.mubr.f32.mxu1 %v43170_v24 }
 0x29f   :  { %45288 = vst [vmem:[#allocation59_spill] sm:$0xff] %v43324_v11  ;;  %v25687_v45 = vsub.f32 %v25685_v2, %v25686_v54  ;;  %v26447_v48 = vsub.f32 %v26445_v17, %v26446_v55  ;;  %v43329_v15 = vpack.c.bf16 %v25693_v12, %v25686_v54  ;;  %v43331_v32 = vpack.c.bf16 %v26453_v39, %v26446_v55 }
 0x2a0   :  { %45289 = vst [vmem:[#allocation60_spill] sm:$0xff] %v43326_v51  ;;  %36682 = vmatmul.mubr.f32.gmra.mrb[30].mxu0 %v43200_v40  ;;  %v25695_v47 = vand.u32 4294901760, %v25694_v1  ;;  %v26455_v63 = vand.u32 4294901760, %v26454_v58 }
 0x2a1   :  { %36778 = vmatmul.mubr.f32.gmra.mrb[30].mxu1 %v43200_v40  ;;  %36684 = vmatprep.mubr.f32.mxu0 %v43209_v27  ;;  %v25688_v11 = vand.u32 4294901760, %v25687_v45  ;;  %v26448_v51 = vand.u32 4294901760, %v26447_v48 }
 0x2a2   :  { %36780 = vmatprep.mubr.f32.mxu1 %v43209_v27 }
 0x2a3   :  { %v43337_v19 = vpack.c.bf16 %v25695_v47, %v25688_v11  ;;  %v43339_v2 = vpack.c.bf16 %v26455_v63, %v26448_v51 }
 0x2a4   :  { %36685 = vmatmul.mubr.f32.gmra.mrb[32].mxu0 %v43231_v5 }
 0x2a5   :  { %36781 = vmatmul.mubr.f32.gmra.mrb[32].mxu1 %v43231_v5  ;;  %36691 = vmatprep.mubr.f32.mxu0 %v43129_v35 }
 0x2a6   :  { %36787 = vmatprep.mubr.f32.mxu1 %v43129_v35 }
 0x2a8   :  { %36692 = vmatmul.mubr.f32.vlgmr.msra.gmra.mrb[26].mxu0 %v43132_v41 }
 0x2a9   :  { %39778 = vmatpush3.bf16.msra.mxu0 %v42393_v56  ;;  %36788 = vmatmul.mubr.f32.vlgmr.msra.gmra.mrb[26].mxu1 %v43132_v41 }
 0x2aa   :  { %39802 = vmatpush3.bf16.msra.mxu1 %v42395_v57  ;;  %39780 = vmatprep.subr.bf16.mxu0 %v42365_v9 }
 0x2ab   :  { %39804 = vmatprep.subr.bf16.mxu1 %v42367_v62  ;;  %36694 = vmatprep.mubr.f32.mxu0 %v43184_v36 }
 0x2ac   :  { %36790 = vmatprep.mubr.f32.mxu1 %v43184_v36  ;;  %36695 = vmatmul.mubr.f32.gmra.mrb[28].mxu0 %v43191_v44 }
 0x2ad   :  { %36791 = vmatmul.mubr.f32.gmra.mrb[28].mxu1 %v43191_v44  ;;  %36697 = vmatprep.mubr.f32.mxu0 %v43197_v53 }
 0x2ae   :  { %36793 = vmatprep.mubr.f32.mxu1 %v43197_v53 }
 0x2b0   :  { %36698 = vmatmul.mubr.f32.gmra.mrb[30].mxu0 %v43228_v10 }
 0x2b1   :  { %36794 = vmatmul.mubr.f32.gmra.mrb[30].mxu1 %v43228_v10  ;;  %36700 = vmatprep.mubr.f32.mxu0 %v43238_v33 }
 0x2b2   :  { %36796 = vmatprep.mubr.f32.mxu1 %v43238_v33 }
 0x2b4   :  { %36701 = vmatmul.mubr.f32.gmra.mrb[32].mxu0 %v43257_v31 }
 0x2b5   :  { %36797 = vmatmul.mubr.f32.gmra.mrb[32].mxu1 %v43257_v31  ;;  %36707 = vmatprep.mubr.f32.mxu0 %v43097_v13 }
 0x2b6   :  { %36803 = vmatprep.mubr.f32.mxu1 %v43097_v13 }
 0x2b8   :  { %36708 = vmatmul.mubr.f32.vlgmr.msra.gmra.mrb[26].mxu0 %v43099_v46 }
 0x2b9   :  { %39782 = vmatpush3.bf16.msra.mxu0 %v42365_v9  ;;  %36804 = vmatmul.mubr.f32.vlgmr.msra.gmra.mrb[26].mxu1 %v43099_v46 }
 0x2ba   :  { %39806 = vmatpush3.bf16.msra.mxu1 %v42367_v62  ;;  %39808 = vmatprep.subr.bf16.mxu0 %v42495_v26 }
 0x2bb   :  { %39832 = vmatprep.subr.bf16.mxu1 %v42497_v29  ;;  %36710 = vmatprep.mubr.f32.mxu0 %v43139_v61 }
 0x2bc   :  { %36806 = vmatprep.mubr.f32.mxu1 %v43139_v61  ;;  %36711 = vmatmul.mubr.f32.gmra.mrb[28].mxu0 %v43146_v34 }
 0x2bd   :  { %36807 = vmatmul.mubr.f32.gmra.mrb[28].mxu1 %v43146_v34  ;;  %36713 = vmatprep.mubr.f32.mxu0 %v43150_v30 }
 0x2be   :  { %36809 = vmatprep.mubr.f32.mxu1 %v43150_v30 }
 0x2c0   :  { %36714 = vmatmul.mubr.f32.gmra.mrb[30].mxu0 %v43172_v60 }
 0x2c1   :  { %36810 = vmatmul.mubr.f32.gmra.mrb[30].mxu1 %v43172_v60  ;;  %36716 = vmatprep.mubr.f32.mxu0 %v43186_v22 }
 0x2c2   :  { %36812 = vmatprep.mubr.f32.mxu1 %v43186_v22 }
 0x2c3   :  { %v36344_v9 = vpop.f32.mrb[18].mxu0  ;;  %v36386_v62 = vpop.f32.mrb[18].mxu1 }
 0x2c4   :  { %v27060_v56 = vand.u32 4294901760, %v36344_v9  ;;  %v27820_v57 = vand.u32 4294901760, %v36386_v62  ;;  %v9778_v63 = vpop.f32.mrb[19].mxu0  ;;  %v10286_v39 = vpop.f32.mrb[19].mxu1  ;;  %36717 = vmatmul.mubr.f32.gmra.mrb[32].mxu0 %v43211_v18 }
 0x2c5   :  { %v27057_v47 = vand.u32 4294901760, %v9778_v63  ;;  %v27817_v12 = vand.u32 4294901760, %v10286_v39  ;;  %36813 = vmatmul.mubr.f32.gmra.mrb[32].mxu1 %v43211_v18  ;;  %36723 = vmatprep.mubr.f32.mxu0 %v43097_v13 }
 0x2c6   :  { %v27212_v17 = vsub.f32 %v36344_v9, %v27060_v56  ;;  %v27972_v25 = vsub.f32 %v36386_v62, %v27820_v57  ;;  %36819 = vmatprep.mubr.f32.mxu1 %v43097_v13 }
 0x2c7   :  { %v43385_v54 = vpack.c.bf16 %v27060_v56, %v27057_v47  ;;  %v27205_v55 = vsub.f32 %v9778_v63, %v27057_v47  ;;  %v43387_v11 = vpack.c.bf16 %v27820_v57, %v27817_v12  ;;  %v27965_v51 = vsub.f32 %v10286_v39, %v27817_v12 }
 0x2c8   :  { %v27213_v1 = vand.u32 4294901760, %v27212_v17  ;;  %v27973_v58 = vand.u32 4294901760, %v27972_v25  ;;  %36724 = vmatmul.mubr.f32.vlgmr.msra.gmra.mrb[26].mxu0 %v43099_v46 }
 0x2c9   :  { %45290 = vst [vmem:[#allocation61_spill] sm:$0xff] %v43385_v54  ;;  %v27206_v45 = vand.u32 4294901760, %v27205_v55  ;;  %v27966_v48 = vand.u32 4294901760, %v27965_v51  ;;  %36820 = vmatmul.mubr.f32.vlgmr.msra.gmra.mrb[26].mxu1 %v43099_v46  ;;  %39810 = vmatpush3.bf16.msra.mxu0 %v42495_v26  ;;  %v43392_v9 = vpack.c.bf16 %v27212_v17, %v27205_v55  ;;  %v43394_v62 = vpack.c.bf16 %v27972_v25, %v27965_v51 }
 0x2ca   :  { %v27214_v56 = vsub.f32 %v27212_v17, %v27213_v1  ;;  %v27974_v54 = vsub.f32 %v27972_v25, %v27973_v58  ;;  %39834 = vmatpush3.bf16.msra.mxu1 %v42497_v29  ;;  %39812 = vmatprep.subr.bf16.mxu0 %v42515_v0 }
 0x2cb   :  { %45291 = vst [vmem:[#allocation62_spill] sm:$0xff] %v43394_v62  ;;  %v27207_v57 = vsub.f32 %v27205_v55, %v27206_v45  ;;  %v27967_v63 = vsub.f32 %v27965_v51, %v27966_v48  ;;  %39836 = vmatprep.subr.bf16.mxu1 %v42517_v6  ;;  %36726 = vmatprep.mubr.f32.mxu0 %v43139_v61 }
 0x2cc   :  { %v43400_v39 = vpack.c.bf16 %v27213_v1, %v27206_v45  ;;  %36822 = vmatprep.mubr.f32.mxu1 %v43139_v61  ;;  %36727 = vmatmul.mubr.f32.gmra.mrb[28].mxu0 %v43146_v34  ;;  %v27215_v47 = vand.u32 4294901760, %v27214_v56  ;;  %v27975_v12 = vand.u32 4294901760, %v27974_v54  ;;  %v43404_v17 = vpack.c.bf16 %v27973_v58, %v27966_v48 }
 0x2cd   :  { %36823 = vmatmul.mubr.f32.gmra.mrb[28].mxu1 %v43146_v34  ;;  %36729 = vmatprep.mubr.f32.mxu0 %v43150_v30  ;;  %v27208_v25 = vand.u32 4294901760, %v27207_v57  ;;  %v27968_v55 = vand.u32 4294901760, %v27967_v63 }
 0x2ce   :  { %45292 = vst [vmem:[#allocation63_spill] sm:$0xff] %v43400_v39  ;;  %45293 = vst [vmem:[#allocation64_spill] sm:$0xff] %v43404_v17  ;;  %36825 = vmatprep.mubr.f32.mxu1 %v43150_v30 }
 0x2cf   :  { %v43409_v51 = vpack.c.bf16 %v27215_v47, %v27208_v25  ;;  %v43411_v1 = vpack.c.bf16 %v27975_v12, %v27968_v55 }
 0x2d0   :  { %36730 = vmatmul.mubr.f32.gmra.mrb[30].mxu0 %v43172_v60 }
 0x2d1   :  { %36826 = vmatmul.mubr.f32.gmra.mrb[30].mxu1 %v43172_v60  ;;  %36732 = vmatprep.mubr.f32.mxu0 %v43186_v22 }
 0x2d2   :  { %36828 = vmatprep.mubr.f32.mxu1 %v43186_v22 }
 0x2d4   :  { %36733 = vmatmul.mubr.f32.gmra.mrb[32].mxu0 %v43211_v18 }
 0x2d5   :  { %36829 = vmatmul.mubr.f32.gmra.mrb[32].mxu1 %v43211_v18  ;;  %36835 = vmatprep.mubr.f32.mxu0 %v43177_v20 }
 0x2d6   :  { %36931 = vmatprep.mubr.f32.mxu1 %v43177_v20 }
 0x2d8   :  { %36836 = vmatmul.mubr.f32.vlgmr.msra.gmra.mrb[34].mxu0 %v43179_v59 }
 0x2d9   :  { %39814 = vmatpush3.bf16.msra.mxu0 %v42515_v0  ;;  %36932 = vmatmul.mubr.f32.vlgmr.msra.gmra.mrb[34].mxu1 %v43179_v59 }
 0x2da   :  { %39838 = vmatpush3.bf16.msra.mxu1 %v42517_v6  ;;  %39816 = vmatprep.subr.bf16.mxu0 %v42512_v50 }
 0x2db   :  { %39840 = vmatprep.subr.bf16.mxu1 %v42519_v52  ;;  %36838 = vmatprep.mubr.f32.mxu0 %v43244_v28 }
 0x2dc   :  { %36934 = vmatprep.mubr.f32.mxu1 %v43244_v28  ;;  %36839 = vmatmul.mubr.f32.gmra.mrb[36].mxu0 %v43252_v37 }
 0x2dd   :  { %36935 = vmatmul.mubr.f32.gmra.mrb[36].mxu1 %v43252_v37  ;;  %36841 = vmatprep.mubr.f32.mxu0 %v43261_v4 }
 0x2de   :  { %36937 = vmatprep.mubr.f32.mxu1 %v43261_v4 }
 0x2e0   :  { %36842 = vmatmul.mubr.f32.gmra.mrb[38].mxu0 %v43271_v23 }
 0x2e1   :  { %36938 = vmatmul.mubr.f32.gmra.mrb[38].mxu1 %v43271_v23  ;;  %36844 = vmatprep.mubr.f32.mxu0 %v43277_v49 }
 0x2e2   :  { %36940 = vmatprep.mubr.f32.mxu1 %v43277_v49 }
 0x2e4   :  { %36845 = vmatmul.mubr.f32.gmra.mrb[40].mxu0 %v43281_v14 }
 0x2e5   :  { %36941 = vmatmul.mubr.f32.gmra.mrb[40].mxu1 %v43281_v14  ;;  %36851 = vmatprep.mubr.f32.mxu0 %v43097_v13 }
 0x2e6   :  { %36947 = vmatprep.mubr.f32.mxu1 %v43097_v13 }
 0x2e8   :  { %36852 = vmatmul.mubr.f32.vlgmr.msra.gmra.mrb[34].mxu0 %v43099_v46 }
 0x2e9   :  { %39818 = vmatpush3.bf16.msra.mxu0 %v42512_v50  ;;  %36948 = vmatmul.mubr.f32.vlgmr.msra.gmra.mrb[34].mxu1 %v43099_v46 }
 0x2ea   :  { %39842 = vmatpush3.bf16.msra.mxu1 %v42519_v52  ;;  %39820 = vmatprep.subr.bf16.mxu0 %v42495_v26 }
 0x2eb   :  { %39844 = vmatprep.subr.bf16.mxu1 %v42497_v29  ;;  %36854 = vmatprep.mubr.f32.mxu0 %v43139_v61 }
 0x2ec   :  { %36950 = vmatprep.mubr.f32.mxu1 %v43139_v61  ;;  %36855 = vmatmul.mubr.f32.gmra.mrb[36].mxu0 %v43146_v34 }
 0x2ed   :  { %36951 = vmatmul.mubr.f32.gmra.mrb[36].mxu1 %v43146_v34  ;;  %36857 = vmatprep.mubr.f32.mxu0 %v43150_v30 }
 0x2ee   :  { %36953 = vmatprep.mubr.f32.mxu1 %v43150_v30 }
 0x2ef   :  { %v36428_v50 = vpop.f32.mrb[20].mxu0  ;;  %v36470_v0 = vpop.f32.mrb[20].mxu1 }
 0x2f0   :  { %v28580_v6 = vand.u32 4294901760, %v36428_v50  ;;  %v29340_v52 = vand.u32 4294901760, %v36470_v0  ;;  %v10794_v54 = vpop.f32.mrb[21].mxu0  ;;  %v11302_v58 = vpop.f32.mrb[21].mxu1  ;;  %36858 = vmatmul.mubr.f32.gmra.mrb[38].mxu0 %v43172_v60 }
 0x2f1   :  { %v28577_v45 = vand.u32 4294901760, %v10794_v54  ;;  %v29337_v48 = vand.u32 4294901760, %v11302_v58  ;;  %36954 = vmatmul.mubr.f32.gmra.mrb[38].mxu1 %v43172_v60  ;;  %36860 = vmatprep.mubr.f32.mxu0 %v43186_v22 }
 0x2f2   :  { %v28732_v56 = vsub.f32 %v36428_v50, %v28580_v6  ;;  %v29492_v57 = vsub.f32 %v36470_v0, %v29340_v52  ;;  %36956 = vmatprep.mubr.f32.mxu1 %v43186_v22 }
 0x2f3   :  { %v43457_v63 = vpack.c.bf16 %v28580_v6, %v28577_v45  ;;  %v28725_v47 = vsub.f32 %v10794_v54, %v28577_v45  ;;  %v43459_v12 = vpack.c.bf16 %v29340_v52, %v29337_v48  ;;  %v29485_v25 = vsub.f32 %v11302_v58, %v29337_v48 }
 0x2f4   :  { %v28733_v55 = vand.u32 4294901760, %v28732_v56  ;;  %v29493_v17 = vand.u32 4294901760, %v29492_v57  ;;  %36861 = vmatmul.mubr.f32.gmra.mrb[40].mxu0 %v43211_v18 }
 0x2f5   :  { %45294 = vst [vmem:[#allocation65_spill] sm:$0xff] %v43457_v63  ;;  %45295 = vst [vmem:[#allocation66_spill] sm:$0xff] %v43459_v12  ;;  %v28726_v39 = vand.u32 4294901760, %v28725_v47  ;;  %v29486_v62 = vand.u32 4294901760, %v29485_v25  ;;  %36957 = vmatmul.mubr.f32.gmra.mrb[40].mxu1 %v43211_v18  ;;  %36867 = vmatprep.mubr.f32.mxu0 %v43115_v21  ;;  %v43464_v50 = vpack.c.bf16 %v28732_v56, %v28725_v47 }
 0x2f6   :  { %v43466_v0 = vpack.c.bf16 %v29492_v57, %v29485_v25  ;;  %v28734_v6 = vsub.f32 %v28732_v56, %v28733_v55  ;;  %v29494_v63 = vsub.f32 %v29492_v57, %v29493_v17  ;;  %36963 = vmatprep.mubr.f32.mxu1 %v43115_v21  ;;  %v45300_v56 = vld [vmem:[#allocation11_spill] sm:$0xff]  ;;  %v45301_v57 = vld [vmem:[#allocation12_spill] sm:$0xff] }
 0x2f7   :  { %45296 = vst [vmem:[#allocation67_spill] sm:$0xff] %v43464_v50  ;;  %v28727_v52 = vsub.f32 %v28725_v47, %v28726_v39  ;;  %v29487_v54 = vsub.f32 %v29485_v25, %v29486_v62  ;;  %v43469_v58 = vpack.c.bf16 %v28733_v55, %v28726_v39  ;;  %v43471_v45 = vpack.c.bf16 %v29493_v17, %v29486_v62  ;;  %v45304_v17 = vld [vmem:[#allocation13_spill] sm:$0xff] }
 0x2f8   :  { %45297 = vst [vmem:[#allocation68_spill] sm:$0xff] %v43466_v0  ;;  %36868 = vmatmul.mubr.f32.vlgmr.msra.gmra.mrb[34].mxu0 %v43118_v38  ;;  %v28735_v48 = vand.u32 4294901760, %v28734_v6  ;;  %v29495_v12 = vand.u32 4294901760, %v29494_v63  ;;  %v45305_v63 = vld [vmem:[#allocation14_spill] sm:$0xff] }
 0x2f9   :  { %45298 = vst [vmem:[#allocation69_spill] sm:$0xff] %v43469_v58  ;;  %45299 = vst [vmem:[#allocation70_spill] sm:$0xff] %v43471_v45  ;;  %39822 = vmatpush3.bf16.msra.mxu0 %v42495_v26  ;;  %36964 = vmatmul.mubr.f32.vlgmr.msra.gmra.mrb[34].mxu1 %v43118_v38  ;;  %v28728_v50 = vand.u32 4294901760, %v28727_v52  ;;  %v29488_v0 = vand.u32 4294901760, %v29487_v54 }
 0x2fa   :  { %39846 = vmatpush3.bf16.msra.mxu1 %v42497_v29  ;;  %39824 = vmatprep.subr.bf16.mxu0 %v45300_v56 }
 0x2fb   :  { %39848 = vmatprep.subr.bf16.mxu1 %v45301_v57  ;;  %36870 = vmatprep.mubr.f32.mxu0 %v43163_v7  ;;  %v43480_v62 = vpack.c.bf16 %v28735_v48, %v28728_v50  ;;  %v43482_v39 = vpack.c.bf16 %v29495_v12, %v29488_v0 }
 0x2fc   :  { %36966 = vmatprep.mubr.f32.mxu1 %v43163_v7  ;;  %36871 = vmatmul.mubr.f32.gmra.mrb[36].mxu0 %v43166_v42 }
 0x2fd   :  { %45302 = vst [vmem:[#allocation11_spill] sm:$0xff] %v43480_v62  ;;  %45303 = vst [vmem:[#allocation12_spill] sm:$0xff] %v43482_v39  ;;  %36967 = vmatmul.mubr.f32.gmra.mrb[36].mxu1 %v43166_v42  ;;  %36873 = vmatprep.mubr.f32.mxu0 %v43170_v24 }
 0x2fe   :  { %36969 = vmatprep.mubr.f32.mxu1 %v43170_v24 }
 0x300   :  { %36874 = vmatmul.mubr.f32.gmra.mrb[38].mxu0 %v43200_v40 }
 0x301   :  { %36970 = vmatmul.mubr.f32.gmra.mrb[38].mxu1 %v43200_v40  ;;  %36876 = vmatprep.mubr.f32.mxu0 %v43209_v27 }
 0x302   :  { %36972 = vmatprep.mubr.f32.mxu1 %v43209_v27 }
 0x304   :  { %36877 = vmatmul.mubr.f32.gmra.mrb[40].mxu0 %v43231_v5 }
 0x305   :  { %36973 = vmatmul.mubr.f32.gmra.mrb[40].mxu1 %v43231_v5  ;;  %36883 = vmatprep.mubr.f32.mxu0 %v43129_v35 }
 0x306   :  { %36979 = vmatprep.mubr.f32.mxu1 %v43129_v35 }
 0x308   :  { %36884 = vmatmul.mubr.f32.vlgmr.msra.gmra.mrb[34].mxu0 %v43132_v41 }
 0x309   :  { %39826 = vmatpush3.bf16.msra.mxu0 %v45300_v56  ;;  %36980 = vmatmul.mubr.f32.vlgmr.msra.gmra.mrb[34].mxu1 %v43132_v41 }
 0x30a   :  { %39850 = vmatpush3.bf16.msra.mxu1 %v45301_v57  ;;  %39828 = vmatprep.subr.bf16.mxu0 %v42495_v26 }
 0x30b   :  { %39852 = vmatprep.subr.bf16.mxu1 %v42497_v29  ;;  %36886 = vmatprep.mubr.f32.mxu0 %v43184_v36 }
 0x30c   :  { %36982 = vmatprep.mubr.f32.mxu1 %v43184_v36  ;;  %36887 = vmatmul.mubr.f32.gmra.mrb[36].mxu0 %v43191_v44 }
 0x30d   :  { %36983 = vmatmul.mubr.f32.gmra.mrb[36].mxu1 %v43191_v44  ;;  %36889 = vmatprep.mubr.f32.mxu0 %v43197_v53 }
 0x30e   :  { %36985 = vmatprep.mubr.f32.mxu1 %v43197_v53 }
 0x310   :  { %36890 = vmatmul.mubr.f32.gmra.mrb[38].mxu0 %v43228_v10 }
 0x311   :  { %36986 = vmatmul.mubr.f32.gmra.mrb[38].mxu1 %v43228_v10  ;;  %36892 = vmatprep.mubr.f32.mxu0 %v43238_v33 }
 0x312   :  { %36988 = vmatprep.mubr.f32.mxu1 %v43238_v33 }
 0x314   :  { %36893 = vmatmul.mubr.f32.gmra.mrb[40].mxu0 %v43257_v31 }
 0x315   :  { %36989 = vmatmul.mubr.f32.gmra.mrb[40].mxu1 %v43257_v31  ;;  %36899 = vmatprep.mubr.f32.mxu0 %v43097_v13 }
 0x316   :  { %36995 = vmatprep.mubr.f32.mxu1 %v43097_v13 }
 0x318   :  { %36900 = vmatmul.mubr.f32.vlgmr.msra.gmra.mrb[34].mxu0 %v43099_v46 }
 0x319   :  { %39830 = vmatpush3.bf16.msra.mxu0 %v42495_v26  ;;  %36996 = vmatmul.mubr.f32.vlgmr.msra.gmra.mrb[34].mxu1 %v43099_v46 }
 0x31a   :  { %39854 = vmatpush3.bf16.msra.mxu1 %v42497_v29  ;;  %39856 = vmatprep.subr.bf16.mxu0 %v45304_v17 }
 0x31b   :  { %39880 = vmatprep.subr.bf16.mxu1 %v45305_v63  ;;  %v36512_v47 = vpop.f32.mrb[22].mxu0  ;;  %v36554_v12 = vpop.f32.mrb[22].mxu1  ;;  %36902 = vmatprep.mubr.f32.mxu0 %v43139_v61 }
 0x31c   :  { %v30100_v25 = vand.u32 4294901760, %v36512_v47  ;;  %v30860_v55 = vand.u32 4294901760, %v36554_v12  ;;  %36998 = vmatprep.mubr.f32.mxu1 %v43139_v61  ;;  %v11810_v50 = vpop.f32.mrb[23].mxu0  ;;  %v12318_v0 = vpop.f32.mrb[23].mxu1  ;;  %36903 = vmatmul.mubr.f32.gmra.mrb[36].mxu0 %v43146_v34 }
 0x31d   :  { %v30097_v26 = vand.u32 4294901760, %v11810_v50  ;;  %v30857_v6 = vand.u32 4294901760, %v12318_v0  ;;  %36999 = vmatmul.mubr.f32.gmra.mrb[36].mxu1 %v43146_v34  ;;  %36905 = vmatprep.mubr.f32.mxu0 %v43150_v30 }
 0x31e   :  { %v30252_v29 = vsub.f32 %v36512_v47, %v30100_v25  ;;  %v31012_v52 = vsub.f32 %v36554_v12, %v30860_v55  ;;  %37001 = vmatprep.mubr.f32.mxu1 %v43150_v30 }
 0x31f   :  { %v43529_v54 = vpack.c.bf16 %v30100_v25, %v30097_v26  ;;  %v30245_v48 = vsub.f32 %v11810_v50, %v30097_v26  ;;  %v43531_v56 = vpack.c.bf16 %v30860_v55, %v30857_v6  ;;  %v31005_v57 = vsub.f32 %v12318_v0, %v30857_v6 }
 0x320   :  { %v30253_v45 = vand.u32 4294901760, %v30252_v29  ;;  %v31013_v58 = vand.u32 4294901760, %v31012_v52  ;;  %36906 = vmatmul.mubr.f32.gmra.mrb[38].mxu0 %v43172_v60 }
 0x321   :  { %45306 = vst [vmem:[#allocation13_spill] sm:$0xff] %v43529_v54  ;;  %45307 = vst [vmem:[#allocation14_spill] sm:$0xff] %v43531_v56  ;;  %v30246_v39 = vand.u32 4294901760, %v30245_v48  ;;  %v31006_v62 = vand.u32 4294901760, %v31005_v57  ;;  %37002 = vmatmul.mubr.f32.gmra.mrb[38].mxu1 %v43172_v60  ;;  %36908 = vmatprep.mubr.f32.mxu0 %v43186_v22  ;;  %v43536_v47 = vpack.c.bf16 %v30252_v29, %v30245_v48 }
 0x322   :  { %v43538_v12 = vpack.c.bf16 %v31012_v52, %v31005_v57  ;;  %v30254_v25 = vsub.f32 %v30252_v29, %v30253_v45  ;;  %v31014_v54 = vsub.f32 %v31012_v52, %v31013_v58  ;;  %37004 = vmatprep.mubr.f32.mxu1 %v43186_v22 }
 0x323   :  { %45308 = vst [vmem:[#allocation71_spill] sm:$0xff] %v43536_v47  ;;  %v30247_v55 = vsub.f32 %v30245_v48, %v30246_v39  ;;  %v31007_v50 = vsub.f32 %v31005_v57, %v31006_v62  ;;  %v43541_v0 = vpack.c.bf16 %v30253_v45, %v30246_v39  ;;  %v43543_v26 = vpack.c.bf16 %v31013_v58, %v31006_v62 }
 0x324   :  { %45309 = vst [vmem:[#allocation72_spill] sm:$0xff] %v43538_v12  ;;  %36909 = vmatmul.mubr.f32.gmra.mrb[40].mxu0 %v43211_v18  ;;  %v30255_v6 = vand.u32 4294901760, %v30254_v25  ;;  %v31015_v56 = vand.u32 4294901760, %v31014_v54 }
 0x325   :  { %37005 = vmatmul.mubr.f32.gmra.mrb[40].mxu1 %v43211_v18  ;;  %36915 = vmatprep.mubr.f32.mxu0 %v43097_v13  ;;  %v30248_v47 = vand.u32 4294901760, %v30247_v55  ;;  %v31008_v12 = vand.u32 4294901760, %v31007_v50 }
 0x326   :  { %37011 = vmatprep.mubr.f32.mxu1 %v43097_v13 }
 0x327   :  { %v43549_v29 = vpack.c.bf16 %v30255_v6, %v30248_v47  ;;  %v43551_v52 = vpack.c.bf16 %v31015_v56, %v31008_v12 }
 0x328   :  { %36916 = vmatmul.mubr.f32.vlgmr.msra.gmra.mrb[34].mxu0 %v43099_v46 }
 0x329   :  { %37012 = vmatmul.mubr.f32.vlgmr.msra.gmra.mrb[34].mxu1 %v43099_v46  ;;  %39858 = vmatpush3.bf16.msra.mxu0 %v45304_v17 }
 0x32a   :  { %39882 = vmatpush3.bf16.msra.mxu1 %v45305_v63  ;;  %39860 = vmatprep.subr.bf16.mxu0 %v42637_v8 }
 0x32b   :  { %39884 = vmatprep.subr.bf16.mxu1 %v42639_v16  ;;  %36918 = vmatprep.mubr.f32.mxu0 %v43139_v61 }
 0x32c   :  { %37014 = vmatprep.mubr.f32.mxu1 %v43139_v61  ;;  %36919 = vmatmul.mubr.f32.gmra.mrb[36].mxu0 %v43146_v34 }
 0x32d   :  { %37015 = vmatmul.mubr.f32.gmra.mrb[36].mxu1 %v43146_v34  ;;  %36921 = vmatprep.mubr.f32.mxu0 %v43150_v30 }
 0x32e   :  { %37017 = vmatprep.mubr.f32.mxu1 %v43150_v30 }
 0x330   :  { %36922 = vmatmul.mubr.f32.gmra.mrb[38].mxu0 %v43172_v60 }
 0x331   :  { %37018 = vmatmul.mubr.f32.gmra.mrb[38].mxu1 %v43172_v60  ;;  %36924 = vmatprep.mubr.f32.mxu0 %v43186_v22 }
 0x332   :  { %37020 = vmatprep.mubr.f32.mxu1 %v43186_v22 }
 0x334   :  { %36925 = vmatmul.mubr.f32.gmra.mrb[40].mxu0 %v43211_v18 }
 0x335   :  { %37021 = vmatmul.mubr.f32.gmra.mrb[40].mxu1 %v43211_v18  ;;  %37027 = vmatprep.mubr.f32.mxu0 %v43177_v20 }
 0x336   :  { %37123 = vmatprep.mubr.f32.mxu1 %v43177_v20 }
 0x338   :  { %37028 = vmatmul.mubr.f32.vlgmr.msra.gmra.mrb[42].mxu0 %v43179_v59 }
 0x339   :  { %39862 = vmatpush3.bf16.msra.mxu0 %v42637_v8  ;;  %37124 = vmatmul.mubr.f32.vlgmr.msra.gmra.mrb[42].mxu1 %v43179_v59 }
 0x33a   :  { %39886 = vmatpush3.bf16.msra.mxu1 %v42639_v16  ;;  %39864 = vmatprep.subr.bf16.mxu0 %v42634_v43 }
 0x33b   :  { %39888 = vmatprep.subr.bf16.mxu1 %v42641_v3  ;;  %37030 = vmatprep.mubr.f32.mxu0 %v43244_v28 }
 0x33c   :  { %37126 = vmatprep.mubr.f32.mxu1 %v43244_v28  ;;  %37031 = vmatmul.mubr.f32.gmra.mrb[44].mxu0 %v43252_v37 }
 0x33d   :  { %37127 = vmatmul.mubr.f32.gmra.mrb[44].mxu1 %v43252_v37  ;;  %37033 = vmatprep.mubr.f32.mxu0 %v43261_v4 }
 0x33e   :  { %37129 = vmatprep.mubr.f32.mxu1 %v43261_v4 }
 0x340   :  { %37034 = vmatmul.mubr.f32.gmra.mrb[46].mxu0 %v43271_v23 }
 0x341   :  { %37130 = vmatmul.mubr.f32.gmra.mrb[46].mxu1 %v43271_v23  ;;  %37036 = vmatprep.mubr.f32.mxu0 %v43277_v49 }
 0x342   :  { %37132 = vmatprep.mubr.f32.mxu1 %v43277_v49 }
 0x344   :  { %37037 = vmatmul.mubr.f32.gmra.mrb[48].mxu0 %v43281_v14 }
 0x345   :  { %37133 = vmatmul.mubr.f32.gmra.mrb[48].mxu1 %v43281_v14  ;;  %37043 = vmatprep.mubr.f32.mxu0 %v43097_v13 }
 0x346   :  { %37139 = vmatprep.mubr.f32.mxu1 %v43097_v13 }
 0x347   :  { %v36596_v8 = vpop.f32.mrb[24].mxu0  ;;  %v36638_v16 = vpop.f32.mrb[24].mxu1 }
 0x348   :  { %v31620_v58 = vand.u32 4294901760, %v36596_v8  ;;  %v32380_v45 = vand.u32 4294901760, %v36638_v16  ;;  %v12826_v62 = vpop.f32.mrb[25].mxu0  ;;  %v13334_v39 = vpop.f32.mrb[25].mxu1  ;;  %37044 = vmatmul.mubr.f32.vlgmr.msra.gmra.mrb[42].mxu0 %v43099_v46 }
 0x349   :  { %v31617_v54 = vand.u32 4294901760, %v12826_v62  ;;  %v32377_v48 = vand.u32 4294901760, %v13334_v39  ;;  %39866 = vmatpush3.bf16.msra.mxu0 %v42634_v43  ;;  %37140 = vmatmul.mubr.f32.vlgmr.msra.gmra.mrb[42].mxu1 %v43099_v46 }
 0x34a   :  { %v31772_v56 = vsub.f32 %v36596_v8, %v31620_v58  ;;  %v32532_v57 = vsub.f32 %v36638_v16, %v32380_v45  ;;  %39890 = vmatpush3.bf16.msra.mxu1 %v42641_v3  ;;  %39868 = vmatprep.subr.bf16.mxu0 %v45304_v17 }
 0x34b   :  { %v43598_v47 = vpack.c.bf16 %v31620_v58, %v31617_v54  ;;  %v31765_v12 = vsub.f32 %v12826_v62, %v31617_v54  ;;  %v43600_v25 = vpack.c.bf16 %v32380_v45, %v32377_v48  ;;  %v32525_v55 = vsub.f32 %v13334_v39, %v32377_v48  ;;  %39892 = vmatprep.subr.bf16.mxu1 %v45305_v63 }
 0x34c   :  { %v31773_v50 = vand.u32 4294901760, %v31772_v56  ;;  %v32533_v6 = vand.u32 4294901760, %v32532_v57  ;;  %37046 = vmatprep.mubr.f32.mxu0 %v43139_v61  ;;  %37142 = vmatprep.mubr.f32.mxu1 %v43139_v61 }
 0x34d   :  { %45310 = vst [vmem:[#allocation73_spill] sm:$0xff] %v43598_v47  ;;  %45311 = vst [vmem:[#allocation74_spill] sm:$0xff] %v43600_v25  ;;  %v31766_v43 = vand.u32 4294901760, %v31765_v12  ;;  %v32526_v8 = vand.u32 4294901760, %v32525_v55  ;;  %37047 = vmatmul.mubr.f32.gmra.mrb[44].mxu0 %v43146_v34  ;;  %37143 = vmatmul.mubr.f32.gmra.mrb[44].mxu1 %v43146_v34  ;;  %v43607_v3 = vpack.c.bf16 %v31772_v56, %v31765_v12 }
 0x34e   :  { %v43609_v16 = vpack.c.bf16 %v32532_v57, %v32525_v55  ;;  %v31774_v58 = vsub.f32 %v31772_v56, %v31773_v50  ;;  %v32534_v45 = vsub.f32 %v32532_v57, %v32533_v6  ;;  %37049 = vmatprep.mubr.f32.mxu0 %v43150_v30  ;;  %37145 = vmatprep.mubr.f32.mxu1 %v43150_v30 }
 0x34f   :  { %45312 = vst [vmem:[#allocation75_spill] sm:$0xff] %v43607_v3  ;;  %v31767_v62 = vsub.f32 %v31765_v12, %v31766_v43  ;;  %v32527_v39 = vsub.f32 %v32525_v55, %v32526_v8  ;;  %v43613_v54 = vpack.c.bf16 %v31773_v50, %v31766_v43  ;;  %v43615_v48 = vpack.c.bf16 %v32533_v6, %v32526_v8  ;;  %v45314_v12 = vld [vmem:[#allocation15_spill] sm:$0xff]  ;;  %v45317_v55 = vld [vmem:[#allocation18_spill] sm:$0xff] }
 0x350   :  { %45313 = vst [vmem:[#allocation76_spill] sm:$0xff] %v43609_v16  ;;  %v31775_v25 = vand.u32 4294901760, %v31774_v58  ;;  %v32535_v47 = vand.u32 4294901760, %v32534_v45  ;;  %v45320_v50 = vld [vmem:[#allocation19_spill] sm:$0xff]  ;;  %v45321_v6 = vld [vmem:[#allocation22_spill] sm:$0xff] }
 0x351   :  { %37050 = vmatmul.mubr.f32.gmra.mrb[46].mxu0 %v43172_v60  ;;  %37146 = vmatmul.mubr.f32.gmra.mrb[46].mxu1 %v43172_v60  ;;  %v31768_v3 = vand.u32 4294901760, %v31767_v62  ;;  %v32528_v16 = vand.u32 4294901760, %v32527_v39 }
 0x352   :  { %37052 = vmatprep.mubr.f32.mxu0 %v43186_v22  ;;  %37148 = vmatprep.mubr.f32.mxu1 %v43186_v22 }
 0x353   :  { %v43621_v56 = vpack.c.bf16 %v31775_v25, %v31768_v3  ;;  %v43623_v57 = vpack.c.bf16 %v32535_v47, %v32528_v16  ;;  %v45315_v47 = vld [vmem:[#allocation16_spill] sm:$0xff]  ;;  %v45316_v25 = vld [vmem:[#allocation17_spill] sm:$0xff] }
 0x355   :  { %37053 = vmatmul.mubr.f32.gmra.mrb[48].mxu0 %v43211_v18  ;;  %37149 = vmatmul.mubr.f32.gmra.mrb[48].mxu1 %v43211_v18 }
 0x356   :  { %37059 = vmatprep.mubr.f32.mxu0 %v43115_v21  ;;  %37155 = vmatprep.mubr.f32.mxu1 %v43115_v21 }
 0x359   :  { %37060 = vmatmul.mubr.f32.vlgmr.msra.gmra.mrb[42].mxu0 %v43118_v38  ;;  %37156 = vmatmul.mubr.f32.vlgmr.msra.gmra.mrb[42].mxu1 %v43118_v38 }
 0x35a   :  { %39870 = vmatpush3.bf16.msra.mxu0 %v45304_v17  ;;  %39894 = vmatpush3.bf16.msra.mxu1 %v45305_v63 }
 0x35b   :  { %39872 = vmatprep.subr.bf16.mxu0 %v45314_v12  ;;  %39896 = vmatprep.subr.bf16.mxu1 %v45315_v47 }
 0x35c   :  { %37062 = vmatprep.mubr.f32.mxu0 %v43163_v7  ;;  %37158 = vmatprep.mubr.f32.mxu1 %v43163_v7 }
 0x35d   :  { %37063 = vmatmul.mubr.f32.gmra.mrb[44].mxu0 %v43166_v42  ;;  %37159 = vmatmul.mubr.f32.gmra.mrb[44].mxu1 %v43166_v42 }
 0x35e   :  { %37065 = vmatprep.mubr.f32.mxu0 %v43170_v24  ;;  %37161 = vmatprep.mubr.f32.mxu1 %v43170_v24 }
 0x361   :  { %37066 = vmatmul.mubr.f32.gmra.mrb[46].mxu0 %v43200_v40  ;;  %37162 = vmatmul.mubr.f32.gmra.mrb[46].mxu1 %v43200_v40 }
 0x362   :  { %37068 = vmatprep.mubr.f32.mxu0 %v43209_v27  ;;  %37164 = vmatprep.mubr.f32.mxu1 %v43209_v27 }
 0x365   :  { %37069 = vmatmul.mubr.f32.gmra.mrb[48].mxu0 %v43231_v5  ;;  %37165 = vmatmul.mubr.f32.gmra.mrb[48].mxu1 %v43231_v5 }
 0x366   :  { %37075 = vmatprep.mubr.f32.mxu0 %v43129_v35  ;;  %37171 = vmatprep.mubr.f32.mxu1 %v43129_v35 }
 0x369   :  { %37076 = vmatmul.mubr.f32.vlgmr.msra.gmra.mrb[42].mxu0 %v43132_v41  ;;  %37172 = vmatmul.mubr.f32.vlgmr.msra.gmra.mrb[42].mxu1 %v43132_v41 }
 0x36a   :  { %39874 = vmatpush3.bf16.msra.mxu0 %v45314_v12  ;;  %39898 = vmatpush3.bf16.msra.mxu1 %v45315_v47 }
 0x36b   :  { %39876 = vmatprep.subr.bf16.mxu0 %v45304_v17  ;;  %39900 = vmatprep.subr.bf16.mxu1 %v45305_v63 }
 0x36c   :  { %37078 = vmatprep.mubr.f32.mxu0 %v43184_v36  ;;  %37174 = vmatprep.mubr.f32.mxu1 %v43184_v36 }
 0x36d   :  { %37079 = vmatmul.mubr.f32.gmra.mrb[44].mxu0 %v43191_v44  ;;  %37175 = vmatmul.mubr.f32.gmra.mrb[44].mxu1 %v43191_v44 }
 0x36e   :  { %37081 = vmatprep.mubr.f32.mxu0 %v43197_v53  ;;  %37177 = vmatprep.mubr.f32.mxu1 %v43197_v53 }
 0x371   :  { %37082 = vmatmul.mubr.f32.gmra.mrb[46].mxu0 %v43228_v10  ;;  %37178 = vmatmul.mubr.f32.gmra.mrb[46].mxu1 %v43228_v10 }
 0x372   :  { %37084 = vmatprep.mubr.f32.mxu0 %v43238_v33  ;;  %37180 = vmatprep.mubr.f32.mxu1 %v43238_v33 }
 0x375   :  { %37085 = vmatmul.mubr.f32.gmra.mrb[48].mxu0 %v43257_v31  ;;  %37181 = vmatmul.mubr.f32.gmra.mrb[48].mxu1 %v43257_v31 }
 0x376   :  { %37091 = vmatprep.mubr.f32.mxu0 %v43097_v13  ;;  %37187 = vmatprep.mubr.f32.mxu1 %v43097_v13 }
 0x379   :  { %37092 = vmatmul.mubr.f32.vlgmr.msra.gmra.mrb[42].mxu0 %v43099_v46  ;;  %37188 = vmatmul.mubr.f32.vlgmr.msra.gmra.mrb[42].mxu1 %v43099_v46 }
 0x37a   :  { %39878 = vmatpush3.bf16.msra.mxu0 %v45304_v17  ;;  %39902 = vmatpush3.bf16.msra.mxu1 %v45305_v63  ;;  %v45318_v17 = vld [vmem:[#allocation20_spill] sm:$0xff]  ;;  %v45319_v63 = vld [vmem:[#allocation21_spill] sm:$0xff] }
 0x37b   :  { %39904 = vmatprep.subr.bf16.mxu0 %v45316_v25  ;;  %39928 = vmatprep.subr.bf16.mxu1 %v45317_v55 }
 0x37c   :  { %37094 = vmatprep.mubr.f32.mxu0 %v43139_v61  ;;  %37190 = vmatprep.mubr.f32.mxu1 %v43139_v61 }
 0x37d   :  { %37095 = vmatmul.mubr.f32.gmra.mrb[44].mxu0 %v43146_v34  ;;  %37191 = vmatmul.mubr.f32.gmra.mrb[44].mxu1 %v43146_v34 }
 0x37e   :  { %37097 = vmatprep.mubr.f32.mxu0 %v43150_v30  ;;  %37193 = vmatprep.mubr.f32.mxu1 %v43150_v30 }
 0x381   :  { %37098 = vmatmul.mubr.f32.gmra.mrb[46].mxu0 %v43172_v60  ;;  %37194 = vmatmul.mubr.f32.gmra.mrb[46].mxu1 %v43172_v60 }
 0x382   :  { %37100 = vmatprep.mubr.f32.mxu0 %v43186_v22  ;;  %37196 = vmatprep.mubr.f32.mxu1 %v43186_v22 }
 0x385   :  { %37101 = vmatmul.mubr.f32.gmra.mrb[48].mxu0 %v43211_v18  ;;  %37197 = vmatmul.mubr.f32.gmra.mrb[48].mxu1 %v43211_v18 }
 0x386   :  { %37107 = vmatprep.mubr.f32.mxu0 %v43097_v13  ;;  %37203 = vmatprep.mubr.f32.mxu1 %v43097_v13 }
 0x389   :  { %37108 = vmatmul.mubr.f32.vlgmr.msra.gmra.mrb[42].mxu0 %v43099_v46  ;;  %37204 = vmatmul.mubr.f32.vlgmr.msra.gmra.mrb[42].mxu1 %v43099_v46 }
 0x38a   :  { %39906 = vmatpush3.bf16.msra.mxu0 %v45316_v25  ;;  %39930 = vmatpush3.bf16.msra.mxu1 %v45317_v55 }
 0x38b   :  { %39908 = vmatprep.subr.bf16.mxu0 %v45318_v17  ;;  %39932 = vmatprep.subr.bf16.mxu1 %v45319_v63 }
 0x38c   :  { %37110 = vmatprep.mubr.f32.mxu0 %v43139_v61  ;;  %37206 = vmatprep.mubr.f32.mxu1 %v43139_v61 }
 0x38d   :  { %37111 = vmatmul.mubr.f32.gmra.mrb[44].mxu0 %v43146_v34  ;;  %37207 = vmatmul.mubr.f32.gmra.mrb[44].mxu1 %v43146_v34 }
 0x38e   :  { %37113 = vmatprep.mubr.f32.mxu0 %v43150_v30  ;;  %37209 = vmatprep.mubr.f32.mxu1 %v43150_v30 }
 0x391   :  { %37114 = vmatmul.mubr.f32.gmra.mrb[46].mxu0 %v43172_v60  ;;  %37210 = vmatmul.mubr.f32.gmra.mrb[46].mxu1 %v43172_v60 }
 0x392   :  { %37116 = vmatprep.mubr.f32.mxu0 %v43186_v22  ;;  %37212 = vmatprep.mubr.f32.mxu1 %v43186_v22 }
 0x395   :  { %37117 = vmatmul.mubr.f32.gmra.mrb[48].mxu0 %v43211_v18  ;;  %37213 = vmatmul.mubr.f32.gmra.mrb[48].mxu1 %v43211_v18 }
 0x396   :  { %37219 = vmatprep.mubr.f32.mxu0 %v43177_v20  ;;  %37315 = vmatprep.mubr.f32.mxu1 %v43177_v20 }
 0x399   :  { %37220 = vmatmul.mubr.f32.vlgmr.msra.gmra.mrb[50].mxu0 %v43179_v59  ;;  %37316 = vmatmul.mubr.f32.vlgmr.msra.gmra.mrb[50].mxu1 %v43179_v59 }
 0x39a   :  { %39910 = vmatpush3.bf16.msra.mxu0 %v45318_v17  ;;  %39934 = vmatpush3.bf16.msra.mxu1 %v45319_v63 }
 0x39b   :  { %39912 = vmatprep.subr.bf16.mxu0 %v45320_v50  ;;  %39936 = vmatprep.subr.bf16.mxu1 %v45321_v6  ;;  %v36725_v43 = vpop.f32.mrb[26].mxu0 }
 0x39c   :  { %33138 = vst.msk [vmem:[#allocation7 + $0x8] sm:$0xff] %vm33136_vm1, %v36725_v43  ;;  %v36821_v8 = vpop.f32.mrb[26].mxu1  ;;  %37222 = vmatprep.mubr.f32.mxu0 %v43244_v28  ;;  %37318 = vmatprep.mubr.f32.mxu1 %v43244_v28  ;;  %v14090_v3 = vpop.f32.mrb[27].mxu0 }
 0x39d   :  { %33146 = vst.msk [vmem:[#allocation7 + $0x48] sm:$0xff] %vm33136_vm1, %v36821_v8  ;;  %33137 = vst.msk [vmem:[#allocation7] sm:$0xff] %vm33136_vm1, %v14090_v3  ;;  %v14850_v16 = vpop.f32.mrb[27].mxu1  ;;  %37223 = vmatmul.mubr.f32.gmra.mrb[52].mxu0 %v43252_v37  ;;  %37319 = vmatmul.mubr.f32.gmra.mrb[52].mxu1 %v43252_v37 }
 0x39e   :  { %33145 = vst.msk [vmem:[#allocation7 + $0x40] sm:$0xff] %vm33136_vm1, %v14850_v16  ;;  %37225 = vmatprep.mubr.f32.mxu0 %v43261_v4  ;;  %37321 = vmatprep.mubr.f32.mxu1 %v43261_v4 }
 0x39f   :  { %v36728_v58 = vpop.f32.mrb[28].mxu0 }
 0x3a0   :  { %33140 = vst.msk [vmem:[#allocation7 + $0x18] sm:$0xff] %vm33136_vm1, %v36728_v58  ;;  %v36824_v45 = vpop.f32.mrb[28].mxu1  ;;  %v14102_v62 = vpop.f32.mrb[29].mxu0  ;;  %v45324_v58 = vld [vmem:[#allocation25_spill] sm:$0xff] }
 0x3a1   :  { %33148 = vst.msk [vmem:[#allocation7 + $0x58] sm:$0xff] %vm33136_vm1, %v36824_v45  ;;  %33139 = vst.msk [vmem:[#allocation7 + $0x10] sm:$0xff] %vm33136_vm1, %v14102_v62  ;;  %v14862_v39 = vpop.f32.mrb[29].mxu1  ;;  %37226 = vmatmul.mubr.f32.gmra.mrb[54].mxu0 %v43271_v23  ;;  %37322 = vmatmul.mubr.f32.gmra.mrb[54].mxu1 %v43271_v23  ;;  %v45325_v45 = vld [vmem:[#allocation26_spill] sm:$0xff]  ;;  %v45328_v62 = vld [vmem:[#allocation27_spill] sm:$0xff] }
 0x3a2   :  { %33147 = vst.msk [vmem:[#allocation7 + $0x50] sm:$0xff] %vm33136_vm1, %v14862_v39  ;;  %37228 = vmatprep.mubr.f32.mxu0 %v43277_v49  ;;  %37324 = vmatprep.mubr.f32.mxu1 %v43277_v49  ;;  %v45329_v39 = vld [vmem:[#allocation28_spill] sm:$0xff] }
 0x3a3   :  { %v36731_v12 = vpop.f32.mrb[30].mxu0 }
 0x3a4   :  { %33142 = vst.msk [vmem:[#allocation7 + $0x28] sm:$0xff] %vm33136_vm1, %v36731_v12  ;;  %v36827_v47 = vpop.f32.mrb[30].mxu1  ;;  %v14114_v17 = vpop.f32.mrb[31].mxu0 }
 0x3a5   :  { %33150 = vst.msk [vmem:[#allocation7 + $0x68] sm:$0xff] %vm33136_vm1, %v36827_v47  ;;  %33141 = vst.msk [vmem:[#allocation7 + $0x20] sm:$0xff] %vm33136_vm1, %v14114_v17  ;;  %v14874_v63 = vpop.f32.mrb[31].mxu1  ;;  %37229 = vmatmul.mubr.f32.gmra.mrb[56].mxu0 %v43281_v14  ;;  %37325 = vmatmul.mubr.f32.gmra.mrb[56].mxu1 %v43281_v14 }
 0x3a6   :  { %33149 = vst.msk [vmem:[#allocation7 + $0x60] sm:$0xff] %vm33136_vm1, %v14874_v63  ;;  %37235 = vmatprep.mubr.f32.mxu0 %v43097_v13  ;;  %37331 = vmatprep.mubr.f32.mxu1 %v43097_v13 }
 0x3a7   :  { %v36734_v43 = vpop.f32.mrb[32].mxu0 }
 0x3a8   :  { %33144 = vst.msk [vmem:[#allocation7 + $0x38] sm:$0xff] %vm33136_vm1, %v36734_v43  ;;  %v36830_v8 = vpop.f32.mrb[32].mxu1  ;;  %v14126_v3 = vpop.f32.mrb[33].mxu0 }
 0x3a9   :  { %33152 = vst.msk [vmem:[#allocation7 + $0x78] sm:$0xff] %vm33136_vm1, %v36830_v8  ;;  %33143 = vst.msk [vmem:[#allocation7 + $0x30] sm:$0xff] %vm33136_vm1, %v14126_v3  ;;  %v14886_v16 = vpop.f32.mrb[33].mxu1  ;;  %37236 = vmatmul.mubr.f32.vlgmr.msra.gmra.mrb[50].mxu0 %v43099_v46  ;;  %37332 = vmatmul.mubr.f32.vlgmr.msra.gmra.mrb[50].mxu1 %v43099_v46 }
 0x3aa   :  { %33151 = vst.msk [vmem:[#allocation7 + $0x70] sm:$0xff] %vm33136_vm1, %v14886_v16  ;;  %39914 = vmatpush3.bf16.msra.mxu0 %v45320_v50  ;;  %39938 = vmatpush3.bf16.msra.mxu1 %v45321_v6  ;;  %v45322_v50 = vld [vmem:[#allocation23_spill] sm:$0xff]  ;;  %v45323_v6 = vld [vmem:[#allocation24_spill] sm:$0xff] }
 0x3ab   :  { %39916 = vmatprep.subr.bf16.mxu0 %v45316_v25  ;;  %39940 = vmatprep.subr.bf16.mxu1 %v45317_v55 }
 0x3ac   :  { %37238 = vmatprep.mubr.f32.mxu0 %v43139_v61  ;;  %37334 = vmatprep.mubr.f32.mxu1 %v43139_v61 }
 0x3ad   :  { %37239 = vmatmul.mubr.f32.gmra.mrb[52].mxu0 %v43146_v34  ;;  %37335 = vmatmul.mubr.f32.gmra.mrb[52].mxu1 %v43146_v34 }
 0x3ae   :  { %37241 = vmatprep.mubr.f32.mxu0 %v43150_v30  ;;  %37337 = vmatprep.mubr.f32.mxu1 %v43150_v30 }
 0x3b1   :  { %37242 = vmatmul.mubr.f32.gmra.mrb[54].mxu0 %v43172_v60  ;;  %37338 = vmatmul.mubr.f32.gmra.mrb[54].mxu1 %v43172_v60 }
 0x3b2   :  { %37244 = vmatprep.mubr.f32.mxu0 %v43186_v22  ;;  %37340 = vmatprep.mubr.f32.mxu1 %v43186_v22 }
 0x3b5   :  { %37245 = vmatmul.mubr.f32.gmra.mrb[56].mxu0 %v43211_v18  ;;  %37341 = vmatmul.mubr.f32.gmra.mrb[56].mxu1 %v43211_v18 }
 0x3b6   :  { %37251 = vmatprep.mubr.f32.mxu0 %v43115_v21  ;;  %37347 = vmatprep.mubr.f32.mxu1 %v43115_v21 }
 0x3b9   :  { %37252 = vmatmul.mubr.f32.vlgmr.msra.gmra.mrb[50].mxu0 %v43118_v38  ;;  %37348 = vmatmul.mubr.f32.vlgmr.msra.gmra.mrb[50].mxu1 %v43118_v38 }
 0x3ba   :  { %39918 = vmatpush3.bf16.msra.mxu0 %v45316_v25  ;;  %39942 = vmatpush3.bf16.msra.mxu1 %v45317_v55 }
 0x3bb   :  { %39920 = vmatprep.subr.bf16.mxu0 %v45322_v50  ;;  %39944 = vmatprep.subr.bf16.mxu1 %v45323_v6 }
 0x3bc   :  { %37254 = vmatprep.mubr.f32.mxu0 %v43163_v7  ;;  %37350 = vmatprep.mubr.f32.mxu1 %v43163_v7 }
 0x3bd   :  { %37255 = vmatmul.mubr.f32.gmra.mrb[52].mxu0 %v43166_v42  ;;  %37351 = vmatmul.mubr.f32.gmra.mrb[52].mxu1 %v43166_v42 }
 0x3be   :  { %37257 = vmatprep.mubr.f32.mxu0 %v43170_v24  ;;  %37353 = vmatprep.mubr.f32.mxu1 %v43170_v24 }
 0x3c1   :  { %37258 = vmatmul.mubr.f32.gmra.mrb[54].mxu0 %v43200_v40  ;;  %37354 = vmatmul.mubr.f32.gmra.mrb[54].mxu1 %v43200_v40 }
 0x3c2   :  { %37260 = vmatprep.mubr.f32.mxu0 %v43209_v27  ;;  %37356 = vmatprep.mubr.f32.mxu1 %v43209_v27 }
 0x3c5   :  { %37261 = vmatmul.mubr.f32.gmra.mrb[56].mxu0 %v43231_v5  ;;  %37357 = vmatmul.mubr.f32.gmra.mrb[56].mxu1 %v43231_v5 }
 0x3c6   :  { %37267 = vmatprep.mubr.f32.mxu0 %v43129_v35  ;;  %37363 = vmatprep.mubr.f32.mxu1 %v43129_v35 }
 0x3c9   :  { %37268 = vmatmul.mubr.f32.vlgmr.msra.gmra.mrb[50].mxu0 %v43132_v41  ;;  %37364 = vmatmul.mubr.f32.vlgmr.msra.gmra.mrb[50].mxu1 %v43132_v41 }
 0x3ca   :  { %39922 = vmatpush3.bf16.msra.mxu0 %v45322_v50  ;;  %39946 = vmatpush3.bf16.msra.mxu1 %v45323_v6 }
 0x3cb   :  { %39924 = vmatprep.subr.bf16.mxu0 %v45316_v25  ;;  %39948 = vmatprep.subr.bf16.mxu1 %v45317_v55 }
 0x3cc   :  { %37270 = vmatprep.mubr.f32.mxu0 %v43184_v36  ;;  %37366 = vmatprep.mubr.f32.mxu1 %v43184_v36 }
 0x3cd   :  { %37271 = vmatmul.mubr.f32.gmra.mrb[52].mxu0 %v43191_v44  ;;  %37367 = vmatmul.mubr.f32.gmra.mrb[52].mxu1 %v43191_v44 }
 0x3ce   :  { %37273 = vmatprep.mubr.f32.mxu0 %v43197_v53  ;;  %37369 = vmatprep.mubr.f32.mxu1 %v43197_v53 }
 0x3d1   :  { %37274 = vmatmul.mubr.f32.gmra.mrb[54].mxu0 %v43228_v10  ;;  %37370 = vmatmul.mubr.f32.gmra.mrb[54].mxu1 %v43228_v10 }
 0x3d2   :  { %37276 = vmatprep.mubr.f32.mxu0 %v43238_v33  ;;  %37372 = vmatprep.mubr.f32.mxu1 %v43238_v33 }
 0x3d5   :  { %37277 = vmatmul.mubr.f32.gmra.mrb[56].mxu0 %v43257_v31  ;;  %37373 = vmatmul.mubr.f32.gmra.mrb[56].mxu1 %v43257_v31 }
 0x3d6   :  { %37283 = vmatprep.mubr.f32.mxu0 %v43097_v13  ;;  %37379 = vmatprep.mubr.f32.mxu1 %v43097_v13 }
 0x3d9   :  { %37284 = vmatmul.mubr.f32.vlgmr.msra.gmra.mrb[50].mxu0 %v43099_v46  ;;  %37380 = vmatmul.mubr.f32.vlgmr.msra.gmra.mrb[50].mxu1 %v43099_v46 }
 0x3da   :  { %39926 = vmatpush3.bf16.msra.mxu0 %v45316_v25  ;;  %39950 = vmatpush3.bf16.msra.mxu1 %v45317_v55  ;;  %v45326_v25 = vld [vmem:[#allocation31_spill] sm:$0xff]  ;;  %v45327_v55 = vld [vmem:[#allocation32_spill] sm:$0xff] }
 0x3db   :  { %39952 = vmatprep.subr.bf16.mxu0 %v45324_v58  ;;  %39976 = vmatprep.subr.bf16.mxu1 %v45325_v45 }
 0x3dc   :  { %37286 = vmatprep.mubr.f32.mxu0 %v43139_v61  ;;  %37382 = vmatprep.mubr.f32.mxu1 %v43139_v61 }
 0x3dd   :  { %37287 = vmatmul.mubr.f32.gmra.mrb[52].mxu0 %v43146_v34  ;;  %37383 = vmatmul.mubr.f32.gmra.mrb[52].mxu1 %v43146_v34 }
 0x3de   :  { %37289 = vmatprep.mubr.f32.mxu0 %v43150_v30  ;;  %37385 = vmatprep.mubr.f32.mxu1 %v43150_v30 }
 0x3e1   :  { %37290 = vmatmul.mubr.f32.gmra.mrb[54].mxu0 %v43172_v60  ;;  %37386 = vmatmul.mubr.f32.gmra.mrb[54].mxu1 %v43172_v60 }
 0x3e2   :  { %37292 = vmatprep.mubr.f32.mxu0 %v43186_v22  ;;  %37388 = vmatprep.mubr.f32.mxu1 %v43186_v22 }
 0x3e5   :  { %37293 = vmatmul.mubr.f32.gmra.mrb[56].mxu0 %v43211_v18  ;;  %37389 = vmatmul.mubr.f32.gmra.mrb[56].mxu1 %v43211_v18 }
 0x3e6   :  { %37299 = vmatprep.mubr.f32.mxu0 %v43097_v13  ;;  %37395 = vmatprep.mubr.f32.mxu1 %v43097_v13 }
 0x3e9   :  { %37300 = vmatmul.mubr.f32.vlgmr.msra.gmra.mrb[50].mxu0 %v43099_v46  ;;  %37396 = vmatmul.mubr.f32.vlgmr.msra.gmra.mrb[50].mxu1 %v43099_v46 }
 0x3ea   :  { %39954 = vmatpush3.bf16.msra.mxu0 %v45324_v58  ;;  %39978 = vmatpush3.bf16.msra.mxu1 %v45325_v45 }
 0x3eb   :  { %39956 = vmatprep.subr.bf16.mxu0 %v45326_v25  ;;  %39980 = vmatprep.subr.bf16.mxu1 %v45327_v55 }
 0x3ec   :  { %37302 = vmatprep.mubr.f32.mxu0 %v43139_v61  ;;  %37398 = vmatprep.mubr.f32.mxu1 %v43139_v61 }
 0x3ed   :  { %37303 = vmatmul.mubr.f32.gmra.mrb[52].mxu0 %v43146_v34  ;;  %37399 = vmatmul.mubr.f32.gmra.mrb[52].mxu1 %v43146_v34 }
 0x3ee   :  { %37305 = vmatprep.mubr.f32.mxu0 %v43150_v30  ;;  %37401 = vmatprep.mubr.f32.mxu1 %v43150_v30 }
 0x3f1   :  { %37306 = vmatmul.mubr.f32.gmra.mrb[54].mxu0 %v43172_v60  ;;  %37402 = vmatmul.mubr.f32.gmra.mrb[54].mxu1 %v43172_v60 }
 0x3f2   :  { %37308 = vmatprep.mubr.f32.mxu0 %v43186_v22  ;;  %37404 = vmatprep.mubr.f32.mxu1 %v43186_v22 }
 0x3f5   :  { %37309 = vmatmul.mubr.f32.gmra.mrb[56].mxu0 %v43211_v18  ;;  %37405 = vmatmul.mubr.f32.gmra.mrb[56].mxu1 %v43211_v18 }
 0x3f6   :  { %37411 = vmatprep.mubr.f32.mxu0 %v43177_v20  ;;  %37507 = vmatprep.mubr.f32.mxu1 %v43177_v20 }
 0x3f9   :  { %37412 = vmatmul.mubr.f32.vlgmr.msra.gmra.mrb[58].mxu0 %v43179_v59  ;;  %37508 = vmatmul.mubr.f32.vlgmr.msra.gmra.mrb[58].mxu1 %v43179_v59 }
 0x3fa   :  { %39958 = vmatpush3.bf16.msra.mxu0 %v45326_v25  ;;  %39982 = vmatpush3.bf16.msra.mxu1 %v45327_v55 }
 0x3fb   :  { %39960 = vmatprep.subr.bf16.mxu0 %v45328_v62  ;;  %39984 = vmatprep.subr.bf16.mxu1 %v45329_v39  ;;  %v36917_v12 = vpop.f32.mrb[34].mxu0 }
 0x3fc   :  { %33154 = vst.msk [vmem:[#allocation7 + $0x88] sm:$0xff] %vm33136_vm1, %v36917_v12  ;;  %v37013_v47 = vpop.f32.mrb[34].mxu1  ;;  %37414 = vmatprep.mubr.f32.mxu0 %v43244_v28  ;;  %37510 = vmatprep.mubr.f32.mxu1 %v43244_v28  ;;  %v15610_v17 = vpop.f32.mrb[35].mxu0 }
 0x3fd   :  { %33162 = vst.msk [vmem:[#allocation7 + $0xc8] sm:$0xff] %vm33136_vm1, %v37013_v47  ;;  %33153 = vst.msk [vmem:[#allocation7 + $0x80] sm:$0xff] %vm33136_vm1, %v15610_v17  ;;  %v16370_v63 = vpop.f32.mrb[35].mxu1  ;;  %37415 = vmatmul.mubr.f32.gmra.mrb[60].mxu0 %v43252_v37  ;;  %37511 = vmatmul.mubr.f32.gmra.mrb[60].mxu1 %v43252_v37 }
 0x3fe   :  { %33161 = vst.msk [vmem:[#allocation7 + $0xc0] sm:$0xff] %vm33136_vm1, %v16370_v63  ;;  %37417 = vmatprep.mubr.f32.mxu0 %v43261_v4  ;;  %37513 = vmatprep.mubr.f32.mxu1 %v43261_v4 }
 0x3ff   :  { %v36920_v43 = vpop.f32.mrb[36].mxu0 }
 0x400   :  { %33156 = vst.msk [vmem:[#allocation7 + $0x98] sm:$0xff] %vm33136_vm1, %v36920_v43  ;;  %v37016_v8 = vpop.f32.mrb[36].mxu1  ;;  %v15622_v3 = vpop.f32.mrb[37].mxu0  ;;  %v45332_v43 = vld [vmem:[#allocation33_spill] sm:$0xff] }
 0x401   :  { %33164 = vst.msk [vmem:[#allocation7 + $0xd8] sm:$0xff] %vm33136_vm1, %v37016_v8  ;;  %33155 = vst.msk [vmem:[#allocation7 + $0x90] sm:$0xff] %vm33136_vm1, %v15622_v3  ;;  %v16382_v16 = vpop.f32.mrb[37].mxu1  ;;  %37418 = vmatmul.mubr.f32.gmra.mrb[62].mxu0 %v43271_v23  ;;  %37514 = vmatmul.mubr.f32.gmra.mrb[62].mxu1 %v43271_v23  ;;  %v45333_v8 = vld [vmem:[#allocation34_spill] sm:$0xff]  ;;  %v45336_v3 = vld [vmem:[#allocation35_spill] sm:$0xff] }
 0x402   :  { %33163 = vst.msk [vmem:[#allocation7 + $0xd0] sm:$0xff] %vm33136_vm1, %v16382_v16  ;;  %37420 = vmatprep.mubr.f32.mxu0 %v43277_v49  ;;  %37516 = vmatprep.mubr.f32.mxu1 %v43277_v49  ;;  %v45337_v16 = vld [vmem:[#allocation36_spill] sm:$0xff] }
 0x403   :  { %v36923_v50 = vpop.f32.mrb[38].mxu0 }
 0x404   :  { %33158 = vst.msk [vmem:[#allocation7 + $0xa8] sm:$0xff] %vm33136_vm1, %v36923_v50  ;;  %v37019_v6 = vpop.f32.mrb[38].mxu1  ;;  %v15634_v25 = vpop.f32.mrb[39].mxu0 }
 0x405   :  { %33166 = vst.msk [vmem:[#allocation7 + $0xe8] sm:$0xff] %vm33136_vm1, %v37019_v6  ;;  %33157 = vst.msk [vmem:[#allocation7 + $0xa0] sm:$0xff] %vm33136_vm1, %v15634_v25  ;;  %v16394_v55 = vpop.f32.mrb[39].mxu1  ;;  %37421 = vmatmul.mubr.f32.gmra.mrb[64].mxu0 %v43281_v14  ;;  %37517 = vmatmul.mubr.f32.gmra.mrb[64].mxu1 %v43281_v14 }
 0x406   :  { %33165 = vst.msk [vmem:[#allocation7 + $0xe0] sm:$0xff] %vm33136_vm1, %v16394_v55  ;;  %37427 = vmatprep.mubr.f32.mxu0 %v43097_v13  ;;  %37523 = vmatprep.mubr.f32.mxu1 %v43097_v13 }
 0x407   :  { %v36926_v12 = vpop.f32.mrb[40].mxu0 }
 0x408   :  { %33160 = vst.msk [vmem:[#allocation7 + $0xb8] sm:$0xff] %vm33136_vm1, %v36926_v12  ;;  %v37022_v47 = vpop.f32.mrb[40].mxu1  ;;  %v15646_v17 = vpop.f32.mrb[41].mxu0 }
 0x409   :  { %33168 = vst.msk [vmem:[#allocation7 + $0xf8] sm:$0xff] %vm33136_vm1, %v37022_v47  ;;  %33159 = vst.msk [vmem:[#allocation7 + $0xb0] sm:$0xff] %vm33136_vm1, %v15646_v17  ;;  %v16406_v63 = vpop.f32.mrb[41].mxu1  ;;  %37428 = vmatmul.mubr.f32.vlgmr.msra.gmra.mrb[58].mxu0 %v43099_v46  ;;  %37524 = vmatmul.mubr.f32.vlgmr.msra.gmra.mrb[58].mxu1 %v43099_v46 }
 0x40a   :  { %33167 = vst.msk [vmem:[#allocation7 + $0xf0] sm:$0xff] %vm33136_vm1, %v16406_v63  ;;  %39962 = vmatpush3.bf16.msra.mxu0 %v45328_v62  ;;  %39986 = vmatpush3.bf16.msra.mxu1 %v45329_v39  ;;  %v45330_v62 = vld [vmem:[#allocation29_spill] sm:$0xff]  ;;  %v45331_v39 = vld [vmem:[#allocation30_spill] sm:$0xff] }
 0x40b   :  { %39964 = vmatprep.subr.bf16.mxu0 %v45324_v58  ;;  %39988 = vmatprep.subr.bf16.mxu1 %v45325_v45 }
 0x40c   :  { %37430 = vmatprep.mubr.f32.mxu0 %v43139_v61  ;;  %37526 = vmatprep.mubr.f32.mxu1 %v43139_v61 }
 0x40d   :  { %37431 = vmatmul.mubr.f32.gmra.mrb[60].mxu0 %v43146_v34  ;;  %37527 = vmatmul.mubr.f32.gmra.mrb[60].mxu1 %v43146_v34 }
 0x40e   :  { %37433 = vmatprep.mubr.f32.mxu0 %v43150_v30  ;;  %37529 = vmatprep.mubr.f32.mxu1 %v43150_v30 }
 0x411   :  { %37434 = vmatmul.mubr.f32.gmra.mrb[62].mxu0 %v43172_v60  ;;  %37530 = vmatmul.mubr.f32.gmra.mrb[62].mxu1 %v43172_v60 }
 0x412   :  { %37436 = vmatprep.mubr.f32.mxu0 %v43186_v22  ;;  %37532 = vmatprep.mubr.f32.mxu1 %v43186_v22 }
 0x415   :  { %37437 = vmatmul.mubr.f32.gmra.mrb[64].mxu0 %v43211_v18  ;;  %37533 = vmatmul.mubr.f32.gmra.mrb[64].mxu1 %v43211_v18 }
 0x416   :  { %37443 = vmatprep.mubr.f32.mxu0 %v43115_v21  ;;  %37539 = vmatprep.mubr.f32.mxu1 %v43115_v21 }
 0x419   :  { %37444 = vmatmul.mubr.f32.vlgmr.msra.gmra.mrb[58].mxu0 %v43118_v38  ;;  %37540 = vmatmul.mubr.f32.vlgmr.msra.gmra.mrb[58].mxu1 %v43118_v38 }
 0x41a   :  { %39966 = vmatpush3.bf16.msra.mxu0 %v45324_v58  ;;  %39990 = vmatpush3.bf16.msra.mxu1 %v45325_v45 }
 0x41b   :  { %39968 = vmatprep.subr.bf16.mxu0 %v45330_v62  ;;  %39992 = vmatprep.subr.bf16.mxu1 %v45331_v39 }
 0x41c   :  { %37446 = vmatprep.mubr.f32.mxu0 %v43163_v7  ;;  %37542 = vmatprep.mubr.f32.mxu1 %v43163_v7 }
 0x41d   :  { %37447 = vmatmul.mubr.f32.gmra.mrb[60].mxu0 %v43166_v42  ;;  %37543 = vmatmul.mubr.f32.gmra.mrb[60].mxu1 %v43166_v42 }
 0x41e   :  { %37449 = vmatprep.mubr.f32.mxu0 %v43170_v24  ;;  %37545 = vmatprep.mubr.f32.mxu1 %v43170_v24 }
 0x421   :  { %37450 = vmatmul.mubr.f32.gmra.mrb[62].mxu0 %v43200_v40  ;;  %37546 = vmatmul.mubr.f32.gmra.mrb[62].mxu1 %v43200_v40 }
 0x422   :  { %37452 = vmatprep.mubr.f32.mxu0 %v43209_v27  ;;  %37548 = vmatprep.mubr.f32.mxu1 %v43209_v27 }
 0x425   :  { %37453 = vmatmul.mubr.f32.gmra.mrb[64].mxu0 %v43231_v5  ;;  %37549 = vmatmul.mubr.f32.gmra.mrb[64].mxu1 %v43231_v5 }
 0x426   :  { %37459 = vmatprep.mubr.f32.mxu0 %v43129_v35  ;;  %37555 = vmatprep.mubr.f32.mxu1 %v43129_v35 }
 0x429   :  { %37460 = vmatmul.mubr.f32.vlgmr.msra.gmra.mrb[58].mxu0 %v43132_v41  ;;  %37556 = vmatmul.mubr.f32.vlgmr.msra.gmra.mrb[58].mxu1 %v43132_v41 }
 0x42a   :  { %39970 = vmatpush3.bf16.msra.mxu0 %v45330_v62  ;;  %39994 = vmatpush3.bf16.msra.mxu1 %v45331_v39 }
 0x42b   :  { %39972 = vmatprep.subr.bf16.mxu0 %v45324_v58  ;;  %39996 = vmatprep.subr.bf16.mxu1 %v45325_v45 }
 0x42c   :  { %37462 = vmatprep.mubr.f32.mxu0 %v43184_v36  ;;  %37558 = vmatprep.mubr.f32.mxu1 %v43184_v36 }
 0x42d   :  { %37463 = vmatmul.mubr.f32.gmra.mrb[60].mxu0 %v43191_v44  ;;  %37559 = vmatmul.mubr.f32.gmra.mrb[60].mxu1 %v43191_v44 }
 0x42e   :  { %37465 = vmatprep.mubr.f32.mxu0 %v43197_v53  ;;  %37561 = vmatprep.mubr.f32.mxu1 %v43197_v53 }
 0x431   :  { %37466 = vmatmul.mubr.f32.gmra.mrb[62].mxu0 %v43228_v10  ;;  %37562 = vmatmul.mubr.f32.gmra.mrb[62].mxu1 %v43228_v10 }
 0x432   :  { %37468 = vmatprep.mubr.f32.mxu0 %v43238_v33  ;;  %37564 = vmatprep.mubr.f32.mxu1 %v43238_v33 }
 0x435   :  { %37469 = vmatmul.mubr.f32.gmra.mrb[64].mxu0 %v43257_v31  ;;  %37565 = vmatmul.mubr.f32.gmra.mrb[64].mxu1 %v43257_v31 }
 0x436   :  { %37475 = vmatprep.mubr.f32.mxu0 %v43097_v13  ;;  %37571 = vmatprep.mubr.f32.mxu1 %v43097_v13 }
 0x439   :  { %37476 = vmatmul.mubr.f32.vlgmr.msra.gmra.mrb[58].mxu0 %v43099_v46  ;;  %37572 = vmatmul.mubr.f32.vlgmr.msra.gmra.mrb[58].mxu1 %v43099_v46 }
 0x43a   :  { %39974 = vmatpush3.bf16.msra.mxu0 %v45324_v58  ;;  %39998 = vmatpush3.bf16.msra.mxu1 %v45325_v45  ;;  %v45334_v58 = vld [vmem:[#allocation39_spill] sm:$0xff]  ;;  %v45335_v45 = vld [vmem:[#allocation40_spill] sm:$0xff] }
 0x43b   :  { %40000 = vmatprep.subr.bf16.mxu0 %v45332_v43  ;;  %40024 = vmatprep.subr.bf16.mxu1 %v45333_v8 }
 0x43c   :  { %37478 = vmatprep.mubr.f32.mxu0 %v43139_v61  ;;  %37574 = vmatprep.mubr.f32.mxu1 %v43139_v61 }
 0x43d   :  { %37479 = vmatmul.mubr.f32.gmra.mrb[60].mxu0 %v43146_v34  ;;  %37575 = vmatmul.mubr.f32.gmra.mrb[60].mxu1 %v43146_v34 }
 0x43e   :  { %37481 = vmatprep.mubr.f32.mxu0 %v43150_v30  ;;  %37577 = vmatprep.mubr.f32.mxu1 %v43150_v30 }
 0x441   :  { %37482 = vmatmul.mubr.f32.gmra.mrb[62].mxu0 %v43172_v60  ;;  %37578 = vmatmul.mubr.f32.gmra.mrb[62].mxu1 %v43172_v60 }
 0x442   :  { %37484 = vmatprep.mubr.f32.mxu0 %v43186_v22  ;;  %37580 = vmatprep.mubr.f32.mxu1 %v43186_v22 }
 0x445   :  { %37485 = vmatmul.mubr.f32.gmra.mrb[64].mxu0 %v43211_v18  ;;  %37581 = vmatmul.mubr.f32.gmra.mrb[64].mxu1 %v43211_v18 }
 0x446   :  { %37491 = vmatprep.mubr.f32.mxu0 %v43097_v13  ;;  %37587 = vmatprep.mubr.f32.mxu1 %v43097_v13 }
 0x449   :  { %37492 = vmatmul.mubr.f32.vlgmr.msra.gmra.mrb[58].mxu0 %v43099_v46  ;;  %37588 = vmatmul.mubr.f32.vlgmr.msra.gmra.mrb[58].mxu1 %v43099_v46 }
 0x44a   :  { %40002 = vmatpush3.bf16.msra.mxu0 %v45332_v43  ;;  %40026 = vmatpush3.bf16.msra.mxu1 %v45333_v8 }
 0x44b   :  { %40004 = vmatprep.subr.bf16.mxu0 %v45334_v58  ;;  %40028 = vmatprep.subr.bf16.mxu1 %v45335_v45 }
 0x44c   :  { %37494 = vmatprep.mubr.f32.mxu0 %v43139_v61  ;;  %37590 = vmatprep.mubr.f32.mxu1 %v43139_v61 }
 0x44d   :  { %37495 = vmatmul.mubr.f32.gmra.mrb[60].mxu0 %v43146_v34  ;;  %37591 = vmatmul.mubr.f32.gmra.mrb[60].mxu1 %v43146_v34 }
 0x44e   :  { %37497 = vmatprep.mubr.f32.mxu0 %v43150_v30  ;;  %37593 = vmatprep.mubr.f32.mxu1 %v43150_v30 }
 0x451   :  { %37498 = vmatmul.mubr.f32.gmra.mrb[62].mxu0 %v43172_v60  ;;  %37594 = vmatmul.mubr.f32.gmra.mrb[62].mxu1 %v43172_v60 }
 0x452   :  { %37500 = vmatprep.mubr.f32.mxu0 %v43186_v22  ;;  %37596 = vmatprep.mubr.f32.mxu1 %v43186_v22 }
 0x455   :  { %37501 = vmatmul.mubr.f32.gmra.mrb[64].mxu0 %v43211_v18  ;;  %37597 = vmatmul.mubr.f32.gmra.mrb[64].mxu1 %v43211_v18 }
 0x456   :  { %37603 = vmatprep.mubr.f32.mxu0 %v43177_v20  ;;  %37699 = vmatprep.mubr.f32.mxu1 %v43177_v20 }
 0x459   :  { %37604 = vmatmul.mubr.f32.vlgmr.msra.gmra.mrb[66].mxu0 %v43179_v59  ;;  %37700 = vmatmul.mubr.f32.vlgmr.msra.gmra.mrb[66].mxu1 %v43179_v59 }
 0x45a   :  { %40006 = vmatpush3.bf16.msra.mxu0 %v45334_v58  ;;  %40030 = vmatpush3.bf16.msra.mxu1 %v45335_v45 }
 0x45b   :  { %40008 = vmatprep.subr.bf16.mxu0 %v45336_v3  ;;  %40032 = vmatprep.subr.bf16.mxu1 %v45337_v16 }
 0x45c   :  { %v37109_v50 = vpop.f32.mrb[42].mxu0  ;;  %v37205_v6 = vpop.f32.mrb[42].mxu1  ;;  %37606 = vmatprep.mubr.f32.mxu0 %v43244_v28  ;;  %37702 = vmatprep.mubr.f32.mxu1 %v43244_v28 }
 0x45d   :  { %33170 = vst.msk [vmem:[#allocation7 + $0x108] sm:$0xff] %vm33136_vm1, %v37109_v50  ;;  %33178 = vst.msk [vmem:[#allocation7 + $0x148] sm:$0xff] %vm33136_vm1, %v37205_v6  ;;  %v17130_v25 = vpop.f32.mrb[43].mxu0  ;;  %v17890_v55 = vpop.f32.mrb[43].mxu1  ;;  %37607 = vmatmul.mubr.f32.gmra.mrb[68].mxu0 %v43252_v37  ;;  %37703 = vmatmul.mubr.f32.gmra.mrb[68].mxu1 %v43252_v37 }
 0x45e   :  { %33169 = vst.msk [vmem:[#allocation7 + $0x100] sm:$0xff] %vm33136_vm1, %v17130_v25  ;;  %33177 = vst.msk [vmem:[#allocation7 + $0x140] sm:$0xff] %vm33136_vm1, %v17890_v55  ;;  %37609 = vmatprep.mubr.f32.mxu0 %v43261_v4  ;;  %37705 = vmatprep.mubr.f32.mxu1 %v43261_v4 }
 0x460   :  { %v37112_v12 = vpop.f32.mrb[44].mxu0  ;;  %v37208_v47 = vpop.f32.mrb[44].mxu1 }
 0x461   :  { %33172 = vst.msk [vmem:[#allocation7 + $0x118] sm:$0xff] %vm33136_vm1, %v37112_v12  ;;  %33180 = vst.msk [vmem:[#allocation7 + $0x158] sm:$0xff] %vm33136_vm1, %v37208_v47  ;;  %v17142_v17 = vpop.f32.mrb[45].mxu0  ;;  %v17902_v63 = vpop.f32.mrb[45].mxu1  ;;  %37610 = vmatmul.mubr.f32.gmra.mrb[70].mxu0 %v43271_v23  ;;  %37706 = vmatmul.mubr.f32.gmra.mrb[70].mxu1 %v43271_v23  ;;  %v45340_v12 = vld [vmem:[#allocation41_spill] sm:$0xff]  ;;  %v45341_v47 = vld [vmem:[#allocation42_spill] sm:$0xff] }
 0x462   :  { %33171 = vst.msk [vmem:[#allocation7 + $0x110] sm:$0xff] %vm33136_vm1, %v17142_v17  ;;  %33179 = vst.msk [vmem:[#allocation7 + $0x150] sm:$0xff] %vm33136_vm1, %v17902_v63  ;;  %37612 = vmatprep.mubr.f32.mxu0 %v43277_v49  ;;  %37708 = vmatprep.mubr.f32.mxu1 %v43277_v49  ;;  %v45344_v17 = vld [vmem:[#allocation43_spill] sm:$0xff]  ;;  %v45345_v63 = vld [vmem:[#allocation44_spill] sm:$0xff] }
 0x464   :  { %v37115_v62 = vpop.f32.mrb[46].mxu0  ;;  %v37211_v39 = vpop.f32.mrb[46].mxu1 }
 0x465   :  { %33174 = vst.msk [vmem:[#allocation7 + $0x128] sm:$0xff] %vm33136_vm1, %v37115_v62  ;;  %33182 = vst.msk [vmem:[#allocation7 + $0x168] sm:$0xff] %vm33136_vm1, %v37211_v39  ;;  %v17154_v58 = vpop.f32.mrb[47].mxu0  ;;  %v17914_v45 = vpop.f32.mrb[47].mxu1  ;;  %37613 = vmatmul.mubr.f32.gmra.mrb[72].mxu0 %v43281_v14  ;;  %37709 = vmatmul.mubr.f32.gmra.mrb[72].mxu1 %v43281_v14 }
 0x466   :  { %33173 = vst.msk [vmem:[#allocation7 + $0x120] sm:$0xff] %vm33136_vm1, %v17154_v58  ;;  %33181 = vst.msk [vmem:[#allocation7 + $0x160] sm:$0xff] %vm33136_vm1, %v17914_v45  ;;  %37619 = vmatprep.mubr.f32.mxu0 %v43097_v13  ;;  %37715 = vmatprep.mubr.f32.mxu1 %v43097_v13 }
 0x468   :  { %v37118_v50 = vpop.f32.mrb[48].mxu0  ;;  %v37214_v6 = vpop.f32.mrb[48].mxu1 }
 0x469   :  { %33176 = vst.msk [vmem:[#allocation7 + $0x138] sm:$0xff] %vm33136_vm1, %v37118_v50  ;;  %33184 = vst.msk [vmem:[#allocation7 + $0x178] sm:$0xff] %vm33136_vm1, %v37214_v6  ;;  %v17166_v25 = vpop.f32.mrb[49].mxu0  ;;  %v17926_v55 = vpop.f32.mrb[49].mxu1  ;;  %37620 = vmatmul.mubr.f32.vlgmr.msra.gmra.mrb[66].mxu0 %v43099_v46  ;;  %37716 = vmatmul.mubr.f32.vlgmr.msra.gmra.mrb[66].mxu1 %v43099_v46 }
 0x46a   :  { %33175 = vst.msk [vmem:[#allocation7 + $0x130] sm:$0xff] %vm33136_vm1, %v17166_v25  ;;  %33183 = vst.msk [vmem:[#allocation7 + $0x170] sm:$0xff] %vm33136_vm1, %v17926_v55  ;;  %40010 = vmatpush3.bf16.msra.mxu0 %v45336_v3  ;;  %40034 = vmatpush3.bf16.msra.mxu1 %v45337_v16  ;;  %v45338_v3 = vld [vmem:[#allocation37_spill] sm:$0xff]  ;;  %v45339_v16 = vld [vmem:[#allocation38_spill] sm:$0xff] }
 0x46b   :  { %40012 = vmatprep.subr.bf16.mxu0 %v45332_v43  ;;  %40036 = vmatprep.subr.bf16.mxu1 %v45333_v8 }
 0x46c   :  { %37622 = vmatprep.mubr.f32.mxu0 %v43139_v61  ;;  %37718 = vmatprep.mubr.f32.mxu1 %v43139_v61 }
 0x46d   :  { %37623 = vmatmul.mubr.f32.gmra.mrb[68].mxu0 %v43146_v34  ;;  %37719 = vmatmul.mubr.f32.gmra.mrb[68].mxu1 %v43146_v34 }
 0x46e   :  { %37625 = vmatprep.mubr.f32.mxu0 %v43150_v30  ;;  %37721 = vmatprep.mubr.f32.mxu1 %v43150_v30 }
 0x471   :  { %37626 = vmatmul.mubr.f32.gmra.mrb[70].mxu0 %v43172_v60  ;;  %37722 = vmatmul.mubr.f32.gmra.mrb[70].mxu1 %v43172_v60 }
 0x472   :  { %37628 = vmatprep.mubr.f32.mxu0 %v43186_v22  ;;  %37724 = vmatprep.mubr.f32.mxu1 %v43186_v22 }
 0x475   :  { %37629 = vmatmul.mubr.f32.gmra.mrb[72].mxu0 %v43211_v18  ;;  %37725 = vmatmul.mubr.f32.gmra.mrb[72].mxu1 %v43211_v18 }
 0x476   :  { %37635 = vmatprep.mubr.f32.mxu0 %v43115_v21  ;;  %37731 = vmatprep.mubr.f32.mxu1 %v43115_v21 }
 0x479   :  { %37636 = vmatmul.mubr.f32.vlgmr.msra.gmra.mrb[66].mxu0 %v43118_v38  ;;  %37732 = vmatmul.mubr.f32.vlgmr.msra.gmra.mrb[66].mxu1 %v43118_v38 }
 0x47a   :  { %40014 = vmatpush3.bf16.msra.mxu0 %v45332_v43  ;;  %40038 = vmatpush3.bf16.msra.mxu1 %v45333_v8 }
 0x47b   :  { %40016 = vmatprep.subr.bf16.mxu0 %v45338_v3  ;;  %40040 = vmatprep.subr.bf16.mxu1 %v45339_v16 }
 0x47c   :  { %37638 = vmatprep.mubr.f32.mxu0 %v43163_v7  ;;  %37734 = vmatprep.mubr.f32.mxu1 %v43163_v7 }
 0x47d   :  { %37639 = vmatmul.mubr.f32.gmra.mrb[68].mxu0 %v43166_v42  ;;  %37735 = vmatmul.mubr.f32.gmra.mrb[68].mxu1 %v43166_v42 }
 0x47e   :  { %37641 = vmatprep.mubr.f32.mxu0 %v43170_v24  ;;  %37737 = vmatprep.mubr.f32.mxu1 %v43170_v24 }
 0x481   :  { %37642 = vmatmul.mubr.f32.gmra.mrb[70].mxu0 %v43200_v40  ;;  %37738 = vmatmul.mubr.f32.gmra.mrb[70].mxu1 %v43200_v40 }
 0x482   :  { %37644 = vmatprep.mubr.f32.mxu0 %v43209_v27  ;;  %37740 = vmatprep.mubr.f32.mxu1 %v43209_v27 }
 0x485   :  { %37645 = vmatmul.mubr.f32.gmra.mrb[72].mxu0 %v43231_v5  ;;  %37741 = vmatmul.mubr.f32.gmra.mrb[72].mxu1 %v43231_v5 }
 0x486   :  { %37651 = vmatprep.mubr.f32.mxu0 %v43129_v35  ;;  %37747 = vmatprep.mubr.f32.mxu1 %v43129_v35 }
 0x489   :  { %37652 = vmatmul.mubr.f32.vlgmr.msra.gmra.mrb[66].mxu0 %v43132_v41  ;;  %37748 = vmatmul.mubr.f32.vlgmr.msra.gmra.mrb[66].mxu1 %v43132_v41 }
 0x48a   :  { %40018 = vmatpush3.bf16.msra.mxu0 %v45338_v3  ;;  %40042 = vmatpush3.bf16.msra.mxu1 %v45339_v16 }
 0x48b   :  { %40020 = vmatprep.subr.bf16.mxu0 %v45332_v43  ;;  %40044 = vmatprep.subr.bf16.mxu1 %v45333_v8 }
 0x48c   :  { %37654 = vmatprep.mubr.f32.mxu0 %v43184_v36  ;;  %37750 = vmatprep.mubr.f32.mxu1 %v43184_v36 }
 0x48d   :  { %37655 = vmatmul.mubr.f32.gmra.mrb[68].mxu0 %v43191_v44  ;;  %37751 = vmatmul.mubr.f32.gmra.mrb[68].mxu1 %v43191_v44 }
 0x48e   :  { %37657 = vmatprep.mubr.f32.mxu0 %v43197_v53  ;;  %37753 = vmatprep.mubr.f32.mxu1 %v43197_v53 }
 0x491   :  { %37658 = vmatmul.mubr.f32.gmra.mrb[70].mxu0 %v43228_v10  ;;  %37754 = vmatmul.mubr.f32.gmra.mrb[70].mxu1 %v43228_v10 }
 0x492   :  { %37660 = vmatprep.mubr.f32.mxu0 %v43238_v33  ;;  %37756 = vmatprep.mubr.f32.mxu1 %v43238_v33 }
 0x495   :  { %37661 = vmatmul.mubr.f32.gmra.mrb[72].mxu0 %v43257_v31  ;;  %37757 = vmatmul.mubr.f32.gmra.mrb[72].mxu1 %v43257_v31 }
 0x496   :  { %37667 = vmatprep.mubr.f32.mxu0 %v43097_v13  ;;  %37763 = vmatprep.mubr.f32.mxu1 %v43097_v13 }
 0x499   :  { %37668 = vmatmul.mubr.f32.vlgmr.msra.gmra.mrb[66].mxu0 %v43099_v46  ;;  %37764 = vmatmul.mubr.f32.vlgmr.msra.gmra.mrb[66].mxu1 %v43099_v46 }
 0x49a   :  { %40022 = vmatpush3.bf16.msra.mxu0 %v45332_v43  ;;  %40046 = vmatpush3.bf16.msra.mxu1 %v45333_v8  ;;  %v45342_v43 = vld [vmem:[#allocation47_spill] sm:$0xff]  ;;  %v45343_v8 = vld [vmem:[#allocation48_spill] sm:$0xff] }
 0x49b   :  { %40048 = vmatprep.subr.bf16.mxu0 %v45340_v12  ;;  %40072 = vmatprep.subr.bf16.mxu1 %v45341_v47 }
 0x49c   :  { %37670 = vmatprep.mubr.f32.mxu0 %v43139_v61  ;;  %37766 = vmatprep.mubr.f32.mxu1 %v43139_v61 }
 0x49d   :  { %37671 = vmatmul.mubr.f32.gmra.mrb[68].mxu0 %v43146_v34  ;;  %37767 = vmatmul.mubr.f32.gmra.mrb[68].mxu1 %v43146_v34 }
 0x49e   :  { %37673 = vmatprep.mubr.f32.mxu0 %v43150_v30  ;;  %37769 = vmatprep.mubr.f32.mxu1 %v43150_v30 }
 0x4a1   :  { %37674 = vmatmul.mubr.f32.gmra.mrb[70].mxu0 %v43172_v60  ;;  %37770 = vmatmul.mubr.f32.gmra.mrb[70].mxu1 %v43172_v60 }
 0x4a2   :  { %37676 = vmatprep.mubr.f32.mxu0 %v43186_v22  ;;  %37772 = vmatprep.mubr.f32.mxu1 %v43186_v22 }
 0x4a5   :  { %37677 = vmatmul.mubr.f32.gmra.mrb[72].mxu0 %v43211_v18  ;;  %37773 = vmatmul.mubr.f32.gmra.mrb[72].mxu1 %v43211_v18 }
 0x4a6   :  { %37683 = vmatprep.mubr.f32.mxu0 %v43097_v13  ;;  %37779 = vmatprep.mubr.f32.mxu1 %v43097_v13 }
 0x4a9   :  { %37684 = vmatmul.mubr.f32.vlgmr.msra.gmra.mrb[66].mxu0 %v43099_v46  ;;  %37780 = vmatmul.mubr.f32.vlgmr.msra.gmra.mrb[66].mxu1 %v43099_v46 }
 0x4aa   :  { %40050 = vmatpush3.bf16.msra.mxu0 %v45340_v12  ;;  %40074 = vmatpush3.bf16.msra.mxu1 %v45341_v47 }
 0x4ab   :  { %40052 = vmatprep.subr.bf16.mxu0 %v45342_v43  ;;  %40076 = vmatprep.subr.bf16.mxu1 %v45343_v8 }
 0x4ac   :  { %37686 = vmatprep.mubr.f32.mxu0 %v43139_v61  ;;  %37782 = vmatprep.mubr.f32.mxu1 %v43139_v61 }
 0x4ad   :  { %37687 = vmatmul.mubr.f32.gmra.mrb[68].mxu0 %v43146_v34  ;;  %37783 = vmatmul.mubr.f32.gmra.mrb[68].mxu1 %v43146_v34 }
 0x4ae   :  { %37689 = vmatprep.mubr.f32.mxu0 %v43150_v30  ;;  %37785 = vmatprep.mubr.f32.mxu1 %v43150_v30 }
 0x4b1   :  { %37690 = vmatmul.mubr.f32.gmra.mrb[70].mxu0 %v43172_v60  ;;  %37786 = vmatmul.mubr.f32.gmra.mrb[70].mxu1 %v43172_v60 }
 0x4b2   :  { %37692 = vmatprep.mubr.f32.mxu0 %v43186_v22  ;;  %37788 = vmatprep.mubr.f32.mxu1 %v43186_v22 }
 0x4b5   :  { %37693 = vmatmul.mubr.f32.gmra.mrb[72].mxu0 %v43211_v18  ;;  %37789 = vmatmul.mubr.f32.gmra.mrb[72].mxu1 %v43211_v18 }
 0x4b6   :  { %37795 = vmatprep.mubr.f32.mxu0 %v43177_v20  ;;  %37891 = vmatprep.mubr.f32.mxu1 %v43177_v20 }
 0x4b9   :  { %37796 = vmatmul.mubr.f32.vlgmr.msra.gmra.mrb[74].mxu0 %v43179_v59  ;;  %37892 = vmatmul.mubr.f32.vlgmr.msra.gmra.mrb[74].mxu1 %v43179_v59 }
 0x4ba   :  { %40054 = vmatpush3.bf16.msra.mxu0 %v45342_v43  ;;  %40078 = vmatpush3.bf16.msra.mxu1 %v45343_v8 }
 0x4bb   :  { %40056 = vmatprep.subr.bf16.mxu0 %v45344_v17  ;;  %40080 = vmatprep.subr.bf16.mxu1 %v45345_v63 }
 0x4bc   :  { %v37301_v62 = vpop.f32.mrb[50].mxu0  ;;  %v37397_v39 = vpop.f32.mrb[50].mxu1  ;;  %37798 = vmatprep.mubr.f32.mxu0 %v43244_v28  ;;  %37894 = vmatprep.mubr.f32.mxu1 %v43244_v28 }
 0x4bd   :  { %33186 = vst.msk [vmem:[#allocation7 + $0x188] sm:$0xff] %vm33136_vm1, %v37301_v62  ;;  %33194 = vst.msk [vmem:[#allocation7 + $0x1c8] sm:$0xff] %vm33136_vm1, %v37397_v39  ;;  %v18650_v58 = vpop.f32.mrb[51].mxu0  ;;  %v19410_v45 = vpop.f32.mrb[51].mxu1  ;;  %37799 = vmatmul.mubr.f32.gmra.mrb[76].mxu0 %v43252_v37  ;;  %37895 = vmatmul.mubr.f32.gmra.mrb[76].mxu1 %v43252_v37 }
 0x4be   :  { %33185 = vst.msk [vmem:[#allocation7 + $0x180] sm:$0xff] %vm33136_vm1, %v18650_v58  ;;  %33193 = vst.msk [vmem:[#allocation7 + $0x1c0] sm:$0xff] %vm33136_vm1, %v19410_v45  ;;  %37801 = vmatprep.mubr.f32.mxu0 %v43261_v4  ;;  %37897 = vmatprep.mubr.f32.mxu1 %v43261_v4 }
 0x4c0   :  { %v37304_v50 = vpop.f32.mrb[52].mxu0  ;;  %v37400_v6 = vpop.f32.mrb[52].mxu1 }
 0x4c1   :  { %33188 = vst.msk [vmem:[#allocation7 + $0x198] sm:$0xff] %vm33136_vm1, %v37304_v50  ;;  %33196 = vst.msk [vmem:[#allocation7 + $0x1d8] sm:$0xff] %vm33136_vm1, %v37400_v6  ;;  %v18662_v25 = vpop.f32.mrb[53].mxu0  ;;  %v19422_v55 = vpop.f32.mrb[53].mxu1  ;;  %37802 = vmatmul.mubr.f32.gmra.mrb[78].mxu0 %v43271_v23  ;;  %37898 = vmatmul.mubr.f32.gmra.mrb[78].mxu1 %v43271_v23  ;;  %v45348_v50 = vld [vmem:[#allocation49_spill] sm:$0xff]  ;;  %v45349_v6 = vld [vmem:[#allocation50_spill] sm:$0xff] }
 0x4c2   :  { %33187 = vst.msk [vmem:[#allocation7 + $0x190] sm:$0xff] %vm33136_vm1, %v18662_v25  ;;  %33195 = vst.msk [vmem:[#allocation7 + $0x1d0] sm:$0xff] %vm33136_vm1, %v19422_v55  ;;  %37804 = vmatprep.mubr.f32.mxu0 %v43277_v49  ;;  %37900 = vmatprep.mubr.f32.mxu1 %v43277_v49  ;;  %v45352_v25 = vld [vmem:[#allocation51_spill] sm:$0xff]  ;;  %v45353_v55 = vld [vmem:[#allocation52_spill] sm:$0xff] }
 0x4c4   :  { %v37307_v3 = vpop.f32.mrb[54].mxu0  ;;  %v37403_v16 = vpop.f32.mrb[54].mxu1 }
 0x4c5   :  { %33190 = vst.msk [vmem:[#allocation7 + $0x1a8] sm:$0xff] %vm33136_vm1, %v37307_v3  ;;  %33198 = vst.msk [vmem:[#allocation7 + $0x1e8] sm:$0xff] %vm33136_vm1, %v37403_v16  ;;  %v18674_v43 = vpop.f32.mrb[55].mxu0  ;;  %v19434_v8 = vpop.f32.mrb[55].mxu1  ;;  %37805 = vmatmul.mubr.f32.gmra.mrb[80].mxu0 %v43281_v14  ;;  %37901 = vmatmul.mubr.f32.gmra.mrb[80].mxu1 %v43281_v14 }
 0x4c6   :  { %33189 = vst.msk [vmem:[#allocation7 + $0x1a0] sm:$0xff] %vm33136_vm1, %v18674_v43  ;;  %33197 = vst.msk [vmem:[#allocation7 + $0x1e0] sm:$0xff] %vm33136_vm1, %v19434_v8  ;;  %37811 = vmatprep.mubr.f32.mxu0 %v43097_v13  ;;  %37907 = vmatprep.mubr.f32.mxu1 %v43097_v13 }
 0x4c8   :  { %v37310_v62 = vpop.f32.mrb[56].mxu0  ;;  %v37406_v39 = vpop.f32.mrb[56].mxu1 }
 0x4c9   :  { %33192 = vst.msk [vmem:[#allocation7 + $0x1b8] sm:$0xff] %vm33136_vm1, %v37310_v62  ;;  %33200 = vst.msk [vmem:[#allocation7 + $0x1f8] sm:$0xff] %vm33136_vm1, %v37406_v39  ;;  %v18686_v58 = vpop.f32.mrb[57].mxu0  ;;  %v19446_v45 = vpop.f32.mrb[57].mxu1  ;;  %37812 = vmatmul.mubr.f32.vlgmr.msra.gmra.mrb[74].mxu0 %v43099_v46  ;;  %37908 = vmatmul.mubr.f32.vlgmr.msra.gmra.mrb[74].mxu1 %v43099_v46 }
 0x4ca   :  { %33191 = vst.msk [vmem:[#allocation7 + $0x1b0] sm:$0xff] %vm33136_vm1, %v18686_v58  ;;  %33199 = vst.msk [vmem:[#allocation7 + $0x1f0] sm:$0xff] %vm33136_vm1, %v19446_v45  ;;  %40058 = vmatpush3.bf16.msra.mxu0 %v45344_v17  ;;  %40082 = vmatpush3.bf16.msra.mxu1 %v45345_v63  ;;  %v45346_v17 = vld [vmem:[#allocation45_spill] sm:$0xff]  ;;  %v45347_v63 = vld [vmem:[#allocation46_spill] sm:$0xff] }
 0x4cb   :  { %40060 = vmatprep.subr.bf16.mxu0 %v45340_v12  ;;  %40084 = vmatprep.subr.bf16.mxu1 %v45341_v47 }
 0x4cc   :  { %37814 = vmatprep.mubr.f32.mxu0 %v43139_v61  ;;  %37910 = vmatprep.mubr.f32.mxu1 %v43139_v61 }
 0x4cd   :  { %37815 = vmatmul.mubr.f32.gmra.mrb[76].mxu0 %v43146_v34  ;;  %37911 = vmatmul.mubr.f32.gmra.mrb[76].mxu1 %v43146_v34 }
 0x4ce   :  { %37817 = vmatprep.mubr.f32.mxu0 %v43150_v30  ;;  %37913 = vmatprep.mubr.f32.mxu1 %v43150_v30 }
 0x4d1   :  { %37818 = vmatmul.mubr.f32.gmra.mrb[78].mxu0 %v43172_v60  ;;  %37914 = vmatmul.mubr.f32.gmra.mrb[78].mxu1 %v43172_v60 }
 0x4d2   :  { %37820 = vmatprep.mubr.f32.mxu0 %v43186_v22  ;;  %37916 = vmatprep.mubr.f32.mxu1 %v43186_v22 }
 0x4d5   :  { %37821 = vmatmul.mubr.f32.gmra.mrb[80].mxu0 %v43211_v18  ;;  %37917 = vmatmul.mubr.f32.gmra.mrb[80].mxu1 %v43211_v18 }
 0x4d6   :  { %37827 = vmatprep.mubr.f32.mxu0 %v43115_v21  ;;  %37923 = vmatprep.mubr.f32.mxu1 %v43115_v21 }
 0x4d9   :  { %37828 = vmatmul.mubr.f32.vlgmr.msra.gmra.mrb[74].mxu0 %v43118_v38  ;;  %37924 = vmatmul.mubr.f32.vlgmr.msra.gmra.mrb[74].mxu1 %v43118_v38 }
 0x4da   :  { %40062 = vmatpush3.bf16.msra.mxu0 %v45340_v12  ;;  %40086 = vmatpush3.bf16.msra.mxu1 %v45341_v47 }
 0x4db   :  { %40064 = vmatprep.subr.bf16.mxu0 %v45346_v17  ;;  %40088 = vmatprep.subr.bf16.mxu1 %v45347_v63 }
 0x4dc   :  { %37830 = vmatprep.mubr.f32.mxu0 %v43163_v7  ;;  %37926 = vmatprep.mubr.f32.mxu1 %v43163_v7 }
 0x4dd   :  { %37831 = vmatmul.mubr.f32.gmra.mrb[76].mxu0 %v43166_v42  ;;  %37927 = vmatmul.mubr.f32.gmra.mrb[76].mxu1 %v43166_v42 }
 0x4de   :  { %37833 = vmatprep.mubr.f32.mxu0 %v43170_v24  ;;  %37929 = vmatprep.mubr.f32.mxu1 %v43170_v24 }
 0x4e1   :  { %37834 = vmatmul.mubr.f32.gmra.mrb[78].mxu0 %v43200_v40  ;;  %37930 = vmatmul.mubr.f32.gmra.mrb[78].mxu1 %v43200_v40 }
 0x4e2   :  { %37836 = vmatprep.mubr.f32.mxu0 %v43209_v27  ;;  %37932 = vmatprep.mubr.f32.mxu1 %v43209_v27 }
 0x4e5   :  { %37837 = vmatmul.mubr.f32.gmra.mrb[80].mxu0 %v43231_v5  ;;  %37933 = vmatmul.mubr.f32.gmra.mrb[80].mxu1 %v43231_v5 }
 0x4e6   :  { %37843 = vmatprep.mubr.f32.mxu0 %v43129_v35  ;;  %37939 = vmatprep.mubr.f32.mxu1 %v43129_v35 }
 0x4e9   :  { %37844 = vmatmul.mubr.f32.vlgmr.msra.gmra.mrb[74].mxu0 %v43132_v41  ;;  %37940 = vmatmul.mubr.f32.vlgmr.msra.gmra.mrb[74].mxu1 %v43132_v41 }
 0x4ea   :  { %40066 = vmatpush3.bf16.msra.mxu0 %v45346_v17  ;;  %40090 = vmatpush3.bf16.msra.mxu1 %v45347_v63 }
 0x4eb   :  { %40068 = vmatprep.subr.bf16.mxu0 %v45340_v12  ;;  %40092 = vmatprep.subr.bf16.mxu1 %v45341_v47 }
 0x4ec   :  { %37846 = vmatprep.mubr.f32.mxu0 %v43184_v36  ;;  %37942 = vmatprep.mubr.f32.mxu1 %v43184_v36 }
 0x4ed   :  { %37847 = vmatmul.mubr.f32.gmra.mrb[76].mxu0 %v43191_v44  ;;  %37943 = vmatmul.mubr.f32.gmra.mrb[76].mxu1 %v43191_v44 }
 0x4ee   :  { %37849 = vmatprep.mubr.f32.mxu0 %v43197_v53  ;;  %37945 = vmatprep.mubr.f32.mxu1 %v43197_v53 }
 0x4f1   :  { %37850 = vmatmul.mubr.f32.gmra.mrb[78].mxu0 %v43228_v10  ;;  %37946 = vmatmul.mubr.f32.gmra.mrb[78].mxu1 %v43228_v10 }
 0x4f2   :  { %37852 = vmatprep.mubr.f32.mxu0 %v43238_v33  ;;  %37948 = vmatprep.mubr.f32.mxu1 %v43238_v33 }
 0x4f5   :  { %37853 = vmatmul.mubr.f32.gmra.mrb[80].mxu0 %v43257_v31  ;;  %37949 = vmatmul.mubr.f32.gmra.mrb[80].mxu1 %v43257_v31 }
 0x4f6   :  { %37859 = vmatprep.mubr.f32.mxu0 %v43097_v13  ;;  %37955 = vmatprep.mubr.f32.mxu1 %v43097_v13 }
 0x4f9   :  { %37860 = vmatmul.mubr.f32.vlgmr.msra.gmra.mrb[74].mxu0 %v43099_v46  ;;  %37956 = vmatmul.mubr.f32.vlgmr.msra.gmra.mrb[74].mxu1 %v43099_v46 }
 0x4fa   :  { %40070 = vmatpush3.bf16.msra.mxu0 %v45340_v12  ;;  %40094 = vmatpush3.bf16.msra.mxu1 %v45341_v47  ;;  %v45350_v12 = vld [vmem:[#allocation55_spill] sm:$0xff]  ;;  %v45351_v47 = vld [vmem:[#allocation56_spill] sm:$0xff] }
 0x4fb   :  { %40096 = vmatprep.subr.bf16.mxu0 %v45348_v50  ;;  %40120 = vmatprep.subr.bf16.mxu1 %v45349_v6 }
 0x4fc   :  { %37862 = vmatprep.mubr.f32.mxu0 %v43139_v61  ;;  %37958 = vmatprep.mubr.f32.mxu1 %v43139_v61 }
 0x4fd   :  { %37863 = vmatmul.mubr.f32.gmra.mrb[76].mxu0 %v43146_v34  ;;  %37959 = vmatmul.mubr.f32.gmra.mrb[76].mxu1 %v43146_v34 }
 0x4fe   :  { %37865 = vmatprep.mubr.f32.mxu0 %v43150_v30  ;;  %37961 = vmatprep.mubr.f32.mxu1 %v43150_v30 }
 0x501   :  { %37866 = vmatmul.mubr.f32.gmra.mrb[78].mxu0 %v43172_v60  ;;  %37962 = vmatmul.mubr.f32.gmra.mrb[78].mxu1 %v43172_v60 }
 0x502   :  { %37868 = vmatprep.mubr.f32.mxu0 %v43186_v22  ;;  %37964 = vmatprep.mubr.f32.mxu1 %v43186_v22 }
 0x505   :  { %37869 = vmatmul.mubr.f32.gmra.mrb[80].mxu0 %v43211_v18  ;;  %37965 = vmatmul.mubr.f32.gmra.mrb[80].mxu1 %v43211_v18 }
 0x506   :  { %37875 = vmatprep.mubr.f32.mxu0 %v43097_v13  ;;  %37971 = vmatprep.mubr.f32.mxu1 %v43097_v13 }
 0x509   :  { %37876 = vmatmul.mubr.f32.vlgmr.msra.gmra.mrb[74].mxu0 %v43099_v46  ;;  %37972 = vmatmul.mubr.f32.vlgmr.msra.gmra.mrb[74].mxu1 %v43099_v46 }
 0x50a   :  { %40098 = vmatpush3.bf16.msra.mxu0 %v45348_v50  ;;  %40122 = vmatpush3.bf16.msra.mxu1 %v45349_v6 }
 0x50b   :  { %40100 = vmatprep.subr.bf16.mxu0 %v45350_v12  ;;  %40124 = vmatprep.subr.bf16.mxu1 %v45351_v47 }
 0x50c   :  { %37878 = vmatprep.mubr.f32.mxu0 %v43139_v61  ;;  %37974 = vmatprep.mubr.f32.mxu1 %v43139_v61 }
 0x50d   :  { %37879 = vmatmul.mubr.f32.gmra.mrb[76].mxu0 %v43146_v34  ;;  %37975 = vmatmul.mubr.f32.gmra.mrb[76].mxu1 %v43146_v34 }
 0x50e   :  { %37881 = vmatprep.mubr.f32.mxu0 %v43150_v30  ;;  %37977 = vmatprep.mubr.f32.mxu1 %v43150_v30 }
 0x511   :  { %37882 = vmatmul.mubr.f32.gmra.mrb[78].mxu0 %v43172_v60  ;;  %37978 = vmatmul.mubr.f32.gmra.mrb[78].mxu1 %v43172_v60 }
 0x512   :  { %37884 = vmatprep.mubr.f32.mxu0 %v43186_v22  ;;  %37980 = vmatprep.mubr.f32.mxu1 %v43186_v22 }
 0x515   :  { %37885 = vmatmul.mubr.f32.gmra.mrb[80].mxu0 %v43211_v18  ;;  %37981 = vmatmul.mubr.f32.gmra.mrb[80].mxu1 %v43211_v18 }
 0x516   :  { %37987 = vmatprep.mubr.f32.mxu0 %v43177_v20  ;;  %38083 = vmatprep.mubr.f32.mxu1 %v43177_v20 }
 0x519   :  { %37988 = vmatmul.mubr.f32.vlgmr.msra.gmra.mrb[82].mxu0 %v43179_v59  ;;  %38084 = vmatmul.mubr.f32.vlgmr.msra.gmra.mrb[82].mxu1 %v43179_v59 }
 0x51a   :  { %40102 = vmatpush3.bf16.msra.mxu0 %v45350_v12  ;;  %40126 = vmatpush3.bf16.msra.mxu1 %v45351_v47 }
 0x51b   :  { %40104 = vmatprep.subr.bf16.mxu0 %v45352_v25  ;;  %40128 = vmatprep.subr.bf16.mxu1 %v45353_v55 }
 0x51c   :  { %v37493_v3 = vpop.f32.mrb[58].mxu0  ;;  %v37589_v16 = vpop.f32.mrb[58].mxu1  ;;  %37990 = vmatprep.mubr.f32.mxu0 %v43244_v28  ;;  %38086 = vmatprep.mubr.f32.mxu1 %v43244_v28 }
 0x51d   :  { %33202 = vst.msk [vmem:[#allocation7 + $0x208] sm:$0xff] %vm33136_vm1, %v37493_v3  ;;  %33210 = vst.msk [vmem:[#allocation7 + $0x248] sm:$0xff] %vm33136_vm1, %v37589_v16  ;;  %v20170_v43 = vpop.f32.mrb[59].mxu0  ;;  %v20930_v8 = vpop.f32.mrb[59].mxu1  ;;  %37991 = vmatmul.mubr.f32.gmra.mrb[84].mxu0 %v43252_v37  ;;  %38087 = vmatmul.mubr.f32.gmra.mrb[84].mxu1 %v43252_v37 }
 0x51e   :  { %33201 = vst.msk [vmem:[#allocation7 + $0x200] sm:$0xff] %vm33136_vm1, %v20170_v43  ;;  %33209 = vst.msk [vmem:[#allocation7 + $0x240] sm:$0xff] %vm33136_vm1, %v20930_v8  ;;  %37993 = vmatprep.mubr.f32.mxu0 %v43261_v4  ;;  %38089 = vmatprep.mubr.f32.mxu1 %v43261_v4 }
 0x520   :  { %v37496_v62 = vpop.f32.mrb[60].mxu0  ;;  %v37592_v39 = vpop.f32.mrb[60].mxu1 }
 0x521   :  { %33204 = vst.msk [vmem:[#allocation7 + $0x218] sm:$0xff] %vm33136_vm1, %v37496_v62  ;;  %33212 = vst.msk [vmem:[#allocation7 + $0x258] sm:$0xff] %vm33136_vm1, %v37592_v39  ;;  %v20182_v58 = vpop.f32.mrb[61].mxu0  ;;  %v20942_v45 = vpop.f32.mrb[61].mxu1  ;;  %37994 = vmatmul.mubr.f32.gmra.mrb[86].mxu0 %v43271_v23  ;;  %38090 = vmatmul.mubr.f32.gmra.mrb[86].mxu1 %v43271_v23  ;;  %v45356_v62 = vld [vmem:[#allocation57_spill] sm:$0xff]  ;;  %v45357_v39 = vld [vmem:[#allocation58_spill] sm:$0xff] }
 0x522   :  { %33203 = vst.msk [vmem:[#allocation7 + $0x210] sm:$0xff] %vm33136_vm1, %v20182_v58  ;;  %33211 = vst.msk [vmem:[#allocation7 + $0x250] sm:$0xff] %vm33136_vm1, %v20942_v45  ;;  %37996 = vmatprep.mubr.f32.mxu0 %v43277_v49  ;;  %38092 = vmatprep.mubr.f32.mxu1 %v43277_v49 }
 0x524   :  { %v37499_v17 = vpop.f32.mrb[62].mxu0  ;;  %v37595_v63 = vpop.f32.mrb[62].mxu1 }
 0x525   :  { %33206 = vst.msk [vmem:[#allocation7 + $0x228] sm:$0xff] %vm33136_vm1, %v37499_v17  ;;  %33214 = vst.msk [vmem:[#allocation7 + $0x268] sm:$0xff] %vm33136_vm1, %v37595_v63  ;;  %v20194_v12 = vpop.f32.mrb[63].mxu0  ;;  %v20954_v47 = vpop.f32.mrb[63].mxu1  ;;  %37997 = vmatmul.mubr.f32.gmra.mrb[88].mxu0 %v43281_v14  ;;  %38093 = vmatmul.mubr.f32.gmra.mrb[88].mxu1 %v43281_v14 }
 0x526   :  { %33205 = vst.msk [vmem:[#allocation7 + $0x220] sm:$0xff] %vm33136_vm1, %v20194_v12  ;;  %33213 = vst.msk [vmem:[#allocation7 + $0x260] sm:$0xff] %vm33136_vm1, %v20954_v47  ;;  %38003 = vmatprep.mubr.f32.mxu0 %v43097_v13  ;;  %38099 = vmatprep.mubr.f32.mxu1 %v43097_v13 }
 0x528   :  { %v37502_v3 = vpop.f32.mrb[64].mxu0  ;;  %v37598_v16 = vpop.f32.mrb[64].mxu1 }
 0x529   :  { %33208 = vst.msk [vmem:[#allocation7 + $0x238] sm:$0xff] %vm33136_vm1, %v37502_v3  ;;  %33216 = vst.msk [vmem:[#allocation7 + $0x278] sm:$0xff] %vm33136_vm1, %v37598_v16  ;;  %v20206_v43 = vpop.f32.mrb[65].mxu0  ;;  %v20966_v8 = vpop.f32.mrb[65].mxu1  ;;  %38004 = vmatmul.mubr.f32.vlgmr.msra.gmra.mrb[82].mxu0 %v43099_v46  ;;  %38100 = vmatmul.mubr.f32.vlgmr.msra.gmra.mrb[82].mxu1 %v43099_v46 }
 0x52a   :  { %33207 = vst.msk [vmem:[#allocation7 + $0x230] sm:$0xff] %vm33136_vm1, %v20206_v43  ;;  %33215 = vst.msk [vmem:[#allocation7 + $0x270] sm:$0xff] %vm33136_vm1, %v20966_v8  ;;  %40106 = vmatpush3.bf16.msra.mxu0 %v45352_v25  ;;  %40130 = vmatpush3.bf16.msra.mxu1 %v45353_v55  ;;  %v45354_v25 = vld [vmem:[#allocation53_spill] sm:$0xff]  ;;  %v45355_v55 = vld [vmem:[#allocation54_spill] sm:$0xff] }
 0x52b   :  { %40108 = vmatprep.subr.bf16.mxu0 %v45348_v50  ;;  %40132 = vmatprep.subr.bf16.mxu1 %v45349_v6 }
 0x52c   :  { %38006 = vmatprep.mubr.f32.mxu0 %v43139_v61  ;;  %38102 = vmatprep.mubr.f32.mxu1 %v43139_v61 }
 0x52d   :  { %38007 = vmatmul.mubr.f32.gmra.mrb[84].mxu0 %v43146_v34  ;;  %38103 = vmatmul.mubr.f32.gmra.mrb[84].mxu1 %v43146_v34 }
 0x52e   :  { %38009 = vmatprep.mubr.f32.mxu0 %v43150_v30  ;;  %38105 = vmatprep.mubr.f32.mxu1 %v43150_v30 }
 0x531   :  { %38010 = vmatmul.mubr.f32.gmra.mrb[86].mxu0 %v43172_v60  ;;  %38106 = vmatmul.mubr.f32.gmra.mrb[86].mxu1 %v43172_v60 }
 0x532   :  { %38012 = vmatprep.mubr.f32.mxu0 %v43186_v22  ;;  %38108 = vmatprep.mubr.f32.mxu1 %v43186_v22 }
 0x535   :  { %38013 = vmatmul.mubr.f32.gmra.mrb[88].mxu0 %v43211_v18  ;;  %38109 = vmatmul.mubr.f32.gmra.mrb[88].mxu1 %v43211_v18 }
 0x536   :  { %38019 = vmatprep.mubr.f32.mxu0 %v43115_v21  ;;  %38115 = vmatprep.mubr.f32.mxu1 %v43115_v21 }
 0x539   :  { %38020 = vmatmul.mubr.f32.vlgmr.msra.gmra.mrb[82].mxu0 %v43118_v38  ;;  %38116 = vmatmul.mubr.f32.vlgmr.msra.gmra.mrb[82].mxu1 %v43118_v38 }
 0x53a   :  { %40110 = vmatpush3.bf16.msra.mxu0 %v45348_v50  ;;  %40134 = vmatpush3.bf16.msra.mxu1 %v45349_v6 }
 0x53b   :  { %40112 = vmatprep.subr.bf16.mxu0 %v45354_v25  ;;  %40136 = vmatprep.subr.bf16.mxu1 %v45355_v55 }
 0x53c   :  { %38022 = vmatprep.mubr.f32.mxu0 %v43163_v7  ;;  %38118 = vmatprep.mubr.f32.mxu1 %v43163_v7 }
 0x53d   :  { %38023 = vmatmul.mubr.f32.gmra.mrb[84].mxu0 %v43166_v42  ;;  %38119 = vmatmul.mubr.f32.gmra.mrb[84].mxu1 %v43166_v42 }
 0x53e   :  { %38025 = vmatprep.mubr.f32.mxu0 %v43170_v24  ;;  %38121 = vmatprep.mubr.f32.mxu1 %v43170_v24 }
 0x541   :  { %38026 = vmatmul.mubr.f32.gmra.mrb[86].mxu0 %v43200_v40  ;;  %38122 = vmatmul.mubr.f32.gmra.mrb[86].mxu1 %v43200_v40 }
 0x542   :  { %38028 = vmatprep.mubr.f32.mxu0 %v43209_v27  ;;  %38124 = vmatprep.mubr.f32.mxu1 %v43209_v27 }
 0x545   :  { %38029 = vmatmul.mubr.f32.gmra.mrb[88].mxu0 %v43231_v5  ;;  %38125 = vmatmul.mubr.f32.gmra.mrb[88].mxu1 %v43231_v5 }
 0x546   :  { %38035 = vmatprep.mubr.f32.mxu0 %v43129_v35  ;;  %38131 = vmatprep.mubr.f32.mxu1 %v43129_v35 }
 0x549   :  { %38036 = vmatmul.mubr.f32.vlgmr.msra.gmra.mrb[82].mxu0 %v43132_v41  ;;  %38132 = vmatmul.mubr.f32.vlgmr.msra.gmra.mrb[82].mxu1 %v43132_v41 }
 0x54a   :  { %40114 = vmatpush3.bf16.msra.mxu0 %v45354_v25  ;;  %40138 = vmatpush3.bf16.msra.mxu1 %v45355_v55 }
 0x54b   :  { %40116 = vmatprep.subr.bf16.mxu0 %v45348_v50  ;;  %40140 = vmatprep.subr.bf16.mxu1 %v45349_v6 }
 0x54c   :  { %38038 = vmatprep.mubr.f32.mxu0 %v43184_v36  ;;  %38134 = vmatprep.mubr.f32.mxu1 %v43184_v36 }
 0x54d   :  { %38039 = vmatmul.mubr.f32.gmra.mrb[84].mxu0 %v43191_v44  ;;  %38135 = vmatmul.mubr.f32.gmra.mrb[84].mxu1 %v43191_v44 }
 0x54e   :  { %38041 = vmatprep.mubr.f32.mxu0 %v43197_v53  ;;  %38137 = vmatprep.mubr.f32.mxu1 %v43197_v53 }
 0x551   :  { %38042 = vmatmul.mubr.f32.gmra.mrb[86].mxu0 %v43228_v10  ;;  %38138 = vmatmul.mubr.f32.gmra.mrb[86].mxu1 %v43228_v10 }
 0x552   :  { %38044 = vmatprep.mubr.f32.mxu0 %v43238_v33  ;;  %38140 = vmatprep.mubr.f32.mxu1 %v43238_v33 }
 0x555   :  { %38045 = vmatmul.mubr.f32.gmra.mrb[88].mxu0 %v43257_v31  ;;  %38141 = vmatmul.mubr.f32.gmra.mrb[88].mxu1 %v43257_v31 }
 0x556   :  { %38051 = vmatprep.mubr.f32.mxu0 %v43097_v13  ;;  %38147 = vmatprep.mubr.f32.mxu1 %v43097_v13 }
 0x559   :  { %38052 = vmatmul.mubr.f32.vlgmr.msra.gmra.mrb[82].mxu0 %v43099_v46  ;;  %38148 = vmatmul.mubr.f32.vlgmr.msra.gmra.mrb[82].mxu1 %v43099_v46 }
 0x55a   :  { %40118 = vmatpush3.bf16.msra.mxu0 %v45348_v50  ;;  %40142 = vmatpush3.bf16.msra.mxu1 %v45349_v6  ;;  %v45358_v50 = vld [vmem:[#allocation59_spill] sm:$0xff]  ;;  %v45359_v6 = vld [vmem:[#allocation60_spill] sm:$0xff] }
 0x55b   :  { %40144 = vmatprep.subr.bf16.mxu0 %v45356_v62  ;;  %40168 = vmatprep.subr.bf16.mxu1 %v45357_v39 }
 0x55c   :  { %38054 = vmatprep.mubr.f32.mxu0 %v43139_v61  ;;  %38150 = vmatprep.mubr.f32.mxu1 %v43139_v61 }
 0x55d   :  { %38055 = vmatmul.mubr.f32.gmra.mrb[84].mxu0 %v43146_v34  ;;  %38151 = vmatmul.mubr.f32.gmra.mrb[84].mxu1 %v43146_v34 }
 0x55e   :  { %38057 = vmatprep.mubr.f32.mxu0 %v43150_v30  ;;  %38153 = vmatprep.mubr.f32.mxu1 %v43150_v30 }
 0x561   :  { %38058 = vmatmul.mubr.f32.gmra.mrb[86].mxu0 %v43172_v60  ;;  %38154 = vmatmul.mubr.f32.gmra.mrb[86].mxu1 %v43172_v60 }
 0x562   :  { %38060 = vmatprep.mubr.f32.mxu0 %v43186_v22  ;;  %38156 = vmatprep.mubr.f32.mxu1 %v43186_v22 }
 0x565   :  { %38061 = vmatmul.mubr.f32.gmra.mrb[88].mxu0 %v43211_v18  ;;  %38157 = vmatmul.mubr.f32.gmra.mrb[88].mxu1 %v43211_v18 }
 0x566   :  { %38067 = vmatprep.mubr.f32.mxu0 %v43097_v13  ;;  %38163 = vmatprep.mubr.f32.mxu1 %v43097_v13 }
 0x569   :  { %38068 = vmatmul.mubr.f32.vlgmr.msra.gmra.mrb[82].mxu0 %v43099_v46  ;;  %38164 = vmatmul.mubr.f32.vlgmr.msra.gmra.mrb[82].mxu1 %v43099_v46 }
 0x56a   :  { %40146 = vmatpush3.bf16.msra.mxu0 %v45356_v62  ;;  %40170 = vmatpush3.bf16.msra.mxu1 %v45357_v39 }
 0x56b   :  { %40148 = vmatprep.subr.bf16.mxu0 %v43337_v19  ;;  %40172 = vmatprep.subr.bf16.mxu1 %v43339_v2 }
 0x56c   :  { %38070 = vmatprep.mubr.f32.mxu0 %v43139_v61  ;;  %38166 = vmatprep.mubr.f32.mxu1 %v43139_v61 }
 0x56d   :  { %38071 = vmatmul.mubr.f32.gmra.mrb[84].mxu0 %v43146_v34  ;;  %38167 = vmatmul.mubr.f32.gmra.mrb[84].mxu1 %v43146_v34 }
 0x56e   :  { %38073 = vmatprep.mubr.f32.mxu0 %v43150_v30  ;;  %38169 = vmatprep.mubr.f32.mxu1 %v43150_v30 }
 0x571   :  { %38074 = vmatmul.mubr.f32.gmra.mrb[86].mxu0 %v43172_v60  ;;  %38170 = vmatmul.mubr.f32.gmra.mrb[86].mxu1 %v43172_v60 }
 0x572   :  { %38076 = vmatprep.mubr.f32.mxu0 %v43186_v22  ;;  %38172 = vmatprep.mubr.f32.mxu1 %v43186_v22 }
 0x575   :  { %38077 = vmatmul.mubr.f32.gmra.mrb[88].mxu0 %v43211_v18  ;;  %38173 = vmatmul.mubr.f32.gmra.mrb[88].mxu1 %v43211_v18 }
 0x576   :  { %38179 = vmatprep.mubr.f32.mxu0 %v43177_v20  ;;  %38275 = vmatprep.mubr.f32.mxu1 %v43177_v20 }
 0x579   :  { %38180 = vmatmul.mubr.f32.vlgmr.msra.gmra.mrb[90].mxu0 %v43179_v59  ;;  %38276 = vmatmul.mubr.f32.vlgmr.msra.gmra.mrb[90].mxu1 %v43179_v59 }
 0x57a   :  { %40150 = vmatpush3.bf16.msra.mxu0 %v43337_v19  ;;  %40174 = vmatpush3.bf16.msra.mxu1 %v43339_v2 }
 0x57b   :  { %40152 = vmatprep.subr.bf16.mxu0 %v45358_v50  ;;  %40176 = vmatprep.subr.bf16.mxu1 %v45359_v6 }
 0x57c   :  { %v37685_v58 = vpop.f32.mrb[66].mxu0  ;;  %v37781_v45 = vpop.f32.mrb[66].mxu1  ;;  %38182 = vmatprep.mubr.f32.mxu0 %v43244_v28  ;;  %38278 = vmatprep.mubr.f32.mxu1 %v43244_v28 }
 0x57d   :  { %33218 = vst.msk [vmem:[#allocation7 + $0x288] sm:$0xff] %vm33136_vm1, %v37685_v58  ;;  %33226 = vst.msk [vmem:[#allocation7 + $0x2c8] sm:$0xff] %vm33136_vm1, %v37781_v45  ;;  %v21690_v17 = vpop.f32.mrb[67].mxu0  ;;  %v22450_v63 = vpop.f32.mrb[67].mxu1  ;;  %38183 = vmatmul.mubr.f32.gmra.mrb[92].mxu0 %v43252_v37  ;;  %38279 = vmatmul.mubr.f32.gmra.mrb[92].mxu1 %v43252_v37 }
 0x57e   :  { %33217 = vst.msk [vmem:[#allocation7 + $0x280] sm:$0xff] %vm33136_vm1, %v21690_v17  ;;  %33225 = vst.msk [vmem:[#allocation7 + $0x2c0] sm:$0xff] %vm33136_vm1, %v22450_v63  ;;  %38185 = vmatprep.mubr.f32.mxu0 %v43261_v4  ;;  %38281 = vmatprep.mubr.f32.mxu1 %v43261_v4 }
 0x580   :  { %v37688_v19 = vpop.f32.mrb[68].mxu0  ;;  %v37784_v2 = vpop.f32.mrb[68].mxu1 }
 0x581   :  { %33220 = vst.msk [vmem:[#allocation7 + $0x298] sm:$0xff] %vm33136_vm1, %v37688_v19  ;;  %33228 = vst.msk [vmem:[#allocation7 + $0x2d8] sm:$0xff] %vm33136_vm1, %v37784_v2  ;;  %v21702_v12 = vpop.f32.mrb[69].mxu0  ;;  %v22462_v47 = vpop.f32.mrb[69].mxu1  ;;  %38186 = vmatmul.mubr.f32.gmra.mrb[94].mxu0 %v43271_v23  ;;  %38282 = vmatmul.mubr.f32.gmra.mrb[94].mxu1 %v43271_v23 }
 0x582   :  { %33219 = vst.msk [vmem:[#allocation7 + $0x290] sm:$0xff] %vm33136_vm1, %v21702_v12  ;;  %33227 = vst.msk [vmem:[#allocation7 + $0x2d0] sm:$0xff] %vm33136_vm1, %v22462_v47  ;;  %38188 = vmatprep.mubr.f32.mxu0 %v43277_v49  ;;  %38284 = vmatprep.mubr.f32.mxu1 %v43277_v49 }
 0x584   :  { %v37691_v3 = vpop.f32.mrb[70].mxu0  ;;  %v37787_v16 = vpop.f32.mrb[70].mxu1 }
 0x585   :  { %33222 = vst.msk [vmem:[#allocation7 + $0x2a8] sm:$0xff] %vm33136_vm1, %v37691_v3  ;;  %33230 = vst.msk [vmem:[#allocation7 + $0x2e8] sm:$0xff] %vm33136_vm1, %v37787_v16  ;;  %v21714_v43 = vpop.f32.mrb[71].mxu0  ;;  %v22474_v8 = vpop.f32.mrb[71].mxu1  ;;  %38189 = vmatmul.mubr.f32.gmra.mrb[96].mxu0 %v43281_v14  ;;  %38285 = vmatmul.mubr.f32.gmra.mrb[96].mxu1 %v43281_v14 }
 0x586   :  { %33221 = vst.msk [vmem:[#allocation7 + $0x2a0] sm:$0xff] %vm33136_vm1, %v21714_v43  ;;  %33229 = vst.msk [vmem:[#allocation7 + $0x2e0] sm:$0xff] %vm33136_vm1, %v22474_v8  ;;  %38195 = vmatprep.mubr.f32.mxu0 %v43097_v13  ;;  %38291 = vmatprep.mubr.f32.mxu1 %v43097_v13 }
 0x588   :  { %v37694_v25 = vpop.f32.mrb[72].mxu0  ;;  %v37790_v55 = vpop.f32.mrb[72].mxu1 }
 0x589   :  { %33224 = vst.msk [vmem:[#allocation7 + $0x2b8] sm:$0xff] %vm33136_vm1, %v37694_v25  ;;  %33232 = vst.msk [vmem:[#allocation7 + $0x2f8] sm:$0xff] %vm33136_vm1, %v37790_v55  ;;  %v21726_v58 = vpop.f32.mrb[73].mxu0  ;;  %v22486_v45 = vpop.f32.mrb[73].mxu1  ;;  %38196 = vmatmul.mubr.f32.vlgmr.msra.gmra.mrb[90].mxu0 %v43099_v46  ;;  %38292 = vmatmul.mubr.f32.vlgmr.msra.gmra.mrb[90].mxu1 %v43099_v46  ;;  %v45363_v25 = vld [vmem:[#allocation64_spill] sm:$0xff]  ;;  %v45364_v55 = vld [vmem:[#allocation65_spill] sm:$0xff] }
 0x58a   :  { %33223 = vst.msk [vmem:[#allocation7 + $0x2b0] sm:$0xff] %vm33136_vm1, %v21726_v58  ;;  %33231 = vst.msk [vmem:[#allocation7 + $0x2f0] sm:$0xff] %vm33136_vm1, %v22486_v45  ;;  %40154 = vmatpush3.bf16.msra.mxu0 %v45358_v50  ;;  %40178 = vmatpush3.bf16.msra.mxu1 %v45359_v6  ;;  %v45365_v58 = vld [vmem:[#allocation66_spill] sm:$0xff]  ;;  %v45367_v45 = vld [vmem:[#allocation12_spill] sm:$0xff] }
 0x58b   :  { %40156 = vmatprep.subr.bf16.mxu0 %v45356_v62  ;;  %40180 = vmatprep.subr.bf16.mxu1 %v45357_v39 }
 0x58c   :  { %38198 = vmatprep.mubr.f32.mxu0 %v43139_v61  ;;  %38294 = vmatprep.mubr.f32.mxu1 %v43139_v61 }
 0x58d   :  { %38199 = vmatmul.mubr.f32.gmra.mrb[92].mxu0 %v43146_v34  ;;  %38295 = vmatmul.mubr.f32.gmra.mrb[92].mxu1 %v43146_v34 }
 0x58e   :  { %38201 = vmatprep.mubr.f32.mxu0 %v43150_v30  ;;  %38297 = vmatprep.mubr.f32.mxu1 %v43150_v30 }
 0x591   :  { %38202 = vmatmul.mubr.f32.gmra.mrb[94].mxu0 %v43172_v60  ;;  %38298 = vmatmul.mubr.f32.gmra.mrb[94].mxu1 %v43172_v60 }
 0x592   :  { %38204 = vmatprep.mubr.f32.mxu0 %v43186_v22  ;;  %38300 = vmatprep.mubr.f32.mxu1 %v43186_v22 }
 0x595   :  { %38205 = vmatmul.mubr.f32.gmra.mrb[96].mxu0 %v43211_v18  ;;  %38301 = vmatmul.mubr.f32.gmra.mrb[96].mxu1 %v43211_v18 }
 0x596   :  { %38211 = vmatprep.mubr.f32.mxu0 %v43115_v21  ;;  %38307 = vmatprep.mubr.f32.mxu1 %v43115_v21 }
 0x599   :  { %38212 = vmatmul.mubr.f32.vlgmr.msra.gmra.mrb[90].mxu0 %v43118_v38  ;;  %38308 = vmatmul.mubr.f32.vlgmr.msra.gmra.mrb[90].mxu1 %v43118_v38 }
 0x59a   :  { %40158 = vmatpush3.bf16.msra.mxu0 %v45356_v62  ;;  %40182 = vmatpush3.bf16.msra.mxu1 %v45357_v39 }
 0x59b   :  { %40160 = vmatprep.subr.bf16.mxu0 %v43329_v15  ;;  %40184 = vmatprep.subr.bf16.mxu1 %v43331_v32 }
 0x59c   :  { %38214 = vmatprep.mubr.f32.mxu0 %v43163_v7  ;;  %38310 = vmatprep.mubr.f32.mxu1 %v43163_v7 }
 0x59d   :  { %38215 = vmatmul.mubr.f32.gmra.mrb[92].mxu0 %v43166_v42  ;;  %38311 = vmatmul.mubr.f32.gmra.mrb[92].mxu1 %v43166_v42 }
 0x59e   :  { %38217 = vmatprep.mubr.f32.mxu0 %v43170_v24  ;;  %38313 = vmatprep.mubr.f32.mxu1 %v43170_v24 }
 0x5a1   :  { %38218 = vmatmul.mubr.f32.gmra.mrb[94].mxu0 %v43200_v40  ;;  %38314 = vmatmul.mubr.f32.gmra.mrb[94].mxu1 %v43200_v40 }
 0x5a2   :  { %38220 = vmatprep.mubr.f32.mxu0 %v43209_v27  ;;  %38316 = vmatprep.mubr.f32.mxu1 %v43209_v27 }
 0x5a5   :  { %38221 = vmatmul.mubr.f32.gmra.mrb[96].mxu0 %v43231_v5  ;;  %38317 = vmatmul.mubr.f32.gmra.mrb[96].mxu1 %v43231_v5 }
 0x5a6   :  { %38227 = vmatprep.mubr.f32.mxu0 %v43129_v35  ;;  %38323 = vmatprep.mubr.f32.mxu1 %v43129_v35 }
 0x5a9   :  { %38228 = vmatmul.mubr.f32.vlgmr.msra.gmra.mrb[90].mxu0 %v43132_v41  ;;  %38324 = vmatmul.mubr.f32.vlgmr.msra.gmra.mrb[90].mxu1 %v43132_v41 }
 0x5aa   :  { %40162 = vmatpush3.bf16.msra.mxu0 %v43329_v15  ;;  %40186 = vmatpush3.bf16.msra.mxu1 %v43331_v32  ;;  %v45360_v15 = vld [vmem:[#allocation61_spill] sm:$0xff]  ;;  %v45361_v32 = vld [vmem:[#allocation62_spill] sm:$0xff] }
 0x5ab   :  { %40164 = vmatprep.subr.bf16.mxu0 %v45356_v62  ;;  %40188 = vmatprep.subr.bf16.mxu1 %v45357_v39 }
 0x5ac   :  { %38230 = vmatprep.mubr.f32.mxu0 %v43184_v36  ;;  %38326 = vmatprep.mubr.f32.mxu1 %v43184_v36 }
 0x5ad   :  { %38231 = vmatmul.mubr.f32.gmra.mrb[92].mxu0 %v43191_v44  ;;  %38327 = vmatmul.mubr.f32.gmra.mrb[92].mxu1 %v43191_v44 }
 0x5ae   :  { %38233 = vmatprep.mubr.f32.mxu0 %v43197_v53  ;;  %38329 = vmatprep.mubr.f32.mxu1 %v43197_v53 }
 0x5b1   :  { %38234 = vmatmul.mubr.f32.gmra.mrb[94].mxu0 %v43228_v10  ;;  %38330 = vmatmul.mubr.f32.gmra.mrb[94].mxu1 %v43228_v10 }
 0x5b2   :  { %38236 = vmatprep.mubr.f32.mxu0 %v43238_v33  ;;  %38332 = vmatprep.mubr.f32.mxu1 %v43238_v33 }
 0x5b5   :  { %38237 = vmatmul.mubr.f32.gmra.mrb[96].mxu0 %v43257_v31  ;;  %38333 = vmatmul.mubr.f32.gmra.mrb[96].mxu1 %v43257_v31 }
 0x5b6   :  { %38243 = vmatprep.mubr.f32.mxu0 %v43097_v13  ;;  %38339 = vmatprep.mubr.f32.mxu1 %v43097_v13 }
 0x5b9   :  { %38244 = vmatmul.mubr.f32.vlgmr.msra.gmra.mrb[90].mxu0 %v43099_v46  ;;  %38340 = vmatmul.mubr.f32.vlgmr.msra.gmra.mrb[90].mxu1 %v43099_v46 }
 0x5ba   :  { %40166 = vmatpush3.bf16.msra.mxu0 %v45356_v62  ;;  %40190 = vmatpush3.bf16.msra.mxu1 %v45357_v39 }
 0x5bb   :  { %40192 = vmatprep.subr.bf16.mxu0 %v45360_v15  ;;  %40216 = vmatprep.subr.bf16.mxu1 %v43387_v11 }
 0x5bc   :  { %38246 = vmatprep.mubr.f32.mxu0 %v43139_v61  ;;  %38342 = vmatprep.mubr.f32.mxu1 %v43139_v61 }
 0x5bd   :  { %38247 = vmatmul.mubr.f32.gmra.mrb[92].mxu0 %v43146_v34  ;;  %38343 = vmatmul.mubr.f32.gmra.mrb[92].mxu1 %v43146_v34 }
 0x5be   :  { %38249 = vmatprep.mubr.f32.mxu0 %v43150_v30  ;;  %38345 = vmatprep.mubr.f32.mxu1 %v43150_v30 }
 0x5c1   :  { %38250 = vmatmul.mubr.f32.gmra.mrb[94].mxu0 %v43172_v60  ;;  %38346 = vmatmul.mubr.f32.gmra.mrb[94].mxu1 %v43172_v60 }
 0x5c2   :  { %38252 = vmatprep.mubr.f32.mxu0 %v43186_v22  ;;  %38348 = vmatprep.mubr.f32.mxu1 %v43186_v22 }
 0x5c5   :  { %38253 = vmatmul.mubr.f32.gmra.mrb[96].mxu0 %v43211_v18  ;;  %38349 = vmatmul.mubr.f32.gmra.mrb[96].mxu1 %v43211_v18 }
 0x5c6   :  { %38259 = vmatprep.mubr.f32.mxu0 %v43097_v13  ;;  %38355 = vmatprep.mubr.f32.mxu1 %v43097_v13 }
 0x5c9   :  { %38260 = vmatmul.mubr.f32.vlgmr.msra.gmra.mrb[90].mxu0 %v43099_v46  ;;  %38356 = vmatmul.mubr.f32.vlgmr.msra.gmra.mrb[90].mxu1 %v43099_v46 }
 0x5ca   :  { %40194 = vmatpush3.bf16.msra.mxu0 %v45360_v15  ;;  %40218 = vmatpush3.bf16.msra.mxu1 %v43387_v11 }
 0x5cb   :  { %40196 = vmatprep.subr.bf16.mxu0 %v43409_v51  ;;  %40220 = vmatprep.subr.bf16.mxu1 %v43411_v1 }
 0x5cc   :  { %38262 = vmatprep.mubr.f32.mxu0 %v43139_v61  ;;  %38358 = vmatprep.mubr.f32.mxu1 %v43139_v61 }
 0x5cd   :  { %38263 = vmatmul.mubr.f32.gmra.mrb[92].mxu0 %v43146_v34  ;;  %38359 = vmatmul.mubr.f32.gmra.mrb[92].mxu1 %v43146_v34 }
 0x5ce   :  { %38265 = vmatprep.mubr.f32.mxu0 %v43150_v30  ;;  %38361 = vmatprep.mubr.f32.mxu1 %v43150_v30 }
 0x5d1   :  { %38266 = vmatmul.mubr.f32.gmra.mrb[94].mxu0 %v43172_v60  ;;  %38362 = vmatmul.mubr.f32.gmra.mrb[94].mxu1 %v43172_v60 }
 0x5d2   :  { %38268 = vmatprep.mubr.f32.mxu0 %v43186_v22  ;;  %38364 = vmatprep.mubr.f32.mxu1 %v43186_v22 }
 0x5d5   :  { %38269 = vmatmul.mubr.f32.gmra.mrb[96].mxu0 %v43211_v18  ;;  %38365 = vmatmul.mubr.f32.gmra.mrb[96].mxu1 %v43211_v18 }
 0x5d6   :  { %38371 = vmatprep.mubr.f32.mxu0 %v43177_v20  ;;  %38467 = vmatprep.mubr.f32.mxu1 %v43177_v20 }
 0x5d9   :  { %38372 = vmatmul.mubr.f32.vlgmr.msra.gmra.mrb[98].mxu0 %v43179_v59  ;;  %38468 = vmatmul.mubr.f32.vlgmr.msra.gmra.mrb[98].mxu1 %v43179_v59 }
 0x5da   :  { %40198 = vmatpush3.bf16.msra.mxu0 %v43409_v51  ;;  %40222 = vmatpush3.bf16.msra.mxu1 %v43411_v1 }
 0x5db   :  { %40200 = vmatprep.subr.bf16.mxu0 %v43392_v9  ;;  %40224 = vmatprep.subr.bf16.mxu1 %v45361_v32 }
 0x5dc   :  { %v37877_v62 = vpop.f32.mrb[74].mxu0  ;;  %v37973_v39 = vpop.f32.mrb[74].mxu1  ;;  %38374 = vmatprep.mubr.f32.mxu0 %v43244_v28  ;;  %38470 = vmatprep.mubr.f32.mxu1 %v43244_v28 }
 0x5dd   :  { %33234 = vst.msk [vmem:[#allocation7 + $0x308] sm:$0xff] %vm33136_vm1, %v37877_v62  ;;  %33242 = vst.msk [vmem:[#allocation7 + $0x348] sm:$0xff] %vm33136_vm1, %v37973_v39  ;;  %v23210_v50 = vpop.f32.mrb[75].mxu0  ;;  %v23970_v6 = vpop.f32.mrb[75].mxu1  ;;  %38375 = vmatmul.mubr.f32.gmra.mrb[100].mxu0 %v43252_v37  ;;  %38471 = vmatmul.mubr.f32.gmra.mrb[100].mxu1 %v43252_v37 }
 0x5de   :  { %33233 = vst.msk [vmem:[#allocation7 + $0x300] sm:$0xff] %vm33136_vm1, %v23210_v50  ;;  %33241 = vst.msk [vmem:[#allocation7 + $0x340] sm:$0xff] %vm33136_vm1, %v23970_v6  ;;  %38377 = vmatprep.mubr.f32.mxu0 %v43261_v4  ;;  %38473 = vmatprep.mubr.f32.mxu1 %v43261_v4 }
 0x5e0   :  { %v37880_v51 = vpop.f32.mrb[76].mxu0  ;;  %v37976_v1 = vpop.f32.mrb[76].mxu1 }
 0x5e1   :  { %33236 = vst.msk [vmem:[#allocation7 + $0x318] sm:$0xff] %vm33136_vm1, %v37880_v51  ;;  %33244 = vst.msk [vmem:[#allocation7 + $0x358] sm:$0xff] %vm33136_vm1, %v37976_v1  ;;  %v23222_v17 = vpop.f32.mrb[77].mxu0  ;;  %v23982_v63 = vpop.f32.mrb[77].mxu1  ;;  %38378 = vmatmul.mubr.f32.gmra.mrb[102].mxu0 %v43271_v23  ;;  %38474 = vmatmul.mubr.f32.gmra.mrb[102].mxu1 %v43271_v23 }
 0x5e2   :  { %33235 = vst.msk [vmem:[#allocation7 + $0x310] sm:$0xff] %vm33136_vm1, %v23222_v17  ;;  %33243 = vst.msk [vmem:[#allocation7 + $0x350] sm:$0xff] %vm33136_vm1, %v23982_v63  ;;  %38380 = vmatprep.mubr.f32.mxu0 %v43277_v49  ;;  %38476 = vmatprep.mubr.f32.mxu1 %v43277_v49 }
 0x5e4   :  { %v37883_v19 = vpop.f32.mrb[78].mxu0  ;;  %v37979_v2 = vpop.f32.mrb[78].mxu1 }
 0x5e5   :  { %33238 = vst.msk [vmem:[#allocation7 + $0x328] sm:$0xff] %vm33136_vm1, %v37883_v19  ;;  %33246 = vst.msk [vmem:[#allocation7 + $0x368] sm:$0xff] %vm33136_vm1, %v37979_v2  ;;  %v23234_v12 = vpop.f32.mrb[79].mxu0  ;;  %v23994_v47 = vpop.f32.mrb[79].mxu1  ;;  %38381 = vmatmul.mubr.f32.gmra.mrb[104].mxu0 %v43281_v14  ;;  %38477 = vmatmul.mubr.f32.gmra.mrb[104].mxu1 %v43281_v14 }
 0x5e6   :  { %33237 = vst.msk [vmem:[#allocation7 + $0x320] sm:$0xff] %vm33136_vm1, %v23234_v12  ;;  %33245 = vst.msk [vmem:[#allocation7 + $0x360] sm:$0xff] %vm33136_vm1, %v23994_v47  ;;  %38387 = vmatprep.mubr.f32.mxu0 %v43097_v13  ;;  %38483 = vmatprep.mubr.f32.mxu1 %v43097_v13 }
 0x5e8   :  { %v37886_v3 = vpop.f32.mrb[80].mxu0  ;;  %v37982_v16 = vpop.f32.mrb[80].mxu1 }
 0x5e9   :  { %33240 = vst.msk [vmem:[#allocation7 + $0x338] sm:$0xff] %vm33136_vm1, %v37886_v3  ;;  %33248 = vst.msk [vmem:[#allocation7 + $0x378] sm:$0xff] %vm33136_vm1, %v37982_v16  ;;  %v23246_v43 = vpop.f32.mrb[81].mxu0  ;;  %v24006_v8 = vpop.f32.mrb[81].mxu1  ;;  %38388 = vmatmul.mubr.f32.vlgmr.msra.gmra.mrb[98].mxu0 %v43099_v46  ;;  %38484 = vmatmul.mubr.f32.vlgmr.msra.gmra.mrb[98].mxu1 %v43099_v46 }
 0x5ea   :  { %33239 = vst.msk [vmem:[#allocation7 + $0x330] sm:$0xff] %vm33136_vm1, %v23246_v43  ;;  %33247 = vst.msk [vmem:[#allocation7 + $0x370] sm:$0xff] %vm33136_vm1, %v24006_v8  ;;  %40202 = vmatpush3.bf16.msra.mxu0 %v43392_v9  ;;  %40226 = vmatpush3.bf16.msra.mxu1 %v45361_v32  ;;  %v45362_v9 = vld [vmem:[#allocation63_spill] sm:$0xff]  ;;  %v45369_v32 = vld [vmem:[#allocation68_spill] sm:$0xff] }
 0x5eb   :  { %40204 = vmatprep.subr.bf16.mxu0 %v45360_v15  ;;  %40228 = vmatprep.subr.bf16.mxu1 %v43387_v11 }
 0x5ec   :  { %38390 = vmatprep.mubr.f32.mxu0 %v43139_v61  ;;  %38486 = vmatprep.mubr.f32.mxu1 %v43139_v61 }
 0x5ed   :  { %38391 = vmatmul.mubr.f32.gmra.mrb[100].mxu0 %v43146_v34  ;;  %38487 = vmatmul.mubr.f32.gmra.mrb[100].mxu1 %v43146_v34 }
 0x5ee   :  { %38393 = vmatprep.mubr.f32.mxu0 %v43150_v30  ;;  %38489 = vmatprep.mubr.f32.mxu1 %v43150_v30 }
 0x5f1   :  { %38394 = vmatmul.mubr.f32.gmra.mrb[102].mxu0 %v43172_v60  ;;  %38490 = vmatmul.mubr.f32.gmra.mrb[102].mxu1 %v43172_v60 }
 0x5f2   :  { %38396 = vmatprep.mubr.f32.mxu0 %v43186_v22  ;;  %38492 = vmatprep.mubr.f32.mxu1 %v43186_v22 }
 0x5f5   :  { %38397 = vmatmul.mubr.f32.gmra.mrb[104].mxu0 %v43211_v18  ;;  %38493 = vmatmul.mubr.f32.gmra.mrb[104].mxu1 %v43211_v18 }
 0x5f6   :  { %38403 = vmatprep.mubr.f32.mxu0 %v43115_v21  ;;  %38499 = vmatprep.mubr.f32.mxu1 %v43115_v21 }
 0x5f9   :  { %38404 = vmatmul.mubr.f32.vlgmr.msra.gmra.mrb[98].mxu0 %v43118_v38  ;;  %38500 = vmatmul.mubr.f32.vlgmr.msra.gmra.mrb[98].mxu1 %v43118_v38 }
 0x5fa   :  { %40206 = vmatpush3.bf16.msra.mxu0 %v45360_v15  ;;  %40230 = vmatpush3.bf16.msra.mxu1 %v43387_v11 }
 0x5fb   :  { %40208 = vmatprep.subr.bf16.mxu0 %v45362_v9  ;;  %40232 = vmatprep.subr.bf16.mxu1 %v45363_v25 }
 0x5fc   :  { %38406 = vmatprep.mubr.f32.mxu0 %v43163_v7  ;;  %38502 = vmatprep.mubr.f32.mxu1 %v43163_v7 }
 0x5fd   :  { %38407 = vmatmul.mubr.f32.gmra.mrb[100].mxu0 %v43166_v42  ;;  %38503 = vmatmul.mubr.f32.gmra.mrb[100].mxu1 %v43166_v42 }
 0x5fe   :  { %38409 = vmatprep.mubr.f32.mxu0 %v43170_v24  ;;  %38505 = vmatprep.mubr.f32.mxu1 %v43170_v24 }
 0x601   :  { %38410 = vmatmul.mubr.f32.gmra.mrb[102].mxu0 %v43200_v40  ;;  %38506 = vmatmul.mubr.f32.gmra.mrb[102].mxu1 %v43200_v40 }
 0x602   :  { %38412 = vmatprep.mubr.f32.mxu0 %v43209_v27  ;;  %38508 = vmatprep.mubr.f32.mxu1 %v43209_v27 }
 0x605   :  { %38413 = vmatmul.mubr.f32.gmra.mrb[104].mxu0 %v43231_v5  ;;  %38509 = vmatmul.mubr.f32.gmra.mrb[104].mxu1 %v43231_v5 }
 0x606   :  { %38419 = vmatprep.mubr.f32.mxu0 %v43129_v35  ;;  %38515 = vmatprep.mubr.f32.mxu1 %v43129_v35 }
 0x609   :  { %38420 = vmatmul.mubr.f32.vlgmr.msra.gmra.mrb[98].mxu0 %v43132_v41  ;;  %38516 = vmatmul.mubr.f32.vlgmr.msra.gmra.mrb[98].mxu1 %v43132_v41 }
 0x60a   :  { %40210 = vmatpush3.bf16.msra.mxu0 %v45362_v9  ;;  %40234 = vmatpush3.bf16.msra.mxu1 %v45363_v25  ;;  %v45370_v9 = vld [vmem:[#allocation69_spill] sm:$0xff]  ;;  %v45371_v25 = vld [vmem:[#allocation70_spill] sm:$0xff] }
 0x60b   :  { %40212 = vmatprep.subr.bf16.mxu0 %v45360_v15  ;;  %40236 = vmatprep.subr.bf16.mxu1 %v43387_v11 }
 0x60c   :  { %38422 = vmatprep.mubr.f32.mxu0 %v43184_v36  ;;  %38518 = vmatprep.mubr.f32.mxu1 %v43184_v36 }
 0x60d   :  { %38423 = vmatmul.mubr.f32.gmra.mrb[100].mxu0 %v43191_v44  ;;  %38519 = vmatmul.mubr.f32.gmra.mrb[100].mxu1 %v43191_v44 }
 0x60e   :  { %38425 = vmatprep.mubr.f32.mxu0 %v43197_v53  ;;  %38521 = vmatprep.mubr.f32.mxu1 %v43197_v53 }
 0x611   :  { %38426 = vmatmul.mubr.f32.gmra.mrb[102].mxu0 %v43228_v10  ;;  %38522 = vmatmul.mubr.f32.gmra.mrb[102].mxu1 %v43228_v10 }
 0x612   :  { %38428 = vmatprep.mubr.f32.mxu0 %v43238_v33  ;;  %38524 = vmatprep.mubr.f32.mxu1 %v43238_v33 }
 0x615   :  { %38429 = vmatmul.mubr.f32.gmra.mrb[104].mxu0 %v43257_v31  ;;  %38525 = vmatmul.mubr.f32.gmra.mrb[104].mxu1 %v43257_v31 }
 0x616   :  { %38435 = vmatprep.mubr.f32.mxu0 %v43097_v13  ;;  %38531 = vmatprep.mubr.f32.mxu1 %v43097_v13 }
 0x619   :  { %38436 = vmatmul.mubr.f32.vlgmr.msra.gmra.mrb[98].mxu0 %v43099_v46  ;;  %38532 = vmatmul.mubr.f32.vlgmr.msra.gmra.mrb[98].mxu1 %v43099_v46 }
 0x61a   :  { %40214 = vmatpush3.bf16.msra.mxu0 %v45360_v15  ;;  %40238 = vmatpush3.bf16.msra.mxu1 %v43387_v11  ;;  %v45366_v11 = vld [vmem:[#allocation11_spill] sm:$0xff] }
 0x61b   :  { %40240 = vmatprep.subr.bf16.mxu0 %v45364_v55  ;;  %40264 = vmatprep.subr.bf16.mxu1 %v45365_v58  ;;  %v45368_v15 = vld [vmem:[#allocation67_spill] sm:$0xff] }
 0x61c   :  { %38438 = vmatprep.mubr.f32.mxu0 %v43139_v61  ;;  %38534 = vmatprep.mubr.f32.mxu1 %v43139_v61 }
 0x61d   :  { %38439 = vmatmul.mubr.f32.gmra.mrb[100].mxu0 %v43146_v34  ;;  %38535 = vmatmul.mubr.f32.gmra.mrb[100].mxu1 %v43146_v34 }
 0x61e   :  { %38441 = vmatprep.mubr.f32.mxu0 %v43150_v30  ;;  %38537 = vmatprep.mubr.f32.mxu1 %v43150_v30 }
 0x621   :  { %38442 = vmatmul.mubr.f32.gmra.mrb[102].mxu0 %v43172_v60  ;;  %38538 = vmatmul.mubr.f32.gmra.mrb[102].mxu1 %v43172_v60 }
 0x622   :  { %38444 = vmatprep.mubr.f32.mxu0 %v43186_v22  ;;  %38540 = vmatprep.mubr.f32.mxu1 %v43186_v22 }
 0x625   :  { %38445 = vmatmul.mubr.f32.gmra.mrb[104].mxu0 %v43211_v18  ;;  %38541 = vmatmul.mubr.f32.gmra.mrb[104].mxu1 %v43211_v18 }
 0x626   :  { %38451 = vmatprep.mubr.f32.mxu0 %v43097_v13  ;;  %38547 = vmatprep.mubr.f32.mxu1 %v43097_v13 }
 0x629   :  { %38452 = vmatmul.mubr.f32.vlgmr.msra.gmra.mrb[98].mxu0 %v43099_v46  ;;  %38548 = vmatmul.mubr.f32.vlgmr.msra.gmra.mrb[98].mxu1 %v43099_v46 }
 0x62a   :  { %40242 = vmatpush3.bf16.msra.mxu0 %v45364_v55  ;;  %40266 = vmatpush3.bf16.msra.mxu1 %v45365_v58 }
 0x62b   :  { %40244 = vmatprep.subr.bf16.mxu0 %v45366_v11  ;;  %40268 = vmatprep.subr.bf16.mxu1 %v45367_v45 }
 0x62c   :  { %38454 = vmatprep.mubr.f32.mxu0 %v43139_v61  ;;  %38550 = vmatprep.mubr.f32.mxu1 %v43139_v61 }
 0x62d   :  { %38455 = vmatmul.mubr.f32.gmra.mrb[100].mxu0 %v43146_v34  ;;  %38551 = vmatmul.mubr.f32.gmra.mrb[100].mxu1 %v43146_v34 }
 0x62e   :  { %38457 = vmatprep.mubr.f32.mxu0 %v43150_v30  ;;  %38553 = vmatprep.mubr.f32.mxu1 %v43150_v30 }
 0x631   :  { %38458 = vmatmul.mubr.f32.gmra.mrb[102].mxu0 %v43172_v60  ;;  %38554 = vmatmul.mubr.f32.gmra.mrb[102].mxu1 %v43172_v60 }
 0x632   :  { %38460 = vmatprep.mubr.f32.mxu0 %v43186_v22  ;;  %38556 = vmatprep.mubr.f32.mxu1 %v43186_v22 }
 0x635   :  { %38461 = vmatmul.mubr.f32.gmra.mrb[104].mxu0 %v43211_v18  ;;  %38557 = vmatmul.mubr.f32.gmra.mrb[104].mxu1 %v43211_v18 }
 0x636   :  { %38563 = vmatprep.mubr.f32.mxu0 %v43177_v20  ;;  %38659 = vmatprep.mubr.f32.mxu1 %v43177_v20 }
 0x639   :  { %38564 = vmatmul.mubr.f32.vlgmr.msra.gmra.mrb[106].mxu0 %v43179_v59  ;;  %38660 = vmatmul.mubr.f32.vlgmr.msra.gmra.mrb[106].mxu1 %v43179_v59 }
 0x63a   :  { %40246 = vmatpush3.bf16.msra.mxu0 %v45366_v11  ;;  %40270 = vmatpush3.bf16.msra.mxu1 %v45367_v45  ;;  %v45372_v11 = vld [vmem:[#allocation13_spill] sm:$0xff]  ;;  %v45373_v45 = vld [vmem:[#allocation14_spill] sm:$0xff] }
 0x63b   :  { %40248 = vmatprep.subr.bf16.mxu0 %v45368_v15  ;;  %40272 = vmatprep.subr.bf16.mxu1 %v45369_v32 }
 0x63c   :  { %v38069_v62 = vpop.f32.mrb[82].mxu0  ;;  %v38165_v39 = vpop.f32.mrb[82].mxu1  ;;  %38566 = vmatprep.mubr.f32.mxu0 %v43244_v28  ;;  %38662 = vmatprep.mubr.f32.mxu1 %v43244_v28 }
 0x63d   :  { %33250 = vst.msk [vmem:[#allocation7 + $0x388] sm:$0xff] %vm33136_vm1, %v38069_v62  ;;  %33258 = vst.msk [vmem:[#allocation7 + $0x3c8] sm:$0xff] %vm33136_vm1, %v38165_v39  ;;  %v24730_v50 = vpop.f32.mrb[83].mxu0  ;;  %v25490_v6 = vpop.f32.mrb[83].mxu1  ;;  %38567 = vmatmul.mubr.f32.gmra.mrb[108].mxu0 %v43252_v37  ;;  %38663 = vmatmul.mubr.f32.gmra.mrb[108].mxu1 %v43252_v37 }
 0x63e   :  { %33249 = vst.msk [vmem:[#allocation7 + $0x380] sm:$0xff] %vm33136_vm1, %v24730_v50  ;;  %33257 = vst.msk [vmem:[#allocation7 + $0x3c0] sm:$0xff] %vm33136_vm1, %v25490_v6  ;;  %38569 = vmatprep.mubr.f32.mxu0 %v43261_v4  ;;  %38665 = vmatprep.mubr.f32.mxu1 %v43261_v4 }
 0x640   :  { %v38072_v51 = vpop.f32.mrb[84].mxu0  ;;  %v38168_v1 = vpop.f32.mrb[84].mxu1 }
 0x641   :  { %33252 = vst.msk [vmem:[#allocation7 + $0x398] sm:$0xff] %vm33136_vm1, %v38072_v51  ;;  %33260 = vst.msk [vmem:[#allocation7 + $0x3d8] sm:$0xff] %vm33136_vm1, %v38168_v1  ;;  %v24742_v17 = vpop.f32.mrb[85].mxu0  ;;  %v25502_v63 = vpop.f32.mrb[85].mxu1  ;;  %38570 = vmatmul.mubr.f32.gmra.mrb[110].mxu0 %v43271_v23  ;;  %38666 = vmatmul.mubr.f32.gmra.mrb[110].mxu1 %v43271_v23 }
 0x642   :  { %33251 = vst.msk [vmem:[#allocation7 + $0x390] sm:$0xff] %vm33136_vm1, %v24742_v17  ;;  %33259 = vst.msk [vmem:[#allocation7 + $0x3d0] sm:$0xff] %vm33136_vm1, %v25502_v63  ;;  %38572 = vmatprep.mubr.f32.mxu0 %v43277_v49  ;;  %38668 = vmatprep.mubr.f32.mxu1 %v43277_v49 }
 0x644   :  { %v38075_v19 = vpop.f32.mrb[86].mxu0  ;;  %v38171_v2 = vpop.f32.mrb[86].mxu1 }
 0x645   :  { %33254 = vst.msk [vmem:[#allocation7 + $0x3a8] sm:$0xff] %vm33136_vm1, %v38075_v19  ;;  %33262 = vst.msk [vmem:[#allocation7 + $0x3e8] sm:$0xff] %vm33136_vm1, %v38171_v2  ;;  %v24754_v12 = vpop.f32.mrb[87].mxu0  ;;  %v25514_v47 = vpop.f32.mrb[87].mxu1  ;;  %38573 = vmatmul.mubr.f32.gmra.mrb[112].mxu0 %v43281_v14  ;;  %38669 = vmatmul.mubr.f32.gmra.mrb[112].mxu1 %v43281_v14 }
 0x646   :  { %33253 = vst.msk [vmem:[#allocation7 + $0x3a0] sm:$0xff] %vm33136_vm1, %v24754_v12  ;;  %33261 = vst.msk [vmem:[#allocation7 + $0x3e0] sm:$0xff] %vm33136_vm1, %v25514_v47  ;;  %38579 = vmatprep.mubr.f32.mxu0 %v43097_v13  ;;  %38675 = vmatprep.mubr.f32.mxu1 %v43097_v13 }
 0x648   :  { %v38078_v3 = vpop.f32.mrb[88].mxu0  ;;  %v38174_v16 = vpop.f32.mrb[88].mxu1 }
 0x649   :  { %33256 = vst.msk [vmem:[#allocation7 + $0x3b8] sm:$0xff] %vm33136_vm1, %v38078_v3  ;;  %33264 = vst.msk [vmem:[#allocation7 + $0x3f8] sm:$0xff] %vm33136_vm1, %v38174_v16  ;;  %v24766_v43 = vpop.f32.mrb[89].mxu0  ;;  %v25526_v8 = vpop.f32.mrb[89].mxu1  ;;  %38580 = vmatmul.mubr.f32.vlgmr.msra.gmra.mrb[106].mxu0 %v43099_v46  ;;  %38676 = vmatmul.mubr.f32.vlgmr.msra.gmra.mrb[106].mxu1 %v43099_v46  ;;  %v45378_v3 = vld [vmem:[#allocation75_spill] sm:$0xff]  ;;  %v45379_v16 = vld [vmem:[#allocation76_spill] sm:$0xff] }
 0x64a   :  { %33255 = vst.msk [vmem:[#allocation7 + $0x3b0] sm:$0xff] %vm33136_vm1, %v24766_v43  ;;  %33263 = vst.msk [vmem:[#allocation7 + $0x3f0] sm:$0xff] %vm33136_vm1, %v25526_v8  ;;  %40250 = vmatpush3.bf16.msra.mxu0 %v45368_v15  ;;  %40274 = vmatpush3.bf16.msra.mxu1 %v45369_v32 }
 0x64b   :  { %40252 = vmatprep.subr.bf16.mxu0 %v45364_v55  ;;  %40276 = vmatprep.subr.bf16.mxu1 %v45365_v58 }
 0x64c   :  { %38582 = vmatprep.mubr.f32.mxu0 %v43139_v61  ;;  %38678 = vmatprep.mubr.f32.mxu1 %v43139_v61 }
 0x64d   :  { %38583 = vmatmul.mubr.f32.gmra.mrb[108].mxu0 %v43146_v34  ;;  %38679 = vmatmul.mubr.f32.gmra.mrb[108].mxu1 %v43146_v34 }
 0x64e   :  { %38585 = vmatprep.mubr.f32.mxu0 %v43150_v30  ;;  %38681 = vmatprep.mubr.f32.mxu1 %v43150_v30 }
 0x651   :  { %38586 = vmatmul.mubr.f32.gmra.mrb[110].mxu0 %v43172_v60  ;;  %38682 = vmatmul.mubr.f32.gmra.mrb[110].mxu1 %v43172_v60 }
 0x652   :  { %38588 = vmatprep.mubr.f32.mxu0 %v43186_v22  ;;  %38684 = vmatprep.mubr.f32.mxu1 %v43186_v22 }
 0x655   :  { %38589 = vmatmul.mubr.f32.gmra.mrb[112].mxu0 %v43211_v18  ;;  %38685 = vmatmul.mubr.f32.gmra.mrb[112].mxu1 %v43211_v18 }
 0x656   :  { %38595 = vmatprep.mubr.f32.mxu0 %v43115_v21  ;;  %38691 = vmatprep.mubr.f32.mxu1 %v43115_v21 }
 0x659   :  { %38596 = vmatmul.mubr.f32.vlgmr.msra.gmra.mrb[106].mxu0 %v43118_v38  ;;  %38692 = vmatmul.mubr.f32.vlgmr.msra.gmra.mrb[106].mxu1 %v43118_v38 }
 0x65a   :  { %40254 = vmatpush3.bf16.msra.mxu0 %v45364_v55  ;;  %40278 = vmatpush3.bf16.msra.mxu1 %v45365_v58 }
 0x65b   :  { %40256 = vmatprep.subr.bf16.mxu0 %v45370_v9  ;;  %40280 = vmatprep.subr.bf16.mxu1 %v45371_v25 }
 0x65c   :  { %38598 = vmatprep.mubr.f32.mxu0 %v43163_v7  ;;  %38694 = vmatprep.mubr.f32.mxu1 %v43163_v7 }
 0x65d   :  { %38599 = vmatmul.mubr.f32.gmra.mrb[108].mxu0 %v43166_v42  ;;  %38695 = vmatmul.mubr.f32.gmra.mrb[108].mxu1 %v43166_v42 }
 0x65e   :  { %38601 = vmatprep.mubr.f32.mxu0 %v43170_v24  ;;  %38697 = vmatprep.mubr.f32.mxu1 %v43170_v24 }
 0x661   :  { %38602 = vmatmul.mubr.f32.gmra.mrb[110].mxu0 %v43200_v40  ;;  %38698 = vmatmul.mubr.f32.gmra.mrb[110].mxu1 %v43200_v40 }
 0x662   :  { %38604 = vmatprep.mubr.f32.mxu0 %v43209_v27  ;;  %38700 = vmatprep.mubr.f32.mxu1 %v43209_v27 }
 0x665   :  { %38605 = vmatmul.mubr.f32.gmra.mrb[112].mxu0 %v43231_v5  ;;  %38701 = vmatmul.mubr.f32.gmra.mrb[112].mxu1 %v43231_v5 }
 0x666   :  { %38611 = vmatprep.mubr.f32.mxu0 %v43129_v35  ;;  %38707 = vmatprep.mubr.f32.mxu1 %v43129_v35 }
 0x669   :  { %38612 = vmatmul.mubr.f32.vlgmr.msra.gmra.mrb[106].mxu0 %v43132_v41  ;;  %38708 = vmatmul.mubr.f32.vlgmr.msra.gmra.mrb[106].mxu1 %v43132_v41 }
 0x66a   :  { %40258 = vmatpush3.bf16.msra.mxu0 %v45370_v9  ;;  %40282 = vmatpush3.bf16.msra.mxu1 %v45371_v25 }
 0x66b   :  { %40260 = vmatprep.subr.bf16.mxu0 %v45364_v55  ;;  %40284 = vmatprep.subr.bf16.mxu1 %v45365_v58 }
 0x66c   :  { %38614 = vmatprep.mubr.f32.mxu0 %v43184_v36  ;;  %38710 = vmatprep.mubr.f32.mxu1 %v43184_v36 }
 0x66d   :  { %38615 = vmatmul.mubr.f32.gmra.mrb[108].mxu0 %v43191_v44  ;;  %38711 = vmatmul.mubr.f32.gmra.mrb[108].mxu1 %v43191_v44 }
 0x66e   :  { %38617 = vmatprep.mubr.f32.mxu0 %v43197_v53  ;;  %38713 = vmatprep.mubr.f32.mxu1 %v43197_v53 }
 0x671   :  { %38618 = vmatmul.mubr.f32.gmra.mrb[110].mxu0 %v43228_v10  ;;  %38714 = vmatmul.mubr.f32.gmra.mrb[110].mxu1 %v43228_v10 }
 0x672   :  { %38620 = vmatprep.mubr.f32.mxu0 %v43238_v33  ;;  %38716 = vmatprep.mubr.f32.mxu1 %v43238_v33 }
 0x675   :  { %38621 = vmatmul.mubr.f32.gmra.mrb[112].mxu0 %v43257_v31  ;;  %38717 = vmatmul.mubr.f32.gmra.mrb[112].mxu1 %v43257_v31 }
 0x676   :  { %38627 = vmatprep.mubr.f32.mxu0 %v43097_v13  ;;  %38723 = vmatprep.mubr.f32.mxu1 %v43097_v13 }
 0x679   :  { %38628 = vmatmul.mubr.f32.vlgmr.msra.gmra.mrb[106].mxu0 %v43099_v46  ;;  %38724 = vmatmul.mubr.f32.vlgmr.msra.gmra.mrb[106].mxu1 %v43099_v46 }
 0x67a   :  { %40262 = vmatpush3.bf16.msra.mxu0 %v45364_v55  ;;  %40286 = vmatpush3.bf16.msra.mxu1 %v45365_v58  ;;  %v45374_v55 = vld [vmem:[#allocation71_spill] sm:$0xff]  ;;  %v45375_v58 = vld [vmem:[#allocation72_spill] sm:$0xff] }
 0x67b   :  { %40288 = vmatprep.subr.bf16.mxu0 %v45372_v11  ;;  %40312 = vmatprep.subr.bf16.mxu1 %v45373_v45 }
 0x67c   :  { %38630 = vmatprep.mubr.f32.mxu0 %v43139_v61  ;;  %38726 = vmatprep.mubr.f32.mxu1 %v43139_v61 }
 0x67d   :  { %38631 = vmatmul.mubr.f32.gmra.mrb[108].mxu0 %v43146_v34  ;;  %38727 = vmatmul.mubr.f32.gmra.mrb[108].mxu1 %v43146_v34 }
 0x67e   :  { %38633 = vmatprep.mubr.f32.mxu0 %v43150_v30  ;;  %38729 = vmatprep.mubr.f32.mxu1 %v43150_v30 }
 0x681   :  { %38634 = vmatmul.mubr.f32.gmra.mrb[110].mxu0 %v43172_v60  ;;  %38730 = vmatmul.mubr.f32.gmra.mrb[110].mxu1 %v43172_v60 }
 0x682   :  { %38636 = vmatprep.mubr.f32.mxu0 %v43186_v22  ;;  %38732 = vmatprep.mubr.f32.mxu1 %v43186_v22 }
 0x685   :  { %38637 = vmatmul.mubr.f32.gmra.mrb[112].mxu0 %v43211_v18  ;;  %38733 = vmatmul.mubr.f32.gmra.mrb[112].mxu1 %v43211_v18 }
 0x686   :  { %38643 = vmatprep.mubr.f32.mxu0 %v43097_v13  ;;  %38739 = vmatprep.mubr.f32.mxu1 %v43097_v13 }
 0x689   :  { %38644 = vmatmul.mubr.f32.vlgmr.msra.gmra.mrb[106].mxu0 %v43099_v46  ;;  %38740 = vmatmul.mubr.f32.vlgmr.msra.gmra.mrb[106].mxu1 %v43099_v46 }
 0x68a   :  { %40290 = vmatpush3.bf16.msra.mxu0 %v45372_v11  ;;  %40314 = vmatpush3.bf16.msra.mxu1 %v45373_v45 }
 0x68b   :  { %40292 = vmatprep.subr.bf16.mxu0 %v43549_v29  ;;  %40316 = vmatprep.subr.bf16.mxu1 %v43551_v52 }
 0x68c   :  { %38646 = vmatprep.mubr.f32.mxu0 %v43139_v61  ;;  %38742 = vmatprep.mubr.f32.mxu1 %v43139_v61 }
 0x68d   :  { %38647 = vmatmul.mubr.f32.gmra.mrb[108].mxu0 %v43146_v34  ;;  %38743 = vmatmul.mubr.f32.gmra.mrb[108].mxu1 %v43146_v34 }
 0x68e   :  { %38649 = vmatprep.mubr.f32.mxu0 %v43150_v30  ;;  %38745 = vmatprep.mubr.f32.mxu1 %v43150_v30 }
 0x691   :  { %38650 = vmatmul.mubr.f32.gmra.mrb[110].mxu0 %v43172_v60  ;;  %38746 = vmatmul.mubr.f32.gmra.mrb[110].mxu1 %v43172_v60 }
 0x692   :  { %38652 = vmatprep.mubr.f32.mxu0 %v43186_v22  ;;  %38748 = vmatprep.mubr.f32.mxu1 %v43186_v22 }
 0x695   :  { %38653 = vmatmul.mubr.f32.gmra.mrb[112].mxu0 %v43211_v18  ;;  %38749 = vmatmul.mubr.f32.gmra.mrb[112].mxu1 %v43211_v18 }
 0x696   :  { %38755 = vmatprep.mubr.f32.mxu0 %v43177_v20  ;;  %38851 = vmatprep.mubr.f32.mxu1 %v43177_v20 }
 0x699   :  { %38756 = vmatmul.mubr.f32.vlgmr.msra.gmra.mrb[114].mxu0 %v43179_v59  ;;  %38852 = vmatmul.mubr.f32.vlgmr.msra.gmra.mrb[114].mxu1 %v43179_v59 }
 0x69a   :  { %40294 = vmatpush3.bf16.msra.mxu0 %v43549_v29  ;;  %40318 = vmatpush3.bf16.msra.mxu1 %v43551_v52 }
 0x69b   :  { %40296 = vmatprep.subr.bf16.mxu0 %v45374_v55  ;;  %40320 = vmatprep.subr.bf16.mxu1 %v45375_v58 }
 0x69c   :  { %v38261_v15 = vpop.f32.mrb[90].mxu0  ;;  %v38357_v32 = vpop.f32.mrb[90].mxu1  ;;  %38758 = vmatprep.mubr.f32.mxu0 %v43244_v28  ;;  %38854 = vmatprep.mubr.f32.mxu1 %v43244_v28 }
 0x69d   :  { %33266 = vst.msk [vmem:[#allocation7 + $0x408] sm:$0xff] %vm33136_vm1, %v38261_v15  ;;  %33274 = vst.msk [vmem:[#allocation7 + $0x448] sm:$0xff] %vm33136_vm1, %v38357_v32  ;;  %v26250_v62 = vpop.f32.mrb[91].mxu0  ;;  %v27010_v39 = vpop.f32.mrb[91].mxu1  ;;  %38759 = vmatmul.mubr.f32.gmra.mrb[116].mxu0 %v43252_v37  ;;  %38855 = vmatmul.mubr.f32.gmra.mrb[116].mxu1 %v43252_v37 }
 0x69e   :  { %33265 = vst.msk [vmem:[#allocation7 + $0x400] sm:$0xff] %vm33136_vm1, %v26250_v62  ;;  %33273 = vst.msk [vmem:[#allocation7 + $0x440] sm:$0xff] %vm33136_vm1, %v27010_v39  ;;  %38761 = vmatprep.mubr.f32.mxu0 %v43261_v4  ;;  %38857 = vmatprep.mubr.f32.mxu1 %v43261_v4 }
 0x6a0   :  { %v38264_v29 = vpop.f32.mrb[92].mxu0  ;;  %v38360_v52 = vpop.f32.mrb[92].mxu1 }
 0x6a1   :  { %33268 = vst.msk [vmem:[#allocation7 + $0x418] sm:$0xff] %vm33136_vm1, %v38264_v29  ;;  %33276 = vst.msk [vmem:[#allocation7 + $0x458] sm:$0xff] %vm33136_vm1, %v38360_v52  ;;  %v26262_v50 = vpop.f32.mrb[93].mxu0  ;;  %v27022_v6 = vpop.f32.mrb[93].mxu1  ;;  %38762 = vmatmul.mubr.f32.gmra.mrb[118].mxu0 %v43271_v23  ;;  %38858 = vmatmul.mubr.f32.gmra.mrb[118].mxu1 %v43271_v23 }
 0x6a2   :  { %33267 = vst.msk [vmem:[#allocation7 + $0x410] sm:$0xff] %vm33136_vm1, %v26262_v50  ;;  %33275 = vst.msk [vmem:[#allocation7 + $0x450] sm:$0xff] %vm33136_vm1, %v27022_v6  ;;  %38764 = vmatprep.mubr.f32.mxu0 %v43277_v49  ;;  %38860 = vmatprep.mubr.f32.mxu1 %v43277_v49 }
 0x6a4   :  { %v38267_v51 = vpop.f32.mrb[94].mxu0  ;;  %v38363_v1 = vpop.f32.mrb[94].mxu1 }
 0x6a5   :  { %33270 = vst.msk [vmem:[#allocation7 + $0x428] sm:$0xff] %vm33136_vm1, %v38267_v51  ;;  %33278 = vst.msk [vmem:[#allocation7 + $0x468] sm:$0xff] %vm33136_vm1, %v38363_v1  ;;  %v26274_v17 = vpop.f32.mrb[95].mxu0  ;;  %v27034_v63 = vpop.f32.mrb[95].mxu1  ;;  %38765 = vmatmul.mubr.f32.gmra.mrb[120].mxu0 %v43281_v14  ;;  %38861 = vmatmul.mubr.f32.gmra.mrb[120].mxu1 %v43281_v14 }
 0x6a6   :  { %33269 = vst.msk [vmem:[#allocation7 + $0x420] sm:$0xff] %vm33136_vm1, %v26274_v17  ;;  %33277 = vst.msk [vmem:[#allocation7 + $0x460] sm:$0xff] %vm33136_vm1, %v27034_v63  ;;  %38771 = vmatprep.mubr.f32.mxu0 %v43097_v13  ;;  %38867 = vmatprep.mubr.f32.mxu1 %v43097_v13 }
 0x6a8   :  { %v38270_v19 = vpop.f32.mrb[96].mxu0  ;;  %v38366_v2 = vpop.f32.mrb[96].mxu1 }
 0x6a9   :  { %33272 = vst.msk [vmem:[#allocation7 + $0x438] sm:$0xff] %vm33136_vm1, %v38270_v19  ;;  %33280 = vst.msk [vmem:[#allocation7 + $0x478] sm:$0xff] %vm33136_vm1, %v38366_v2  ;;  %v26286_v12 = vpop.f32.mrb[97].mxu0  ;;  %v27046_v47 = vpop.f32.mrb[97].mxu1  ;;  %38772 = vmatmul.mubr.f32.vlgmr.msra.gmra.mrb[114].mxu0 %v43099_v46  ;;  %38868 = vmatmul.mubr.f32.vlgmr.msra.gmra.mrb[114].mxu1 %v43099_v46 }
 0x6aa   :  { %33271 = vst.msk [vmem:[#allocation7 + $0x430] sm:$0xff] %vm33136_vm1, %v26286_v12  ;;  %33279 = vst.msk [vmem:[#allocation7 + $0x470] sm:$0xff] %vm33136_vm1, %v27046_v47  ;;  %40298 = vmatpush3.bf16.msra.mxu0 %v45374_v55  ;;  %40322 = vmatpush3.bf16.msra.mxu1 %v45375_v58 }
 0x6ab   :  { %40300 = vmatprep.subr.bf16.mxu0 %v45372_v11  ;;  %40324 = vmatprep.subr.bf16.mxu1 %v45373_v45 }
 0x6ac   :  { %38774 = vmatprep.mubr.f32.mxu0 %v43139_v61  ;;  %38870 = vmatprep.mubr.f32.mxu1 %v43139_v61 }
 0x6ad   :  { %38775 = vmatmul.mubr.f32.gmra.mrb[116].mxu0 %v43146_v34  ;;  %38871 = vmatmul.mubr.f32.gmra.mrb[116].mxu1 %v43146_v34 }
 0x6ae   :  { %38777 = vmatprep.mubr.f32.mxu0 %v43150_v30  ;;  %38873 = vmatprep.mubr.f32.mxu1 %v43150_v30 }
 0x6b1   :  { %38778 = vmatmul.mubr.f32.gmra.mrb[118].mxu0 %v43172_v60  ;;  %38874 = vmatmul.mubr.f32.gmra.mrb[118].mxu1 %v43172_v60 }
 0x6b2   :  { %38780 = vmatprep.mubr.f32.mxu0 %v43186_v22  ;;  %38876 = vmatprep.mubr.f32.mxu1 %v43186_v22 }
 0x6b5   :  { %38781 = vmatmul.mubr.f32.gmra.mrb[120].mxu0 %v43211_v18  ;;  %38877 = vmatmul.mubr.f32.gmra.mrb[120].mxu1 %v43211_v18 }
 0x6b6   :  { %38787 = vmatprep.mubr.f32.mxu0 %v43115_v21  ;;  %38883 = vmatprep.mubr.f32.mxu1 %v43115_v21 }
 0x6b9   :  { %38788 = vmatmul.mubr.f32.vlgmr.msra.gmra.mrb[114].mxu0 %v43118_v38  ;;  %38884 = vmatmul.mubr.f32.vlgmr.msra.gmra.mrb[114].mxu1 %v43118_v38 }
 0x6ba   :  { %40302 = vmatpush3.bf16.msra.mxu0 %v45372_v11  ;;  %40326 = vmatpush3.bf16.msra.mxu1 %v45373_v45 }
 0x6bb   :  { %40304 = vmatprep.subr.bf16.mxu0 %v43541_v0  ;;  %40328 = vmatprep.subr.bf16.mxu1 %v43543_v26 }
 0x6bc   :  { %38790 = vmatprep.mubr.f32.mxu0 %v43163_v7  ;;  %38886 = vmatprep.mubr.f32.mxu1 %v43163_v7 }
 0x6bd   :  { %38791 = vmatmul.mubr.f32.gmra.mrb[116].mxu0 %v43166_v42  ;;  %38887 = vmatmul.mubr.f32.gmra.mrb[116].mxu1 %v43166_v42 }
 0x6be   :  { %38793 = vmatprep.mubr.f32.mxu0 %v43170_v24  ;;  %38889 = vmatprep.mubr.f32.mxu1 %v43170_v24 }
 0x6c1   :  { %38794 = vmatmul.mubr.f32.gmra.mrb[118].mxu0 %v43200_v40  ;;  %38890 = vmatmul.mubr.f32.gmra.mrb[118].mxu1 %v43200_v40 }
 0x6c2   :  { %38796 = vmatprep.mubr.f32.mxu0 %v43209_v27  ;;  %38892 = vmatprep.mubr.f32.mxu1 %v43209_v27 }
 0x6c5   :  { %38797 = vmatmul.mubr.f32.gmra.mrb[120].mxu0 %v43231_v5  ;;  %38893 = vmatmul.mubr.f32.gmra.mrb[120].mxu1 %v43231_v5 }
 0x6c6   :  { %38803 = vmatprep.mubr.f32.mxu0 %v43129_v35  ;;  %38899 = vmatprep.mubr.f32.mxu1 %v43129_v35 }
 0x6c9   :  { %38804 = vmatmul.mubr.f32.vlgmr.msra.gmra.mrb[114].mxu0 %v43132_v41  ;;  %38900 = vmatmul.mubr.f32.vlgmr.msra.gmra.mrb[114].mxu1 %v43132_v41 }
 0x6ca   :  { %40306 = vmatpush3.bf16.msra.mxu0 %v43541_v0  ;;  %40330 = vmatpush3.bf16.msra.mxu1 %v43543_v26  ;;  %v45376_v0 = vld [vmem:[#allocation73_spill] sm:$0xff]  ;;  %v45377_v26 = vld [vmem:[#allocation74_spill] sm:$0xff] }
 0x6cb   :  { %40308 = vmatprep.subr.bf16.mxu0 %v45372_v11  ;;  %40332 = vmatprep.subr.bf16.mxu1 %v45373_v45 }
 0x6cc   :  { %38806 = vmatprep.mubr.f32.mxu0 %v43184_v36  ;;  %38902 = vmatprep.mubr.f32.mxu1 %v43184_v36 }
 0x6cd   :  { %38807 = vmatmul.mubr.f32.gmra.mrb[116].mxu0 %v43191_v44  ;;  %38903 = vmatmul.mubr.f32.gmra.mrb[116].mxu1 %v43191_v44 }
 0x6ce   :  { %38809 = vmatprep.mubr.f32.mxu0 %v43197_v53  ;;  %38905 = vmatprep.mubr.f32.mxu1 %v43197_v53 }
 0x6d1   :  { %38810 = vmatmul.mubr.f32.gmra.mrb[118].mxu0 %v43228_v10  ;;  %38906 = vmatmul.mubr.f32.gmra.mrb[118].mxu1 %v43228_v10 }
 0x6d2   :  { %38812 = vmatprep.mubr.f32.mxu0 %v43238_v33  ;;  %38908 = vmatprep.mubr.f32.mxu1 %v43238_v33 }
 0x6d5   :  { %38813 = vmatmul.mubr.f32.gmra.mrb[120].mxu0 %v43257_v31  ;;  %38909 = vmatmul.mubr.f32.gmra.mrb[120].mxu1 %v43257_v31 }
 0x6d6   :  { %38819 = vmatprep.mubr.f32.mxu0 %v43097_v13  ;;  %38915 = vmatprep.mubr.f32.mxu1 %v43097_v13 }
 0x6d9   :  { %38820 = vmatmul.mubr.f32.vlgmr.msra.gmra.mrb[114].mxu0 %v43099_v46  ;;  %38916 = vmatmul.mubr.f32.vlgmr.msra.gmra.mrb[114].mxu1 %v43099_v46 }
 0x6da   :  { %40310 = vmatpush3.bf16.msra.mxu0 %v45372_v11  ;;  %40334 = vmatpush3.bf16.msra.mxu1 %v45373_v45 }
 0x6db   :  { %40336 = vmatprep.subr.bf16.mxu0 %v45376_v0  ;;  %40360 = vmatprep.subr.bf16.mxu1 %v45377_v26 }
 0x6dc   :  { %38822 = vmatprep.mubr.f32.mxu0 %v43139_v61  ;;  %38918 = vmatprep.mubr.f32.mxu1 %v43139_v61 }
 0x6dd   :  { %38823 = vmatmul.mubr.f32.gmra.mrb[116].mxu0 %v43146_v34  ;;  %38919 = vmatmul.mubr.f32.gmra.mrb[116].mxu1 %v43146_v34 }
 0x6de   :  { %38825 = vmatprep.mubr.f32.mxu0 %v43150_v30  ;;  %38921 = vmatprep.mubr.f32.mxu1 %v43150_v30 }
 0x6e1   :  { %38826 = vmatmul.mubr.f32.gmra.mrb[118].mxu0 %v43172_v60  ;;  %38922 = vmatmul.mubr.f32.gmra.mrb[118].mxu1 %v43172_v60 }
 0x6e2   :  { %38828 = vmatprep.mubr.f32.mxu0 %v43186_v22  ;;  %38924 = vmatprep.mubr.f32.mxu1 %v43186_v22 }
 0x6e5   :  { %38829 = vmatmul.mubr.f32.gmra.mrb[120].mxu0 %v43211_v18  ;;  %38925 = vmatmul.mubr.f32.gmra.mrb[120].mxu1 %v43211_v18 }
 0x6e6   :  { %38835 = vmatprep.mubr.f32.mxu0 %v43097_v13  ;;  %38931 = vmatprep.mubr.f32.mxu1 %v43097_v13 }
 0x6e9   :  { %38836 = vmatmul.mubr.f32.vlgmr.msra.gmra.mrb[114].mxu0 %v43099_v46  ;;  %38932 = vmatmul.mubr.f32.vlgmr.msra.gmra.mrb[114].mxu1 %v43099_v46 }
 0x6ea   :  { %40338 = vmatpush3.bf16.msra.mxu0 %v45376_v0  ;;  %40362 = vmatpush3.bf16.msra.mxu1 %v45377_v26 }
 0x6eb   :  { %40340 = vmatprep.subr.bf16.mxu0 %v43621_v56  ;;  %40364 = vmatprep.subr.bf16.mxu1 %v43623_v57 }
 0x6ec   :  { %38838 = vmatprep.mubr.f32.mxu0 %v43139_v61  ;;  %38934 = vmatprep.mubr.f32.mxu1 %v43139_v61 }
 0x6ed   :  { %38839 = vmatmul.mubr.f32.gmra.mrb[116].mxu0 %v43146_v34  ;;  %38935 = vmatmul.mubr.f32.gmra.mrb[116].mxu1 %v43146_v34 }
 0x6ee   :  { %38841 = vmatprep.mubr.f32.mxu0 %v43150_v30  ;;  %38937 = vmatprep.mubr.f32.mxu1 %v43150_v30 }
 0x6f1   :  { %38842 = vmatmul.mubr.f32.gmra.mrb[118].mxu0 %v43172_v60  ;;  %38938 = vmatmul.mubr.f32.gmra.mrb[118].mxu1 %v43172_v60 }
 0x6f2   :  { %38844 = vmatprep.mubr.f32.mxu0 %v43186_v22  ;;  %38940 = vmatprep.mubr.f32.mxu1 %v43186_v22 }
 0x6f5   :  { %38845 = vmatmul.mubr.f32.gmra.mrb[120].mxu0 %v43211_v18  ;;  %38941 = vmatmul.mubr.f32.gmra.mrb[120].mxu1 %v43211_v18 }
 0x6f6   :  { %38947 = vmatprep.mubr.f32.mxu0 %v43177_v20  ;;  %39043 = vmatprep.mubr.f32.mxu1 %v43177_v20 }
 0x6f9   :  { %38948 = vmatmul.mubr.f32.vlgmr.msra.gmra.mrb[122].mxu0 %v43179_v59  ;;  %39044 = vmatmul.mubr.f32.vlgmr.msra.gmra.mrb[122].mxu1 %v43179_v59 }
 0x6fa   :  { %40342 = vmatpush3.bf16.msra.mxu0 %v43621_v56  ;;  %40366 = vmatpush3.bf16.msra.mxu1 %v43623_v57 }
 0x6fb   :  { %40344 = vmatprep.subr.bf16.mxu0 %v45378_v3  ;;  %40368 = vmatprep.subr.bf16.mxu1 %v45379_v16 }
 0x6fc   :  { %v38453_v43 = vpop.f32.mrb[98].mxu0  ;;  %v38549_v8 = vpop.f32.mrb[98].mxu1  ;;  %38950 = vmatprep.mubr.f32.mxu0 %v43244_v28  ;;  %39046 = vmatprep.mubr.f32.mxu1 %v43244_v28 }
 0x6fd   :  { %33282 = vst.msk [vmem:[#allocation7 + $0x488] sm:$0xff] %vm33136_vm1, %v38453_v43  ;;  %33290 = vst.msk [vmem:[#allocation7 + $0x4c8] sm:$0xff] %vm33136_vm1, %v38549_v8  ;;  %v27770_v20 = vpop.f32.mrb[99].mxu0  ;;  %v28530_v59 = vpop.f32.mrb[99].mxu1  ;;  %38951 = vmatmul.mubr.f32.gmra.mrb[124].mxu0 %v43252_v37  ;;  %39047 = vmatmul.mubr.f32.gmra.mrb[124].mxu1 %v43252_v37 }
 0x6fe   :  { %33281 = vst.msk [vmem:[#allocation7 + $0x480] sm:$0xff] %vm33136_vm1, %v27770_v20  ;;  %33289 = vst.msk [vmem:[#allocation7 + $0x4c0] sm:$0xff] %vm33136_vm1, %v28530_v59  ;;  %38953 = vmatprep.mubr.f32.mxu0 %v43261_v4  ;;  %39049 = vmatprep.mubr.f32.mxu1 %v43261_v4 }
 0x700   :  { %v38456_v56 = vpop.f32.mrb[100].mxu0  ;;  %v38552_v28 = vpop.f32.mrb[100].mxu1 }
 0x701   :  { %33284 = vst.msk [vmem:[#allocation7 + $0x498] sm:$0xff] %vm33136_vm1, %v38456_v56  ;;  %33292 = vst.msk [vmem:[#allocation7 + $0x4d8] sm:$0xff] %vm33136_vm1, %v38552_v28  ;;  %v27782_v57 = vpop.f32.mrb[101].mxu0  ;;  %v28542_v9 = vpop.f32.mrb[101].mxu1  ;;  %38954 = vmatmul.mubr.f32.gmra.mrb[126].mxu0 %v43271_v23  ;;  %39050 = vmatmul.mubr.f32.gmra.mrb[126].mxu1 %v43271_v23 }
 0x702   :  { %33283 = vst.msk [vmem:[#allocation7 + $0x490] sm:$0xff] %vm33136_vm1, %v27782_v57  ;;  %33291 = vst.msk [vmem:[#allocation7 + $0x4d0] sm:$0xff] %vm33136_vm1, %v28542_v9  ;;  %38956 = vmatprep.mubr.f32.mxu0 %v43277_v49  ;;  %39052 = vmatprep.mubr.f32.mxu1 %v43277_v49 }
 0x704   :  { %v38459_v37 = vpop.f32.mrb[102].mxu0  ;;  %v38555_v4 = vpop.f32.mrb[102].mxu1 }
 0x705   :  { %33286 = vst.msk [vmem:[#allocation7 + $0x4a8] sm:$0xff] %vm33136_vm1, %v38459_v37  ;;  %33294 = vst.msk [vmem:[#allocation7 + $0x4e8] sm:$0xff] %vm33136_vm1, %v38555_v4  ;;  %v27794_v25 = vpop.f32.mrb[103].mxu0  ;;  %v28554_v11 = vpop.f32.mrb[103].mxu1  ;;  %38957 = vmatmul.mubr.f32.gmra.mrb[128].mxu0 %v43281_v14  ;;  %39053 = vmatmul.mubr.f32.gmra.mrb[128].mxu1 %v43281_v14 }
 0x706   :  { %33285 = vst.msk [vmem:[#allocation7 + $0x4a0] sm:$0xff] %vm33136_vm1, %v27794_v25  ;;  %33293 = vst.msk [vmem:[#allocation7 + $0x4e0] sm:$0xff] %vm33136_vm1, %v28554_v11  ;;  %38963 = vmatprep.mubr.f32.mxu0 %v43097_v13  ;;  %39059 = vmatprep.mubr.f32.mxu1 %v43097_v13 }
 0x708   :  { %v38462_v23 = vpop.f32.mrb[104].mxu0  ;;  %v38558_v49 = vpop.f32.mrb[104].mxu1 }
 0x709   :  { %33288 = vst.msk [vmem:[#allocation7 + $0x4b8] sm:$0xff] %vm33136_vm1, %v38462_v23  ;;  %33296 = vst.msk [vmem:[#allocation7 + $0x4f8] sm:$0xff] %vm33136_vm1, %v38558_v49  ;;  %v27806_v45 = vpop.f32.mrb[105].mxu0  ;;  %v28566_v55 = vpop.f32.mrb[105].mxu1  ;;  %38964 = vmatmul.mubr.f32.vlgmr.msra.gmra.mrb[122].mxu0 %v43099_v46  ;;  %39060 = vmatmul.mubr.f32.vlgmr.msra.gmra.mrb[122].mxu1 %v43099_v46 }
 0x70a   :  { %33287 = vst.msk [vmem:[#allocation7 + $0x4b0] sm:$0xff] %vm33136_vm1, %v27806_v45  ;;  %33295 = vst.msk [vmem:[#allocation7 + $0x4f0] sm:$0xff] %vm33136_vm1, %v28566_v55  ;;  %40346 = vmatpush3.bf16.msra.mxu0 %v45378_v3  ;;  %40370 = vmatpush3.bf16.msra.mxu1 %v45379_v16 }
 0x70b   :  { %40348 = vmatprep.subr.bf16.mxu0 %v45376_v0  ;;  %40372 = vmatprep.subr.bf16.mxu1 %v45377_v26 }
 0x70c   :  { %38966 = vmatprep.mubr.f32.mxu0 %v43139_v61  ;;  %39062 = vmatprep.mubr.f32.mxu1 %v43139_v61 }
 0x70d   :  { %38967 = vmatmul.mubr.f32.gmra.mrb[124].mxu0 %v43146_v34  ;;  %39063 = vmatmul.mubr.f32.gmra.mrb[124].mxu1 %v43146_v34 }
 0x70e   :  { %38969 = vmatprep.mubr.f32.mxu0 %v43150_v30  ;;  %39065 = vmatprep.mubr.f32.mxu1 %v43150_v30 }
 0x711   :  { %38970 = vmatmul.mubr.f32.gmra.mrb[126].mxu0 %v43172_v60  ;;  %39066 = vmatmul.mubr.f32.gmra.mrb[126].mxu1 %v43172_v60 }
 0x712   :  { %38972 = vmatprep.mubr.f32.mxu0 %v43186_v22  ;;  %39068 = vmatprep.mubr.f32.mxu1 %v43186_v22 }
 0x715   :  { %38973 = vmatmul.mubr.f32.gmra.mrb[128].mxu0 %v43211_v18  ;;  %39069 = vmatmul.mubr.f32.gmra.mrb[128].mxu1 %v43211_v18 }
 0x716   :  { %38979 = vmatprep.mubr.f32.mxu0 %v43115_v21  ;;  %39075 = vmatprep.mubr.f32.mxu1 %v43115_v21 }
 0x719   :  { %38980 = vmatmul.mubr.f32.vlgmr.msra.gmra.mrb[122].mxu0 %v43118_v38  ;;  %39076 = vmatmul.mubr.f32.vlgmr.msra.gmra.mrb[122].mxu1 %v43118_v38 }
 0x71a   :  { %40350 = vmatpush3.bf16.msra.mxu0 %v45376_v0  ;;  %40374 = vmatpush3.bf16.msra.mxu1 %v45377_v26 }
 0x71b   :  { %40352 = vmatprep.subr.bf16.mxu0 %v43613_v54  ;;  %40376 = vmatprep.subr.bf16.mxu1 %v43615_v48 }
 0x71c   :  { %38982 = vmatprep.mubr.f32.mxu0 %v43163_v7  ;;  %39078 = vmatprep.mubr.f32.mxu1 %v43163_v7 }
 0x71d   :  { %38983 = vmatmul.mubr.f32.gmra.mrb[124].mxu0 %v43166_v42  ;;  %39079 = vmatmul.mubr.f32.gmra.mrb[124].mxu1 %v43166_v42 }
 0x71e   :  { %38985 = vmatprep.mubr.f32.mxu0 %v43170_v24  ;;  %39081 = vmatprep.mubr.f32.mxu1 %v43170_v24 }
 0x721   :  { %38986 = vmatmul.mubr.f32.gmra.mrb[126].mxu0 %v43200_v40  ;;  %39082 = vmatmul.mubr.f32.gmra.mrb[126].mxu1 %v43200_v40 }
 0x722   :  { %38988 = vmatprep.mubr.f32.mxu0 %v43209_v27  ;;  %39084 = vmatprep.mubr.f32.mxu1 %v43209_v27 }
 0x725   :  { %38989 = vmatmul.mubr.f32.gmra.mrb[128].mxu0 %v43231_v5  ;;  %39085 = vmatmul.mubr.f32.gmra.mrb[128].mxu1 %v43231_v5 }
 0x726   :  { %38995 = vmatprep.mubr.f32.mxu0 %v43129_v35  ;;  %39091 = vmatprep.mubr.f32.mxu1 %v43129_v35 }
 0x729   :  { %38996 = vmatmul.mubr.f32.vlgmr.msra.gmra.mrb[122].mxu0 %v43132_v41  ;;  %39092 = vmatmul.mubr.f32.vlgmr.msra.gmra.mrb[122].mxu1 %v43132_v41 }
 0x72a   :  { %40354 = vmatpush3.bf16.msra.mxu0 %v43613_v54  ;;  %40378 = vmatpush3.bf16.msra.mxu1 %v43615_v48 }
 0x72b   :  { %40356 = vmatprep.subr.bf16.mxu0 %v45376_v0  ;;  %40380 = vmatprep.subr.bf16.mxu1 %v45377_v26 }
 0x72c   :  { %38998 = vmatprep.mubr.f32.mxu0 %v43184_v36  ;;  %39094 = vmatprep.mubr.f32.mxu1 %v43184_v36 }
 0x72d   :  { %38999 = vmatmul.mubr.f32.gmra.mrb[124].mxu0 %v43191_v44  ;;  %39095 = vmatmul.mubr.f32.gmra.mrb[124].mxu1 %v43191_v44 }
 0x72e   :  { %39001 = vmatprep.mubr.f32.mxu0 %v43197_v53  ;;  %39097 = vmatprep.mubr.f32.mxu1 %v43197_v53 }
 0x731   :  { %39002 = vmatmul.mubr.f32.gmra.mrb[126].mxu0 %v43228_v10  ;;  %39098 = vmatmul.mubr.f32.gmra.mrb[126].mxu1 %v43228_v10 }
 0x732   :  { %39004 = vmatprep.mubr.f32.mxu0 %v43238_v33  ;;  %39100 = vmatprep.mubr.f32.mxu1 %v43238_v33 }
 0x735   :  { %39005 = vmatmul.mubr.f32.gmra.mrb[128].mxu0 %v43257_v31  ;;  %39101 = vmatmul.mubr.f32.gmra.mrb[128].mxu1 %v43257_v31 }
 0x736   :  { %39011 = vmatprep.mubr.f32.mxu0 %v43097_v13  ;;  %39107 = vmatprep.mubr.f32.mxu1 %v43097_v13 }
 0x739   :  { %39012 = vmatmul.mubr.f32.vlgmr.msra.gmra.mrb[122].mxu0 %v43099_v46  ;;  %39108 = vmatmul.mubr.f32.vlgmr.msra.gmra.mrb[122].mxu1 %v43099_v46 }
 0x73a   :  { %40358 = vmatpush3.bf16.msra.mxu0 %v45376_v0  ;;  %40382 = vmatpush3.bf16.msra.mxu1 %v45377_v26 }
 0x73b   :  { %39014 = vmatprep.mubr.f32.mxu0 %v43139_v61  ;;  %39110 = vmatprep.mubr.f32.mxu1 %v43139_v61 }
 0x73d   :  { %39015 = vmatmul.mubr.f32.gmra.mrb[124].mxu0 %v43146_v34  ;;  %39111 = vmatmul.mubr.f32.gmra.mrb[124].mxu1 %v43146_v34 }
 0x73e   :  { %39017 = vmatprep.mubr.f32.mxu0 %v43150_v30  ;;  %39113 = vmatprep.mubr.f32.mxu1 %v43150_v30 }
 0x741   :  { %39018 = vmatmul.mubr.f32.gmra.mrb[126].mxu0 %v43172_v60  ;;  %39114 = vmatmul.mubr.f32.gmra.mrb[126].mxu1 %v43172_v60 }
 0x742   :  { %39020 = vmatprep.mubr.f32.mxu0 %v43186_v22  ;;  %39116 = vmatprep.mubr.f32.mxu1 %v43186_v22 }
 0x745   :  { %39021 = vmatmul.mubr.f32.gmra.mrb[128].mxu0 %v43211_v18  ;;  %39117 = vmatmul.mubr.f32.gmra.mrb[128].mxu1 %v43211_v18 }
 0x746   :  { %39027 = vmatprep.mubr.f32.mxu0 %v43097_v13  ;;  %39123 = vmatprep.mubr.f32.mxu1 %v43097_v13 }
 0x749   :  { %39028 = vmatmul.mubr.f32.vlgmr.msra.gmra.mrb[122].mxu0 %v43099_v46  ;;  %39124 = vmatmul.mubr.f32.vlgmr.msra.gmra.mrb[122].mxu1 %v43099_v46 }
 0x74a   :  { %39030 = vmatprep.mubr.f32.mxu0 %v43139_v61  ;;  %39126 = vmatprep.mubr.f32.mxu1 %v43139_v61 }
 0x74d   :  { %39031 = vmatmul.mubr.f32.gmra.mrb[124].mxu0 %v43146_v34  ;;  %39127 = vmatmul.mubr.f32.gmra.mrb[124].mxu1 %v43146_v34 }
 0x74e   :  { %39033 = vmatprep.mubr.f32.mxu0 %v43150_v30  ;;  %39129 = vmatprep.mubr.f32.mxu1 %v43150_v30 }
 0x751   :  { %39034 = vmatmul.mubr.f32.gmra.mrb[126].mxu0 %v43172_v60  ;;  %39130 = vmatmul.mubr.f32.gmra.mrb[126].mxu1 %v43172_v60 }
 0x752   :  { %39036 = vmatprep.mubr.f32.mxu0 %v43186_v22  ;;  %39132 = vmatprep.mubr.f32.mxu1 %v43186_v22 }
 0x755   :  { %39037 = vmatmul.mubr.f32.gmra.mrb[128].mxu0 %v43211_v18  ;;  %39133 = vmatmul.mubr.f32.gmra.mrb[128].mxu1 %v43211_v18 }
 0x75c   :  { %v38645_v40 = vpop.f32.mrb[106].mxu0  ;;  %v38741_v53 = vpop.f32.mrb[106].mxu1 }
 0x75d   :  { %33298 = vst.msk [vmem:[#allocation7 + $0x508] sm:$0xff] %vm33136_vm1, %v38645_v40  ;;  %33306 = vst.msk [vmem:[#allocation7 + $0x548] sm:$0xff] %vm33136_vm1, %v38741_v53  ;;  %v29290_v13 = vpop.f32.mrb[107].mxu0  ;;  %v30050_v46 = vpop.f32.mrb[107].mxu1 }
 0x75e   :  { %33297 = vst.msk [vmem:[#allocation7 + $0x500] sm:$0xff] %vm33136_vm1, %v29290_v13  ;;  %33305 = vst.msk [vmem:[#allocation7 + $0x540] sm:$0xff] %vm33136_vm1, %v30050_v46 }
 0x760   :  { %v38648_v21 = vpop.f32.mrb[108].mxu0  ;;  %v38744_v38 = vpop.f32.mrb[108].mxu1 }
 0x761   :  { %33300 = vst.msk [vmem:[#allocation7 + $0x518] sm:$0xff] %vm33136_vm1, %v38648_v21  ;;  %33308 = vst.msk [vmem:[#allocation7 + $0x558] sm:$0xff] %vm33136_vm1, %v38744_v38  ;;  %v29302_v35 = vpop.f32.mrb[109].mxu0  ;;  %v30062_v18 = vpop.f32.mrb[109].mxu1 }
 0x762   :  { %33299 = vst.msk [vmem:[#allocation7 + $0x510] sm:$0xff] %vm33136_vm1, %v29302_v35  ;;  %33307 = vst.msk [vmem:[#allocation7 + $0x550] sm:$0xff] %vm33136_vm1, %v30062_v18 }
 0x764   :  { %v38651_v41 = vpop.f32.mrb[110].mxu0  ;;  %v38747_v61 = vpop.f32.mrb[110].mxu1 }
 0x765   :  { %33302 = vst.msk [vmem:[#allocation7 + $0x528] sm:$0xff] %vm33136_vm1, %v38651_v41  ;;  %33310 = vst.msk [vmem:[#allocation7 + $0x568] sm:$0xff] %vm33136_vm1, %v38747_v61  ;;  %v29314_v34 = vpop.f32.mrb[111].mxu0  ;;  %v30074_v30 = vpop.f32.mrb[111].mxu1 }
 0x766   :  { %33301 = vst.msk [vmem:[#allocation7 + $0x520] sm:$0xff] %vm33136_vm1, %v29314_v34  ;;  %33309 = vst.msk [vmem:[#allocation7 + $0x560] sm:$0xff] %vm33136_vm1, %v30074_v30 }
 0x768   :  { %v38654_v7 = vpop.f32.mrb[112].mxu0  ;;  %v38750_v42 = vpop.f32.mrb[112].mxu1 }
 0x769   :  { %33304 = vst.msk [vmem:[#allocation7 + $0x538] sm:$0xff] %vm33136_vm1, %v38654_v7  ;;  %33312 = vst.msk [vmem:[#allocation7 + $0x578] sm:$0xff] %vm33136_vm1, %v38750_v42  ;;  %v29326_v24 = vpop.f32.mrb[113].mxu0  ;;  %v30086_v60 = vpop.f32.mrb[113].mxu1 }
 0x76a   :  { %33303 = vst.msk [vmem:[#allocation7 + $0x530] sm:$0xff] %vm33136_vm1, %v29326_v24  ;;  %33311 = vst.msk [vmem:[#allocation7 + $0x570] sm:$0xff] %vm33136_vm1, %v30086_v60 }
 0x7bc   :  { %v38837_v36 = vpop.f32.mrb[114].mxu0  ;;  %v38933_v22 = vpop.f32.mrb[114].mxu1 }
 0x7bd   :  { %33314 = vst.msk [vmem:[#allocation7 + $0x588] sm:$0xff] %vm33136_vm1, %v38837_v36  ;;  %33322 = vst.msk [vmem:[#allocation7 + $0x5c8] sm:$0xff] %vm33136_vm1, %v38933_v22  ;;  %v30810_v44 = vpop.f32.mrb[115].mxu0  ;;  %v31570_v27 = vpop.f32.mrb[115].mxu1 }
 0x7be   :  { %33313 = vst.msk [vmem:[#allocation7 + $0x580] sm:$0xff] %vm33136_vm1, %v30810_v44  ;;  %33321 = vst.msk [vmem:[#allocation7 + $0x5c0] sm:$0xff] %vm33136_vm1, %v31570_v27 }
 0x7c0   :  { %v38840_v10 = vpop.f32.mrb[116].mxu0  ;;  %v38936_v5 = vpop.f32.mrb[116].mxu1 }
 0x7c1   :  { %33316 = vst.msk [vmem:[#allocation7 + $0x598] sm:$0xff] %vm33136_vm1, %v38840_v10  ;;  %33324 = vst.msk [vmem:[#allocation7 + $0x5d8] sm:$0xff] %vm33136_vm1, %v38936_v5  ;;  %v30822_v33 = vpop.f32.mrb[117].mxu0  ;;  %v31582_v31 = vpop.f32.mrb[117].mxu1 }
 0x7c2   :  { %33315 = vst.msk [vmem:[#allocation7 + $0x590] sm:$0xff] %vm33136_vm1, %v30822_v33  ;;  %33323 = vst.msk [vmem:[#allocation7 + $0x5d0] sm:$0xff] %vm33136_vm1, %v31582_v31 }
 0x7c4   :  { %v38843_v14 = vpop.f32.mrb[118].mxu0  ;;  %v38939_v54 = vpop.f32.mrb[118].mxu1 }
 0x7c5   :  { %33318 = vst.msk [vmem:[#allocation7 + $0x5a8] sm:$0xff] %vm33136_vm1, %v38843_v14  ;;  %33326 = vst.msk [vmem:[#allocation7 + $0x5e8] sm:$0xff] %vm33136_vm1, %v38939_v54  ;;  %v30834_v48 = vpop.f32.mrb[119].mxu0  ;;  %v31594_v58 = vpop.f32.mrb[119].mxu1 }
 0x7c6   :  { %33317 = vst.msk [vmem:[#allocation7 + $0x5a0] sm:$0xff] %vm33136_vm1, %v30834_v48  ;;  %33325 = vst.msk [vmem:[#allocation7 + $0x5e0] sm:$0xff] %vm33136_vm1, %v31594_v58 }
 0x7c8   :  { %v38846_v15 = vpop.f32.mrb[120].mxu0  ;;  %v38942_v32 = vpop.f32.mrb[120].mxu1 }
 0x7c9   :  { %33320 = vst.msk [vmem:[#allocation7 + $0x5b8] sm:$0xff] %vm33136_vm1, %v38846_v15  ;;  %33328 = vst.msk [vmem:[#allocation7 + $0x5f8] sm:$0xff] %vm33136_vm1, %v38942_v32  ;;  %v30846_v62 = vpop.f32.mrb[121].mxu0  ;;  %v31606_v39 = vpop.f32.mrb[121].mxu1 }
 0x7ca   :  { %33319 = vst.msk [vmem:[#allocation7 + $0x5b0] sm:$0xff] %vm33136_vm1, %v30846_v62  ;;  %33327 = vst.msk [vmem:[#allocation7 + $0x5f0] sm:$0xff] %vm33136_vm1, %v31606_v39 }
 0x81c   :  { %v39029_v29 = vpop.f32.mrb[122].mxu0  ;;  %v39125_v52 = vpop.f32.mrb[122].mxu1 }
 0x81d   :  { %33330 = vst.msk [vmem:[#allocation7 + $0x608] sm:$0xff] %vm33136_vm1, %v39029_v29  ;;  %33338 = vst.msk [vmem:[#allocation7 + $0x648] sm:$0xff] %vm33136_vm1, %v39125_v52  ;;  %v32330_v50 = vpop.f32.mrb[123].mxu0  ;;  %v33090_v6 = vpop.f32.mrb[123].mxu1 }
 0x81e   :  { %33329 = vst.msk [vmem:[#allocation7 + $0x600] sm:$0xff] %vm33136_vm1, %v32330_v50  ;;  %33337 = vst.msk [vmem:[#allocation7 + $0x640] sm:$0xff] %vm33136_vm1, %v33090_v6 }
 0x820   :  { %v39032_v51 = vpop.f32.mrb[124].mxu0  ;;  %v39128_v1 = vpop.f32.mrb[124].mxu1 }
 0x821   :  { %33332 = vst.msk [vmem:[#allocation7 + $0x618] sm:$0xff] %vm33136_vm1, %v39032_v51  ;;  %33340 = vst.msk [vmem:[#allocation7 + $0x658] sm:$0xff] %vm33136_vm1, %v39128_v1  ;;  %v32342_v17 = vpop.f32.mrb[125].mxu0  ;;  %v33102_v63 = vpop.f32.mrb[125].mxu1 }
 0x822   :  { %33331 = vst.msk [vmem:[#allocation7 + $0x610] sm:$0xff] %vm33136_vm1, %v32342_v17  ;;  %33339 = vst.msk [vmem:[#allocation7 + $0x650] sm:$0xff] %vm33136_vm1, %v33102_v63 }
 0x824   :  { %v39035_v19 = vpop.f32.mrb[126].mxu0  ;;  %v39131_v2 = vpop.f32.mrb[126].mxu1 }
 0x825   :  { %33334 = vst.msk [vmem:[#allocation7 + $0x628] sm:$0xff] %vm33136_vm1, %v39035_v19  ;;  %33342 = vst.msk [vmem:[#allocation7 + $0x668] sm:$0xff] %vm33136_vm1, %v39131_v2  ;;  %v32354_v12 = vpop.f32.mrb[127].mxu0  ;;  %v33114_v47 = vpop.f32.mrb[127].mxu1 }
 0x826   :  { %33333 = vst.msk [vmem:[#allocation7 + $0x620] sm:$0xff] %vm33136_vm1, %v32354_v12  ;;  %33341 = vst.msk [vmem:[#allocation7 + $0x660] sm:$0xff] %vm33136_vm1, %v33114_v47 }
 0x828   :  { %v39038_v0 = vpop.f32.mrb[128].mxu0  ;;  %v39134_v26 = vpop.f32.mrb[128].mxu1 }
 0x829   :  { %33336 = vst.msk [vmem:[#allocation7 + $0x638] sm:$0xff] %vm33136_vm1, %v39038_v0  ;;  %33344 = vst.msk [vmem:[#allocation7 + $0x678] sm:$0xff] %vm33136_vm1, %v39134_v26  ;;  %v32366_v3 = vpop.f32.mrb[129].mxu0  ;;  %v33126_v16 = vpop.f32.mrb[129].mxu1 }
 0x82a   :  { %33335 = vst.msk [vmem:[#allocation7 + $0x630] sm:$0xff] %vm33136_vm1, %v32366_v3  ;;  %33343 = vst.msk [vmem:[#allocation7 + $0x670] sm:$0xff] %vm33136_vm1, %v33126_v16 }
 0x82b   :  { %41747 = shalt.err (!%p41744_p6)
}
 0x82c   :  { %s41748_s23 = scalar_lea.hbm %s45129_s5, 26624 }
 0x82d   :  { %p41749_p7 = scmp.ne.s32.totalorder %s45129_s5, %s41748_s23  ;;  %p41752_p8 = scmp.lt.u32.totalorder %s41748_s23, %s45129_s5 }
 0x82f   :  { %p41754_p9 = pnand %p41752_p8, %p41749_p7 }
 0x831   :  { %41757 = shalt.err (!%p41754_p9)
}
 0x832   :  { %33356 = dma.vmem_to_hbm [thread:$0]  %s33351_s19, 26624, %s45129_s5, [#allocation4], %s41765_s28, %s41765_s28, %s41766_s29  }
 0x833   :  { %41762 = dma.done.wait [#allocation4], 26624  }
 0x834   :  { %41763 = vsyncadd [#allocation4], 4294940672 }
 0x835   :  { %33360 = vsyncpa [#allocation3], 1 }
 0x836   :  { %33361 = vsyncpa [#allocation6], 1 }
 0x837   :  { %33362 = vsyncpa [#allocation4], 1 }

</bundles_post_ra>
